<compile_context>
chip_gen: v7x
topology: tpu7x:2x2x1
jax: 0.10.0
libtpu: 0.0.40
codegen_flags: <defaults>
</compile_context>

<pallas_src>
import numpy as np
import jax
import jax.numpy as jnp
from jax.experimental import pallas as pl
from jax.experimental.pallas import tpu as pltpu


def _make_flow_kernel(B, W, Ch):
    """Kernel factory. B = images folded into one grid step, W = image width,
    Ch = half the channel count.  All static."""

    def flow_kernel(x_ref, wf_ref, bf_ref, w1_ref, b1_ref, w2_ref, b2_ref,
                    wz_ref, czc_ref, bz_ref, o_ref):
        _, C, HW = x_ref.shape
        BHW = B * HW

        # ---- load: channels on sublanes, pixels of all B images on lanes ----
        if B == 1:
            x_t = x_ref[0]                                                # (C, HW)
        else:
            x_t = jnp.concatenate([x_ref[b] for b in range(B)], axis=-1)  # (C, B*HW)

        # ---- fused ActNorm + invertible 1x1 conv: K = C = 4 -> VPU FMAs ----
        # y_t[c, p] = bf[c] + sum_k wf_t[c, k] * x_t[k, p]   (exact f32)
        y_t = bf_ref[...] + wf_ref[:, 0:1] * x_t[0:1, :]
        for k in range(1, C):
            y_t = y_t + wf_ref[:, k:k + 1] * x_t[k:k + 1, :]              # (C, BHW)

        x_a_t = y_t[:Ch, :]                                  # identity half (f32)
        x_b_t = y_t[Ch:, :]

        # per-image row-position masks for the (3,1) height taps
        lane = jax.lax.broadcasted_iota(jnp.int32, (Ch, BHW), 1)
        if B == 1:
            pos = lane
        elif (HW & (HW - 1)) == 0:
            pos = jnp.bitwise_and(lane, HW - 1)
        else:
            pos = jnp.remainder(lane, HW)
        first_row = pos < W            # h == 0     (zero / value-1 pad row)
        last_row = pos >= HW - W       # h == H - 1

        # ---- Conv2d(Ch->F, (3,1), pad (1,0)): ONE im2col matmul, bf16/f32 ----
        a_prev = jnp.where(first_row, 0.0, pltpu.roll(x_a_t, W, axis=1))
        a_next = jnp.where(last_row, 0.0, pltpu.roll(x_a_t, BHW - W, axis=1))
        im2col = jnp.concatenate([a_prev, x_a_t, a_next], axis=0)   # (3*Ch, BHW)
        h1 = jnp.dot(w1_ref[...], im2col.astype(jnp.bfloat16),
                     preferred_element_type=jnp.float32) + b1_ref[...]
        h1 = jnp.maximum(h1, 0.0)                                   # (F, BHW) f32

        # ---- Conv2d(F->F, 1x1) + ReLU: the big matmul, bf16 in / f32 acc ----
        h2 = jnp.dot(w2_ref[...], h1.astype(jnp.bfloat16),
                     preferred_element_type=jnp.float32) + b2_ref[...]
        h2 = jnp.maximum(h2, 0.0).astype(jnp.bfloat16)              # (F, BHW)

        # ---- ZeroConv2d: (3,1) conv, height pad value 1, * exp(3*scale) ----
        # One bf16 matmul for all three taps (scale + bias pre-folded into the
        # weights); the 1-row shifts are applied to the small (Ch, BHW) outputs,
        # and the value-1 pad rows are patched with exact f32 weight column sums.
        zall = jnp.dot(wz_ref[...], h2,
                       preferred_element_type=jnp.float32)          # (3*Ch, BHW)
        c_prev = czc_ref[:Ch, :]                                    # (Ch, 1)
        c_next = czc_ref[Ch:, :]
        z_prev = jnp.where(first_row, c_prev,
                           pltpu.roll(zall[:Ch, :], W, axis=1))
        z_next = jnp.where(last_row, c_next,
                           pltpu.roll(zall[2 * Ch:, :], BHW - W, axis=1))
        net = z_prev + zall[Ch:2 * Ch, :] + z_next + bz_ref[...]    # (Ch, BHW)

        out_b_t = x_b_t + net

        # ---- lane-dense stores; output stays flattened NCHW ----
        for b in range(B):
            o_ref[b, 0:Ch, :] = x_a_t[:, b * HW:(b + 1) * HW]
            o_ref[b, Ch:C, :] = out_b_t[:, b * HW:(b + 1) * HW]

    return flow_kernel


def _per_step_batch(N):
    """Images folded into one grid step (along the lane axis).

    v7x has 2 TensorCores per chip -> keep one image per step so grid=(N,) with
    "parallel" semantics splits the batch across cores.  Single-TC v5e/v6e: fold
    the whole batch into a single step (no per-step overhead, wider matmuls)."""
    try:
        kind = jax.devices()[0].device_kind.lower()
    except Exception:
        kind = ""
    if "v7" in kind or "7x" in kind:
        return 1
    return N


def flow_forward(x_nchw, params):
    loc, scale, winv, w1, b1, w2, b2, wz, bz, sz = params
    N, C, H, W = x_nchw.shape
    Ch = C // 2
    F = w1.shape[-1]
    HW = H * W

    # Flattened NCHW (free reshape, no transpose); lane dim = H*W.
    x_flat = x_nchw.reshape(N, C, HW).astype(jnp.float32)

    # --- parameter pre-folding into channels-on-sublanes (transposed) weights ---
    # fused ActNorm + InvConv:  y_t = wf_t @ x_t + bf_t  (done on the VPU, f32)
    wf_t = (winv * scale[None, :]).astype(jnp.float32)                   # (C, C)
    bf_t = (winv @ (scale * loc)).reshape(C, 1).astype(jnp.float32)      # (C, 1)
    # conv1 im2col weight; im2col rows are [prev-tap, curr, next-tap] channels
    w1_t = w1.reshape(3 * Ch, F).T.astype(jnp.bfloat16)                  # (F, 3*Ch)
    b1_t = b1.reshape(F, 1).astype(jnp.float32)
    w2_t = w2.T.astype(jnp.bfloat16)                                     # (F, F)
    b2_t = b2.reshape(F, 1).astype(jnp.float32)
    # ZeroConv: fold exp(3*scale) and bias; pad-row column sums kept exact (f32)
    ez = jnp.exp(sz * 3.0)                                               # (Ch,)
    wz_eff = wz * ez[None, None, :]                                      # (3, F, Ch)
    wz_t = jnp.transpose(wz_eff, (0, 2, 1)).reshape(3 * Ch, F)           # (3*Ch, F)
    czc = jnp.concatenate([jnp.sum(wz_eff[0], axis=0),
                           jnp.sum(wz_eff[2], axis=0)]).reshape(2 * Ch, 1)
    czc = czc.astype(jnp.float32)
    wz_t = wz_t.astype(jnp.bfloat16)
    bz_t = (bz * ez).reshape(Ch, 1).astype(jnp.float32)

    B = _per_step_batch(N)
    kernel = _make_flow_kernel(B, W, Ch)

    y_flat = pl.pallas_call(
        kernel,
        out_shape=jax.ShapeDtypeStruct((N, C, HW), jnp.float32),
        grid_spec=pltpu.PrefetchScalarGridSpec(
            num_scalar_prefetch=0,
            grid=(N // B,),
            in_specs=[
                pl.BlockSpec((B, C, HW), lambda n: (n, 0, 0)),    # x (NCHW-flat)
                pl.BlockSpec((C, C), lambda n: (0, 0)),           # fused actnorm+invconv W^T
                pl.BlockSpec((C, 1), lambda n: (0, 0)),           # fused bias (column)
                pl.BlockSpec((F, 3 * Ch), lambda n: (0, 0)),      # conv1 im2col weight (bf16)
                pl.BlockSpec((F, 1), lambda n: (0, 0)),           # conv1 bias
                pl.BlockSpec((F, F), lambda n: (0, 0)),           # conv2 weight (bf16)
                pl.BlockSpec((F, 1), lambda n: (0, 0)),           # conv2 bias
                pl.BlockSpec((3 * Ch, F), lambda n: (0, 0)),      # zeroconv weight, 3 taps (bf16)
                pl.BlockSpec((2 * Ch, 1), lambda n: (0, 0)),      # zeroconv pad-row column sums
                pl.BlockSpec((Ch, 1), lambda n: (0, 0)),          # zeroconv bias (scaled)
            ],
            out_specs=pl.BlockSpec((B, C, HW), lambda n: (n, 0, 0)),
        ),
        compiler_params=pltpu.CompilerParams(
            dimension_semantics=("parallel",),     # v7x: the 2 TCs split the batch
            vmem_limit_bytes=32 * 1024 * 1024),    # working set is a few MiB
    )(x_flat, wf_t, bf_t, w1_t, b1_t, w2_t, b2_t, wz_t, czc, bz_t)

    y = y_flat.reshape(N, C, H, W)   # free reshape back to NCHW, no transpose

    # log-determinant (parameter-only; plain JAX glue).  Coupling logdet == 0.
    log_det = H * W * (jnp.sum(jnp.log(jnp.abs(scale)))
                       + jnp.linalg.slogdet(winv)[1])
    return y, log_det


def init_params(key, C, F):
    """Deterministic parameter init mirroring the PyTorch __init__ shapes."""
    Ch = C // 2
    k = jax.random.split(key, 5)
    # ActNorm (pre data-dependent-init values; deterministic here)
    loc = 0.1 * jax.random.normal(k[0], (C,), jnp.float32)
    scale = 1.0 + 0.1 * jax.random.normal(k[1], (C,), jnp.float32)
    # InvConv: random orthogonal init
    winv, _ = jnp.linalg.qr(jax.random.normal(k[2], (C, C), jnp.float32))  # (Cout,Cin)
    # Conv1: torch weight (F, Ch, 3, 1) ~ N(0, 0.05); repack to (tap, Cin, Cout)
    w1_t = 0.05 * jax.random.normal(k[3], (F, Ch, 3, 1), jnp.float32)
    w1 = jnp.transpose(w1_t[:, :, :, 0], (2, 1, 0))        # (3, Ch, F)
    b1 = jnp.zeros((F,), jnp.float32)
    # Conv2: torch (F, F, 1, 1) ~ N(0, 0.05); repack to (Cin, Cout)
    w2 = (0.05 * jax.random.normal(k[4], (F, F), jnp.float32)).T
    b2 = jnp.zeros((F,), jnp.float32)
    # ZeroConv2d: zero weight / bias / scale (exactly as in the module)
    wz = jnp.zeros((3, F, Ch), jnp.float32)                # (tap, Cin=F, Cout=Ch)
    bz = jnp.zeros((Ch,), jnp.float32)
    sz = jnp.zeros((Ch,), jnp.float32)
    return (loc, scale, winv, w1, b1, w2, b2, wz, bz, sz)


def flow_reference(x_nchw, params):
    """Plain-JAX f32 reference with identical math (for verification)."""
    loc, scale, winv, w1, b1, w2, b2, wz, bz, sz = params
    x = jnp.transpose(x_nchw, (0, 2, 3, 1)).astype(jnp.float32)
    N, H, W, C = x.shape
    Ch = C // 2
    y = (x + loc) * scale
    y = jnp.einsum('nhwc,cd->nhwd', y, winv.T)
    x_a, x_b = y[..., :Ch], y[..., Ch:]
    zp = jnp.zeros((N, 1, W, Ch), jnp.float32)
    a_prev = jnp.concatenate([zp, x_a[:, :-1]], axis=1)
    a_next = jnp.concatenate([x_a[:, 1:], zp], axis=1)
    h1 = (jnp.einsum('nhwc,cf->nhwf', a_prev, w1[0])
          + jnp.einsum('nhwc,cf->nhwf', x_a, w1[1])
          + jnp.einsum('nhwc,cf->nhwf', a_next, w1[2]) + b1)
    h1 = jnp.maximum(h1, 0.0)
    h2 = jnp.maximum(jnp.einsum('nhwf,fg->nhwg', h1, w2) + b2, 0.0)
    op = jnp.ones((N, 1, W, h2.shape[-1]), jnp.float32)
    p_prev = jnp.concatenate([op, h2[:, :-1]], axis=1)
    p_next = jnp.concatenate([h2[:, 1:], op], axis=1)
    z = (jnp.einsum('nhwf,fc->nhwc', p_prev, wz[0])
         + jnp.einsum('nhwf,fc->nhwc', h2, wz[1])
         + jnp.einsum('nhwf,fc->nhwc', p_next, wz[2]) + bz)
    z = z * jnp.exp(sz * 3.0)
    out = jnp.concatenate([x_a, x_b + z], axis=-1)
    out = jnp.transpose(out, (0, 3, 1, 2))
    log_det = H * W * (jnp.sum(jnp.log(jnp.abs(scale)))
                       + jnp.linalg.slogdet(winv)[1])
    return out, log_det


if __name__ == "__main__":
    N, C, H, W = 2, 4, 16, 16
    FILTER_SIZE = 512   # module default filter_size

    key = jax.random.PRNGKey(0)
    kx, kp, kz = jax.random.split(key, 3)
    x = jax.random.normal(kx, (N, C, H, W), jnp.float32)
    params = init_params(kp, C, FILTER_SIZE)

    # The module zero-inits the ZeroConv2d params (output would be trivially
    # [x_a, x_b]); perturb them slightly so the numerical check actually
    # exercises the full coupling-net path of the kernel.
    loc, scale, winv, w1, b1, w2, b2, wz, bz, sz = params
    kz1, kz2, kz3 = jax.random.split(kz, 3)
    wz = 0.02 * jax.random.normal(kz1, wz.shape, jnp.float32)
    bz = 0.02 * jax.random.normal(kz2, bz.shape, jnp.float32)
    sz = 0.10 * jax.random.normal(kz3, sz.shape, jnp.float32)
    params = (loc, scale, winv, w1, b1, w2, b2, wz, bz, sz)

    y, log_det = flow_forward(x, params)
    y = jax.block_until_ready(y)
    log_det = jax.block_until_ready(log_det)

    y_ref, ld_ref = flow_reference(x, params)
    np.testing.assert_allclose(np.asarray(y), np.asarray(y_ref),
                               rtol=2e-3, atol=2e-3)
    np.testing.assert_allclose(float(log_det), float(ld_ref),
                               rtol=1e-4, atol=1e-4)
    print("KERNEL_OK")
</pallas_src>

<mosaic_0001>
module attributes {stable_mosaic.version = 11 : i64} {
  func.func @flow_kernel(%arg0: i32, %arg1: memref<2x4x256xf32, #tpu.memory_space<vmem>>, %arg2: memref<4x4xf32, #tpu.memory_space<vmem>>, %arg3: memref<4x1xf32, #tpu.memory_space<vmem>>, %arg4: memref<512x6xbf16, #tpu.memory_space<vmem>>, %arg5: memref<512x1xf32, #tpu.memory_space<vmem>>, %arg6: memref<512x512xbf16, #tpu.memory_space<vmem>>, %arg7: memref<512x1xf32, #tpu.memory_space<vmem>>, %arg8: memref<6x512xbf16, #tpu.memory_space<vmem>>, %arg9: memref<4x1xf32, #tpu.memory_space<vmem>>, %arg10: memref<2x1xf32, #tpu.memory_space<vmem>>, %arg11: memref<2x4x256xf32, #tpu.memory_space<vmem>>) attributes {dimension_semantics = [#tpu.dimension_semantics<parallel>], iteration_bounds = array<i64: 1>, scalar_prefetch = 0 : i64, scratch_operands = 0 : i64, tpu.core_type = #tpu.core_type<tc>, window_params = [{transform_indices = @transform_0, window_bounds = array<i64: 2, 4, 256>}, {pipeline_mode = #tpu.pipeline_mode<synchronous>, transform_indices = @transform_1, window_bounds = array<i64: 4, 4>}, {pipeline_mode = #tpu.pipeline_mode<synchronous>, transform_indices = @transform_2, window_bounds = array<i64: 4, 1>}, {pipeline_mode = #tpu.pipeline_mode<synchronous>, transform_indices = @transform_3, window_bounds = array<i64: 512, 6>}, {pipeline_mode = #tpu.pipeline_mode<synchronous>, transform_indices = @transform_4, window_bounds = array<i64: 512, 1>}, {pipeline_mode = #tpu.pipeline_mode<synchronous>, transform_indices = @transform_5, window_bounds = array<i64: 512, 512>}, {pipeline_mode = #tpu.pipeline_mode<synchronous>, transform_indices = @transform_6, window_bounds = array<i64: 512, 1>}, {pipeline_mode = #tpu.pipeline_mode<synchronous>, transform_indices = @transform_7, window_bounds = array<i64: 6, 512>}, {pipeline_mode = #tpu.pipeline_mode<synchronous>, transform_indices = @transform_8, window_bounds = array<i64: 4, 1>}, {pipeline_mode = #tpu.pipeline_mode<synchronous>, transform_indices = @transform_9, window_bounds = array<i64: 2, 1>}, {transform_indices = @transform_10, window_bounds = array<i64: 2, 4, 256>}]} {
    %c0 = arith.constant 0 : index
    %c0_0 = arith.constant 0 : index
    %c0_1 = arith.constant 0 : index
    %0 = vector.load %arg1[%c0, %c0_0, %c0_1] : memref<2x4x256xf32, #tpu.memory_space<vmem>>, vector<1x4x256xf32>
    %1 = vector.shape_cast %0 : vector<1x4x256xf32> to vector<4x256xf32>
    %c1 = arith.constant 1 : index
    %c0_2 = arith.constant 0 : index
    %c0_3 = arith.constant 0 : index
    %2 = vector.load %arg1[%c1, %c0_2, %c0_3] : memref<2x4x256xf32, #tpu.memory_space<vmem>>, vector<1x4x256xf32>
    %3 = vector.shape_cast %2 : vector<1x4x256xf32> to vector<4x256xf32>
    %4 = tpu.concatenate %1, %3 in 1 : vector<4x256xf32>, vector<4x256xf32> -> vector<4x512xf32>
    %c0_4 = arith.constant 0 : index
    %c0_5 = arith.constant 0 : index
    %5 = vector.load %arg3[%c0_4, %c0_5] : memref<4x1xf32, #tpu.memory_space<vmem>>, vector<4x1xf32>
    %c0_6 = arith.constant 0 : index
    %c0_7 = arith.constant 0 : index
    %6 = vector.load %arg2[%c0_6, %c0_7] : memref<4x4xf32, #tpu.memory_space<vmem>>, vector<4x1xf32>
    %7 = vector.extract_strided_slice %4 {offsets = [0, 0], sizes = [1, 512], strides = [1, 1]} : vector<4x512xf32> to vector<1x512xf32>
    %8 = vector.broadcast %6 : vector<4x1xf32> to vector<4x512xf32>
    %9 = vector.broadcast %7 : vector<1x512xf32> to vector<4x512xf32>
    %10 = arith.mulf %8, %9 : vector<4x512xf32>
    %11 = vector.broadcast %5 : vector<4x1xf32> to vector<4x512xf32>
    %12 = arith.addf %11, %10 : vector<4x512xf32>
    %c0_8 = arith.constant 0 : index
    %c1_9 = arith.constant 1 : index
    %13 = vector.load %arg2[%c0_8, %c1_9] : memref<4x4xf32, #tpu.memory_space<vmem>>, vector<4x1xf32>
    %14 = vector.extract_strided_slice %4 {offsets = [1, 0], sizes = [1, 512], strides = [1, 1]} : vector<4x512xf32> to vector<1x512xf32>
    %15 = vector.broadcast %13 : vector<4x1xf32> to vector<4x512xf32>
    %16 = vector.broadcast %14 : vector<1x512xf32> to vector<4x512xf32>
    %17 = arith.mulf %15, %16 : vector<4x512xf32>
    %18 = arith.addf %12, %17 : vector<4x512xf32>
    %c0_10 = arith.constant 0 : index
    %c2 = arith.constant 2 : index
    %19 = vector.load %arg2[%c0_10, %c2] : memref<4x4xf32, #tpu.memory_space<vmem>>, vector<4x1xf32>
    %20 = vector.extract_strided_slice %4 {offsets = [2, 0], sizes = [1, 512], strides = [1, 1]} : vector<4x512xf32> to vector<1x512xf32>
    %21 = vector.broadcast %19 : vector<4x1xf32> to vector<4x512xf32>
    %22 = vector.broadcast %20 : vector<1x512xf32> to vector<4x512xf32>
    %23 = arith.mulf %21, %22 : vector<4x512xf32>
    %24 = arith.addf %18, %23 : vector<4x512xf32>
    %c0_11 = arith.constant 0 : index
    %c3 = arith.constant 3 : index
    %25 = vector.load %arg2[%c0_11, %c3] : memref<4x4xf32, #tpu.memory_space<vmem>>, vector<4x1xf32>
    %26 = vector.extract_strided_slice %4 {offsets = [3, 0], sizes = [1, 512], strides = [1, 1]} : vector<4x512xf32> to vector<1x512xf32>
    %27 = vector.broadcast %25 : vector<4x1xf32> to vector<4x512xf32>
    %28 = vector.broadcast %26 : vector<1x512xf32> to vector<4x512xf32>
    %29 = arith.mulf %27, %28 : vector<4x512xf32>
    %30 = arith.addf %24, %29 : vector<4x512xf32>
    %31 = vector.extract_strided_slice %30 {offsets = [0, 0], sizes = [2, 512], strides = [1, 1]} : vector<4x512xf32> to vector<2x512xf32>
    %32 = vector.extract_strided_slice %30 {offsets = [2, 0], sizes = [2, 512], strides = [1, 1]} : vector<4x512xf32> to vector<2x512xf32>
    %33 = tpu.iota {dimensions = array<i32: 1>} : vector<2x512xi32>
    %c255_i32 = arith.constant 255 : i32
    %34 = vector.broadcast %c255_i32 : i32 to vector<2x512xi32>
    %35 = arith.andi %33, %34 : vector<2x512xi32>
    %c16_i32 = arith.constant 16 : i32
    %36 = vector.broadcast %c16_i32 : i32 to vector<2x512xi32>
    %37 = arith.cmpi slt, %35, %36 : vector<2x512xi32>
    %c240_i32 = arith.constant 240 : i32
    %38 = vector.broadcast %c240_i32 : i32 to vector<2x512xi32>
    %39 = arith.cmpi sge, %35, %38 : vector<2x512xi32>
    %c16_i32_12 = arith.constant 16 : i32
    %40 = tpu.dynamic_rotate %31 by %c16_i32_12 dim 1 : vector<2x512xf32>, i32 -> vector<2x512xf32>
    %cst = arith.constant 0.000000e+00 : f32
    %41 = vector.broadcast %cst : f32 to vector<2x512xf32>
    %42 = arith.select %37, %41, %40 : vector<2x512xi1>, vector<2x512xf32>
    %c496_i32 = arith.constant 496 : i32
    %43 = tpu.dynamic_rotate %31 by %c496_i32 dim 1 : vector<2x512xf32>, i32 -> vector<2x512xf32>
    %cst_13 = arith.constant 0.000000e+00 : f32
    %44 = vector.broadcast %cst_13 : f32 to vector<2x512xf32>
    %45 = arith.select %39, %44, %43 : vector<2x512xi1>, vector<2x512xf32>
    %46 = tpu.concatenate %42, %31, %45 in 0 : vector<2x512xf32>, vector<2x512xf32>, vector<2x512xf32> -> vector<6x512xf32>
    %c0_14 = arith.constant 0 : index
    %c0_15 = arith.constant 0 : index
    %47 = vector.load %arg4[%c0_14, %c0_15] : memref<512x6xbf16, #tpu.memory_space<vmem>>, vector<512x6xbf16>
    %48 = arith.truncf %46 : vector<6x512xf32> to vector<6x512xbf16>
    %cst_16 = arith.constant dense<0.000000e+00> : vector<512x512xf32>
    %49 = tpu.matmul %47, %48, %cst_16 {dimension_numbers = #tpu.dot_dimension_numbers<[1], [0], [0], [1], [0, 0, 1, 1], [], []>} : vector<512x6xbf16>, vector<6x512xbf16>, vector<512x512xf32> -> vector<512x512xf32>
    %c0_17 = arith.constant 0 : index
    %c0_18 = arith.constant 0 : index
    %50 = vector.load %arg5[%c0_17, %c0_18] : memref<512x1xf32, #tpu.memory_space<vmem>>, vector<512x1xf32>
    %51 = vector.broadcast %50 : vector<512x1xf32> to vector<512x512xf32>
    %52 = arith.addf %49, %51 : vector<512x512xf32>
    %cst_19 = arith.constant 0.000000e+00 : f32
    %53 = vector.broadcast %cst_19 : f32 to vector<512x512xf32>
    %54 = arith.maximumf %52, %53 : vector<512x512xf32>
    %c0_20 = arith.constant 0 : index
    %c0_21 = arith.constant 0 : index
    %55 = vector.load %arg6[%c0_20, %c0_21] : memref<512x512xbf16, #tpu.memory_space<vmem>>, vector<512x512xbf16>
    %56 = arith.truncf %54 : vector<512x512xf32> to vector<512x512xbf16>
    %cst_22 = arith.constant dense<0.000000e+00> : vector<512x512xf32>
    %57 = tpu.matmul %55, %56, %cst_22 {dimension_numbers = #tpu.dot_dimension_numbers<[1], [0], [0], [1], [0, 0, 1, 1], [], []>} : vector<512x512xbf16>, vector<512x512xbf16>, vector<512x512xf32> -> vector<512x512xf32>
    %c0_23 = arith.constant 0 : index
    %c0_24 = arith.constant 0 : index
    %58 = vector.load %arg7[%c0_23, %c0_24] : memref<512x1xf32, #tpu.memory_space<vmem>>, vector<512x1xf32>
    %59 = vector.broadcast %58 : vector<512x1xf32> to vector<512x512xf32>
    %60 = arith.addf %57, %59 : vector<512x512xf32>
    %cst_25 = arith.constant 0.000000e+00 : f32
    %61 = vector.broadcast %cst_25 : f32 to vector<512x512xf32>
    %62 = arith.maximumf %60, %61 : vector<512x512xf32>
    %63 = arith.truncf %62 : vector<512x512xf32> to vector<512x512xbf16>
    %c0_26 = arith.constant 0 : index
    %c0_27 = arith.constant 0 : index
    %64 = vector.load %arg8[%c0_26, %c0_27] : memref<6x512xbf16, #tpu.memory_space<vmem>>, vector<6x512xbf16>
    %cst_28 = arith.constant dense<0.000000e+00> : vector<6x512xf32>
    %65 = tpu.matmul %64, %63, %cst_28 {dimension_numbers = #tpu.dot_dimension_numbers<[1], [0], [0], [1], [0, 0, 1, 1], [], []>} : vector<6x512xbf16>, vector<512x512xbf16>, vector<6x512xf32> -> vector<6x512xf32>
    %c0_29 = arith.constant 0 : index
    %c0_30 = arith.constant 0 : index
    %66 = vector.load %arg9[%c0_29, %c0_30] : memref<4x1xf32, #tpu.memory_space<vmem>>, vector<2x1xf32>
    %c2_31 = arith.constant 2 : index
    %c0_32 = arith.constant 0 : index
    %67 = vector.load %arg9[%c2_31, %c0_32] : memref<4x1xf32, #tpu.memory_space<vmem>>, vector<2x1xf32>
    %68 = vector.extract_strided_slice %65 {offsets = [0, 0], sizes = [2, 512], strides = [1, 1]} : vector<6x512xf32> to vector<2x512xf32>
    %c16_i32_33 = arith.constant 16 : i32
    %69 = tpu.dynamic_rotate %68 by %c16_i32_33 dim 1 : vector<2x512xf32>, i32 -> vector<2x512xf32>
    %70 = vector.shape_cast %66 : vector<2x1xf32> to vector<2x1xf32>
    %71 = vector.broadcast %70 : vector<2x1xf32> to vector<2x512xf32>
    %72 = arith.select %37, %71, %69 : vector<2x512xi1>, vector<2x512xf32>
    %73 = vector.extract_strided_slice %65 {offsets = [4, 0], sizes = [2, 512], strides = [1, 1]} : vector<6x512xf32> to vector<2x512xf32>
    %c496_i32_34 = arith.constant 496 : i32
    %74 = tpu.dynamic_rotate %73 by %c496_i32_34 dim 1 : vector<2x512xf32>, i32 -> vector<2x512xf32>
    %75 = vector.shape_cast %67 : vector<2x1xf32> to vector<2x1xf32>
    %76 = vector.broadcast %75 : vector<2x1xf32> to vector<2x512xf32>
    %77 = arith.select %39, %76, %74 : vector<2x512xi1>, vector<2x512xf32>
    %78 = vector.extract_strided_slice %65 {offsets = [2, 0], sizes = [2, 512], strides = [1, 1]} : vector<6x512xf32> to vector<2x512xf32>
    %79 = arith.addf %72, %78 : vector<2x512xf32>
    %80 = arith.addf %79, %77 : vector<2x512xf32>
    %c0_35 = arith.constant 0 : index
    %c0_36 = arith.constant 0 : index
    %81 = vector.load %arg10[%c0_35, %c0_36] : memref<2x1xf32, #tpu.memory_space<vmem>>, vector<2x1xf32>
    %82 = vector.broadcast %81 : vector<2x1xf32> to vector<2x512xf32>
    %83 = arith.addf %80, %82 : vector<2x512xf32>
    %84 = arith.addf %32, %83 : vector<2x512xf32>
    %85 = vector.extract_strided_slice %31 {offsets = [0, 0], sizes = [2, 256], strides = [1, 1]} : vector<2x512xf32> to vector<2x256xf32>
    %c0_37 = arith.constant 0 : index
    %c0_38 = arith.constant 0 : index
    %c0_39 = arith.constant 0 : index
    %86 = vector.load %arg11[%c0_37, %c0_38, %c0_39] : memref<2x4x256xf32, #tpu.memory_space<vmem>>, vector<1x2x256xf32>
    %87 = vector.shape_cast %86 : vector<1x2x256xf32> to vector<2x256xf32>
    %88 = vector.shape_cast %85 : vector<2x256xf32> to vector<1x2x256xf32>
    tpu.vector_store %arg11[%c0_37, %c0_38, %c0_39], %88 {strides = array<i32>} : memref<2x4x256xf32, #tpu.memory_space<vmem>>, vector<1x2x256xf32>,
    %89 = vector.extract_strided_slice %84 {offsets = [0, 0], sizes = [2, 256], strides = [1, 1]} : vector<2x512xf32> to vector<2x256xf32>
    %c0_40 = arith.constant 0 : index
    %c2_41 = arith.constant 2 : index
    %c0_42 = arith.constant 0 : index
    %90 = vector.load %arg11[%c0_40, %c2_41, %c0_42] : memref<2x4x256xf32, #tpu.memory_space<vmem>>, vector<1x2x256xf32>
    %91 = vector.shape_cast %90 : vector<1x2x256xf32> to vector<2x256xf32>
    %92 = vector.shape_cast %89 : vector<2x256xf32> to vector<1x2x256xf32>
    tpu.vector_store %arg11[%c0_40, %c2_41, %c0_42], %92 {strides = array<i32>} : memref<2x4x256xf32, #tpu.memory_space<vmem>>, vector<1x2x256xf32>,
    %93 = vector.extract_strided_slice %31 {offsets = [0, 256], sizes = [2, 256], strides = [1, 1]} : vector<2x512xf32> to vector<2x256xf32>
    %c1_43 = arith.constant 1 : index
    %c0_44 = arith.constant 0 : index
    %c0_45 = arith.constant 0 : index
    %94 = vector.load %arg11[%c1_43, %c0_44, %c0_45] : memref<2x4x256xf32, #tpu.memory_space<vmem>>, vector<1x2x256xf32>
    %95 = vector.shape_cast %94 : vector<1x2x256xf32> to vector<2x256xf32>
    %96 = vector.shape_cast %93 : vector<2x256xf32> to vector<1x2x256xf32>
    tpu.vector_store %arg11[%c1_43, %c0_44, %c0_45], %96 {strides = array<i32>} : memref<2x4x256xf32, #tpu.memory_space<vmem>>, vector<1x2x256xf32>,
    %97 = vector.extract_strided_slice %84 {offsets = [0, 256], sizes = [2, 256], strides = [1, 1]} : vector<2x512xf32> to vector<2x256xf32>
    %c1_46 = arith.constant 1 : index
    %c2_47 = arith.constant 2 : index
    %c0_48 = arith.constant 0 : index
    %98 = vector.load %arg11[%c1_46, %c2_47, %c0_48] : memref<2x4x256xf32, #tpu.memory_space<vmem>>, vector<1x2x256xf32>
    %99 = vector.shape_cast %98 : vector<1x2x256xf32> to vector<2x256xf32>
    %100 = vector.shape_cast %97 : vector<2x256xf32> to vector<1x2x256xf32>
    tpu.vector_store %arg11[%c1_46, %c2_47, %c0_48], %100 {strides = array<i32>} : memref<2x4x256xf32, #tpu.memory_space<vmem>>, vector<1x2x256xf32>,
    return
  }
  func.func @transform_0(%arg0: i32) -> (i32, i32, i32) {
    %c0_i32 = arith.constant 0 : i32
    %c0_i32_0 = arith.constant 0 : i32
    %c0_i32_1 = arith.constant 0 : i32
    return %arg0, %c0_i32, %c0_i32_0 : i32, i32, i32
  }
  func.func @transform_1(%arg0: i32) -> (i32, i32) {
    %c0_i32 = arith.constant 0 : i32
    %c0_i32_0 = arith.constant 0 : i32
    %c0_i32_1 = arith.constant 0 : i32
    return %c0_i32, %c0_i32_0 : i32, i32
  }
  func.func @transform_2(%arg0: i32) -> (i32, i32) {
    %c0_i32 = arith.constant 0 : i32
    %c0_i32_0 = arith.constant 0 : i32
    %c0_i32_1 = arith.constant 0 : i32
    return %c0_i32, %c0_i32_0 : i32, i32
  }
  func.func @transform_3(%arg0: i32) -> (i32, i32) {
    %c0_i32 = arith.constant 0 : i32
    %c0_i32_0 = arith.constant 0 : i32
    %c0_i32_1 = arith.constant 0 : i32
    return %c0_i32, %c0_i32_0 : i32, i32
  }
  func.func @transform_4(%arg0: i32) -> (i32, i32) {
    %c0_i32 = arith.constant 0 : i32
    %c0_i32_0 = arith.constant 0 : i32
    %c0_i32_1 = arith.constant 0 : i32
    return %c0_i32, %c0_i32_0 : i32, i32
  }
  func.func @transform_5(%arg0: i32) -> (i32, i32) {
    %c0_i32 = arith.constant 0 : i32
    %c0_i32_0 = arith.constant 0 : i32
    %c0_i32_1 = arith.constant 0 : i32
    return %c0_i32, %c0_i32_0 : i32, i32
  }
  func.func @transform_6(%arg0: i32) -> (i32, i32) {
    %c0_i32 = arith.constant 0 : i32
    %c0_i32_0 = arith.constant 0 : i32
    %c0_i32_1 = arith.constant 0 : i32
    return %c0_i32, %c0_i32_0 : i32, i32
  }
  func.func @transform_7(%arg0: i32) -> (i32, i32) {
    %c0_i32 = arith.constant 0 : i32
    %c0_i32_0 = arith.constant 0 : i32
    %c0_i32_1 = arith.constant 0 : i32
    return %c0_i32, %c0_i32_0 : i32, i32
  }
  func.func @transform_8(%arg0: i32) -> (i32, i32) {
    %c0_i32 = arith.constant 0 : i32
    %c0_i32_0 = arith.constant 0 : i32
    %c0_i32_1 = arith.constant 0 : i32
    return %c0_i32, %c0_i32_0 : i32, i32
  }
  func.func @transform_9(%arg0: i32) -> (i32, i32) {
    %c0_i32 = arith.constant 0 : i32
    %c0_i32_0 = arith.constant 0 : i32
    %c0_i32_1 = arith.constant 0 : i32
    return %c0_i32, %c0_i32_0 : i32, i32
  }
  func.func @transform_10(%arg0: i32) -> (i32, i32, i32) {
    %c0_i32 = arith.constant 0 : i32
    %c0_i32_0 = arith.constant 0 : i32
    %c0_i32_1 = arith.constant 0 : i32
    return %arg0, %c0_i32, %c0_i32_0 : i32, i32, i32
  }
}

</mosaic_0001>

<bundles_post_ra>
// kernel: tpu_custom_call.1
= control target key start
LH: loop header
LB: loop body
LE: loop exit
PB: predicated region body
PF: predicated region fallthrough
CT: control target
= control target key end

     0   :  { %v6363_v1 = vmov 0   ;;  %v6364_v2 = vmov 1   ;;  %v6365_v4 = vmov 2   ;;  %v6366_v5 = vmov 3   ;;  %s7790_s0 = inlined_call_operand.vmem [shape: f32[2,4,256], index: 0, kind: input, shape index: {}]   ;;  %s7791_s1 = inlined_call_operand.vmem [shape: f32[4,4], index: 1, kind: input, shape index: {}]   ;;  %s7792_s2 = inlined_call_operand.vmem [shape: f32[4,1], index: 2, kind: input, shape index: {}]   ;;  %s7793_s3 = inlined_call_operand.vmem [shape: bf16[512,6], index: 3, kind: input, shape index: {}]   ;;  %s7794_s4 = inlined_call_operand.vmem [shape: f32[512,1], index: 4, kind: input, shape index: {}]   ;;  %s7795_s5 = inlined_call_operand.vmem [shape: bf16[512,512], index: 5, kind: input, shape index: {}]   ;;  %s7796_s6 = inlined_call_operand.vmem [shape: f32[512,1], index: 6, kind: input, shape index: {}]   ;;  %s7797_s7 = inlined_call_operand.vmem [shape: bf16[6,512], index: 7, kind: input, shape index: {}]   ;;  %s7798_s8 = inlined_call_operand.vmem [shape: f32[4,1], index: 8, kind: input, shape index: {}]   ;;  %s7799_s9 = inlined_call_operand.vmem [shape: f32[2,1], index: 9, kind: input, shape index: {}]   ;;  %s7800_s10 = inlined_call_operand.hbm [shape: f32[2,4,256], index: 10, kind: output, shape index: {}]  }
   0x1   :  { %v47_v0 = vld [vmem:[%s7791_s1] sm:$0xf]  ;;  %6082 = vset.pattern.permute.xlu0 %v6363_v1  ;;  %6083 = vset.pattern.permute.xlu1 %v6364_v2 }
   0x2   :  { %v46_v3 = vld [vmem:[%s7792_s2] sm:$0xf]  ;;  %50 = vperm.xlu0 %6082, %v47_v0   ;;  %83 = vperm.xlu1 %6083, %v47_v0  }
   0x3   :  { %1005 = vmatprep.mubr.bf16.mxu0 %v6363_v1  ;;  %1358 = vmatprep.mubr.bf16.mxu1 %v6363_v1 }
   0x6   :  { %75 = vperm.xlu0 %6082, %v46_v3   ;;  %6084 = vset.pattern.permute.xlu1 %v6365_v4 }
   0x7   :  { %111 = vperm.xlu1 %6084, %v47_v0  }
   0xa   :  { %6085 = vset.pattern.permute.xlu0 %v6366_v5 }
   0xb   :  { %139 = vperm.xlu0 %6085, %v47_v0   ;;  %6107 = vset.pattern.permute.xlu1 %v6363_v1 }
   0xf   :  { %6106 = vset.pattern.permute.xlu0 %v6363_v1 }
  0x10   :  { %15 = vsyncpa [#allocation3], 0  ;;  %v53_v6 = vlaneseq  ;;  %v37_v8 = vld [vmem:[%s7790_s0] sm:$0xff]  ;;  %v5322_v9 = vld [vmem:[%s7790_s0 + $0x8] sm:$0xff]  ;;  %s6367_s0 = smov 16   ;;  %s6368_s19 = smov 112  }
  0x11   :  { %v41_v11 = vcombine.high %v37_v8, %v37_v8  ;;  %v44_v12 = vcombine.high %v5322_v9, %v5322_v9  ;;  %vm241_vm2 = vcmask 1041408   ;;  %vm246_vm4 = vcmask 1043456  }
  0x12   :  { %v54_v7 = vshrl.u32 %v53_v6, 7  ;;  %vm960_vm6 = vcmask 1042432   ;;  %vm863_vm9 = vcmask 48128  }
  0x14   :  { %v55_v10 = vsub.s32 0, %v54_v7  ;;  %v88_v13 = vsub.s32 1, %v54_v7  ;;  %v116_v14 = vsub.s32 2, %v54_v7  ;;  %v144_v15 = vsub.s32 3, %v54_v7 }
  0x16   :  { %v56_v16 = vrot.slane %v37_v8, %v55_v10  ;;  %v60_v17 = vrot.slane %v41_v11, %v55_v10  ;;  %v64_v18 = vrot.slane %v5322_v9, %v55_v10  ;;  %v68_v19 = vrot.slane %v44_v12, %v55_v10 }
  0x17   :  { %v89_v22 = vrot.slane %v37_v8, %v88_v13  ;;  %v93_v23 = vrot.slane %v41_v11, %v88_v13  ;;  %v97_v24 = vrot.slane %v5322_v9, %v88_v13  ;;  %v101_v25 = vrot.slane %v44_v12, %v88_v13  ;;  %v324_v13 = vld [vmem:[%s7794_s4 + $0x28] sm:$0xff] }
  0x18   :  { %v117_v26 = vrot.slane %v37_v8, %v116_v14  ;;  %v121_v27 = vrot.slane %v41_v11, %v116_v14  ;;  %v125_v28 = vrot.slane %v5322_v9, %v116_v14  ;;  %v129_v29 = vrot.slane %v44_v12, %v116_v14  ;;  %v320_v14 = vld [vmem:[%s7794_s4 + $0x8] sm:$0xff] }
  0x19   :  { %v145_v30 = vrot.slane %v37_v8, %v144_v15  ;;  %v149_v31 = vrot.slane %v41_v11, %v144_v15  ;;  %v153_v32 = vrot.slane %v5322_v9, %v144_v15  ;;  %v157_v33 = vrot.slane %v44_v12, %v144_v15  ;;  %v319_v8 = vld [vmem:[%s7794_s4] sm:$0xff]  ;;  %v322_v12 = vld [vmem:[%s7794_s4 + $0x18] sm:$0xff] }
  0x1a   :  { %v326_v15 = vld [vmem:[%s7794_s4 + $0x38] sm:$0xff] }
  0x81   :  { %v51_v20 = vpop.permute.xlu0 %50  ;;  %v84_v21 = vpop.permute.xlu1 %83 }
  0x82   :  { %v69_v34 = vmul.f32 %v56_v16, %v51_v20  ;;  %v70_v35 = vmul.f32 %v60_v17, %v51_v20  ;;  %v71_v36 = vmul.f32 %v64_v18, %v51_v20  ;;  %v72_v37 = vmul.f32 %v68_v19, %v51_v20  ;;  %v321_v16 = vld [vmem:[%s7794_s4 + $0x10] sm:$0xff]  ;;  %v328_v17 = vld [vmem:[%s7794_s4 + $0x48] sm:$0xff]  ;;  %v323_v18 = vld [vmem:[%s7794_s4 + $0x20] sm:$0xff] }
  0x83   :  { %v102_v38 = vmul.f32 %v89_v22, %v84_v21  ;;  %v103_v39 = vmul.f32 %v93_v23, %v84_v21  ;;  %v104_v40 = vmul.f32 %v97_v24, %v84_v21  ;;  %v105_v41 = vmul.f32 %v101_v25, %v84_v21  ;;  %v330_v19 = vld [vmem:[%s7794_s4 + $0x58] sm:$0xff]  ;;  %v325_v20 = vld [vmem:[%s7794_s4 + $0x30] sm:$0xff]  ;;  %v332_v21 = vld [vmem:[%s7794_s4 + $0x68] sm:$0xff] }
  0x84   :  { %v327_v22 = vld [vmem:[%s7794_s4 + $0x40] sm:$0xff]  ;;  %v334_v23 = vld [vmem:[%s7794_s4 + $0x78] sm:$0xff]  ;;  %v329_v24 = vld [vmem:[%s7794_s4 + $0x50] sm:$0xff] }
  0x85   :  { %v76_v42 = vpop.permute.xlu0 %75  ;;  %v336_v25 = vld [vmem:[%s7794_s4 + $0x88] sm:$0xff] }
  0x86   :  { %v78_v43 = vadd.f32 %v76_v42, %v69_v34  ;;  %v79_v44 = vadd.f32 %v76_v42, %v70_v35  ;;  %v80_v45 = vadd.f32 %v76_v42, %v71_v36  ;;  %v81_v46 = vadd.f32 %v76_v42, %v72_v37  ;;  %v112_v47 = vpop.permute.xlu1 %111  ;;  %v339_v34 = vld [vmem:[%s7794_s4 + $0xa0] sm:$0xff]  ;;  %v346_v35 = vld [vmem:[%s7794_s4 + $0xd8] sm:$0xff]  ;;  %v341_v36 = vld [vmem:[%s7794_s4 + $0xb0] sm:$0xff] }
  0x87   :  { %v130_v48 = vmul.f32 %v117_v26, %v112_v47  ;;  %v131_v49 = vmul.f32 %v121_v27, %v112_v47  ;;  %v132_v50 = vmul.f32 %v125_v28, %v112_v47  ;;  %v133_v51 = vmul.f32 %v129_v29, %v112_v47  ;;  %v331_v26 = vld [vmem:[%s7794_s4 + $0x60] sm:$0xff]  ;;  %v338_v27 = vld [vmem:[%s7794_s4 + $0x98] sm:$0xff]  ;;  %v333_v28 = vld [vmem:[%s7794_s4 + $0x70] sm:$0xff] }
  0x88   :  { %v106_v52 = vadd.f32 %v102_v38, %v78_v43  ;;  %v107_v53 = vadd.f32 %v103_v39, %v79_v44  ;;  %v108_v54 = vadd.f32 %v104_v40, %v80_v45  ;;  %v109_v55 = vadd.f32 %v105_v41, %v81_v46  ;;  %v340_v29 = vld [vmem:[%s7794_s4 + $0xa8] sm:$0xff]  ;;  %v343_v38 = vld [vmem:[%s7794_s4 + $0xc0] sm:$0xff]  ;;  %v350_v39 = vld [vmem:[%s7794_s4 + $0xf8] sm:$0xff] }
  0x89   :  { %v348_v37 = vld [vmem:[%s7794_s4 + $0xe8] sm:$0xff]  ;;  %v345_v40 = vld [vmem:[%s7794_s4 + $0xd0] sm:$0xff]  ;;  %v347_v42 = vld [vmem:[%s7794_s4 + $0xe0] sm:$0xff] }
  0x8a   :  { %v134_v56 = vadd.f32 %v130_v48, %v106_v52  ;;  %v135_v57 = vadd.f32 %v131_v49, %v107_v53  ;;  %v136_v58 = vadd.f32 %v132_v50, %v108_v54  ;;  %v137_v59 = vadd.f32 %v133_v51, %v109_v55  ;;  %v140_v60 = vpop.permute.xlu0 %139  ;;  %v352_v41 = vld [vmem:[%s7794_s4 + $0x108] sm:$0xff]  ;;  %v354_v43 = vld [vmem:[%s7794_s4 + $0x118] sm:$0xff]  ;;  %v349_v44 = vld [vmem:[%s7794_s4 + $0xf0] sm:$0xff] }
  0x8b   :  { %v158_v61 = vmul.f32 %v145_v30, %v140_v60  ;;  %v159_v62 = vmul.f32 %v149_v31, %v140_v60  ;;  %v160_v63 = vmul.f32 %v153_v32, %v140_v60  ;;  %v161_v0 = vmul.f32 %v157_v33, %v140_v60  ;;  %v335_v30 = vld [vmem:[%s7794_s4 + $0x80] sm:$0xff]  ;;  %v342_v31 = vld [vmem:[%s7794_s4 + $0xb8] sm:$0xff]  ;;  %v337_v32 = vld [vmem:[%s7794_s4 + $0x90] sm:$0xff] }
  0x8c   :  { %v344_v33 = vld [vmem:[%s7794_s4 + $0xc8] sm:$0xff]  ;;  %v351_v46 = vld [vmem:[%s7794_s4 + $0x100] sm:$0xff]  ;;  %v358_v47 = vld [vmem:[%s7794_s4 + $0x138] sm:$0xff] }
  0x8d   :  { %v6445_v2 = vadd.f32 %v158_v61, %v134_v56  ;;  %v6447_v3 = vadd.f32 %v159_v62, %v135_v57  ;;  %v6449_v4 = vadd.f32 %v160_v63, %v136_v58  ;;  %v6451_v5 = vadd.f32 %v161_v0, %v137_v59  ;;  %v356_v45 = vld [vmem:[%s7794_s4 + $0x128] sm:$0xff]  ;;  %v353_v48 = vld [vmem:[%s7794_s4 + $0x110] sm:$0xff]  ;;  %v355_v50 = vld [vmem:[%s7794_s4 + $0x120] sm:$0xff] }
  0x8e   :  { %v360_v49 = vld [vmem:[%s7794_s4 + $0x148] sm:$0xff]  ;;  %v362_v51 = vld [vmem:[%s7794_s4 + $0x158] sm:$0xff]  ;;  %v357_v52 = vld [vmem:[%s7794_s4 + $0x130] sm:$0xff]  ;;  %v6622_v63 = vand.u32 127, %v53_v6 }
  0x8f   :  { %v6096_v7 = vpack.i.bf16 %v6447_v3, %v6445_v2  ;;  %v5289_v9 = vcombine.low %v6445_v2, %v6447_v3  ;;  %v5297_v10 = vcombine.low %v6449_v4, %v6451_v5  ;;  %v6091_v11 = vpack.i.bf16 %v6451_v5, %v6449_v4  ;;  %v364_v53 = vld [vmem:[%s7794_s4 + $0x168] sm:$0xff]  ;;  %v359_v54 = vld [vmem:[%s7794_s4 + $0x140] sm:$0xff]  ;;  %v366_v55 = vld [vmem:[%s7794_s4 + $0x178] sm:$0xff] }
  0x90   :  { %v361_v56 = vld [vmem:[%s7794_s4 + $0x150] sm:$0xff]  ;;  %v368_v57 = vld [vmem:[%s7794_s4 + $0x188] sm:$0xff]  ;;  %v363_v58 = vld [vmem:[%s7794_s4 + $0x160] sm:$0xff]  ;;  %vm191_vm0 = vcmp.lt.s32.totalorder %v6622_v63, 16  ;;  %vm208_vm1 = vcmp.lt.s32.totalorder %v6622_v63, 112 }
  0x91   :  { %6097 = vrot.lane.b32.xlu0 %v6096_v7, %s6367_s0  ;;  %6087 = vrot.lane.b32.xlu1 %v6096_v7, %s6368_s19  ;;  %5291 = vst [vmem:[#allocation2] sm:$0x33] %v5289_v9  ;;  %5300 = vst [vmem:[#allocation2 + $0x8] sm:$0x33] %v5297_v10  ;;  %v370_v59 = vld [vmem:[%s7794_s4 + $0x198] sm:$0xff]  ;;  %v365_v60 = vld [vmem:[%s7794_s4 + $0x170] sm:$0xff] }
  0x92   :  { %v372_v61 = vld [vmem:[%s7794_s4 + $0x1a8] sm:$0xff]  ;;  %v367_v62 = vld [vmem:[%s7794_s4 + $0x180] sm:$0xff]  ;;  %v374_v0 = vld [vmem:[%s7794_s4 + $0x1b8] sm:$0xff]  ;;  %v170_v9 = vadd.s32 384, %v6622_v63 }
  0x93   :  { %v369_v7 = vld [vmem:[%s7794_s4 + $0x190] sm:$0xff]  ;;  %v376_v6 = vld [vmem:[%s7794_s4 + $0x1c8] sm:$0xff]  ;;  %v371_v10 = vld [vmem:[%s7794_s4 + $0x1a0] sm:$0xff] }
  0x95   :  { %385 = vperm.xlu0 %6106, %v319_v8   ;;  %6092 = vrot.lane.b32.xlu1 %v6091_v11, %s6368_s19  ;;  %v168_v8 = vadd.s32 128, %v6622_v63 }
  0x99   :  { %400 = vperm.xlu0 %6106, %v322_v12   ;;  %6102 = vrot.lane.b32.xlu1 %v6091_v11, %s6367_s0 }
  0x9d   :  { %410 = vperm.xlu0 %6106, %v324_v13   ;;  %390 = vperm.xlu1 %6107, %v320_v14   ;;  %v172_v13 = vand.u32 255, %v168_v8  ;;  %v174_v14 = vand.u32 255, %v170_v9 }
  0x9f   :  { %vm6647_vm3 = vcmp.ge.s32.totalorder %v172_v13, 240  ;;  %vm6653_vm5 = vcmp.ge.s32.totalorder %v174_v14, 240 }
  0xa1   :  { %420 = vperm.xlu0 %6106, %v326_v15   ;;  %395 = vperm.xlu1 %6107, %v321_v16   ;;  %v169_v15 = vadd.s32 256, %v6622_v63 }
  0xa5   :  { %430 = vperm.xlu0 %6106, %v328_v17   ;;  %405 = vperm.xlu1 %6107, %v323_v18  }
  0xa9   :  { %440 = vperm.xlu0 %6106, %v330_v19   ;;  %415 = vperm.xlu1 %6107, %v325_v20   ;;  %v378_v20 = vld [vmem:[%s7794_s4 + $0x1d8] sm:$0xff] }
  0xad   :  { %450 = vperm.xlu0 %6106, %v332_v21   ;;  %425 = vperm.xlu1 %6107, %v327_v22   ;;  %v373_v21 = vld [vmem:[%s7794_s4 + $0x1b0] sm:$0xff] }
  0xb1   :  { %460 = vperm.xlu0 %6106, %v334_v23   ;;  %435 = vperm.xlu1 %6107, %v329_v24   ;;  %v222_v24 = vrot.slane %v6447_v3, 6 }
  0xb5   :  { %470 = vperm.xlu0 %6106, %v336_v25   ;;  %445 = vperm.xlu1 %6107, %v331_v26   ;;  %v171_v25 = vand.u32 255, %v6622_v63 }
  0xb7   :  { %vm6679_vm7 = vcmp.lt.s32.totalorder %v171_v25, 16  ;;  %v2200_v25 = vld [vmem:[%s7796_s6 + $0x48] sm:$0xff] }
  0xb9   :  { %480 = vperm.xlu0 %6106, %v338_v27   ;;  %455 = vperm.xlu1 %6107, %v333_v28  }
  0xbd   :  { %490 = vperm.xlu0 %6106, %v340_v29   ;;  %465 = vperm.xlu1 %6107, %v335_v30   ;;  %v173_v29 = vand.u32 255, %v169_v15 }
  0xbf   :  { %vm6684_vm8 = vcmp.lt.s32.totalorder %v173_v29, 16  ;;  %v2202_v29 = vld [vmem:[%s7796_s6 + $0x58] sm:$0xff] }
  0xc1   :  { %500 = vperm.xlu0 %6106, %v342_v31   ;;  %475 = vperm.xlu1 %6107, %v337_v32   ;;  %v224_v31 = vrot.slane %v6451_v5, 6  ;;  %v221_v32 = vrot.slane %v6445_v2, 6 }
  0xc5   :  { %510 = vperm.xlu0 %6106, %v344_v33   ;;  %485 = vperm.xlu1 %6107, %v339_v34   ;;  %v380_v33 = vld [vmem:[%s7794_s4 + $0x1e8] sm:$0xff]  ;;  %v375_v34 = vld [vmem:[%s7794_s4 + $0x1c0] sm:$0xff] }
  0xc9   :  { %520 = vperm.xlu0 %6106, %v346_v35   ;;  %495 = vperm.xlu1 %6107, %v341_v36  }
  0xcd   :  { %530 = vperm.xlu0 %6106, %v348_v37   ;;  %505 = vperm.xlu1 %6107, %v343_v38  }
  0xd1   :  { %540 = vperm.xlu0 %6106, %v350_v39   ;;  %515 = vperm.xlu1 %6107, %v345_v40  }
  0xd5   :  { %550 = vperm.xlu0 %6106, %v352_v41   ;;  %525 = vperm.xlu1 %6107, %v347_v42  }
  0xd9   :  { %560 = vperm.xlu0 %6106, %v354_v43   ;;  %535 = vperm.xlu1 %6107, %v349_v44   ;;  %v223_v43 = vrot.slane %v6449_v4, 6 }
  0xdd   :  { %570 = vperm.xlu0 %6106, %v356_v45   ;;  %545 = vperm.xlu1 %6107, %v351_v46  }
  0xe1   :  { %580 = vperm.xlu0 %6106, %v358_v47   ;;  %555 = vperm.xlu1 %6107, %v353_v48  }
  0xe5   :  { %590 = vperm.xlu0 %6106, %v360_v49   ;;  %565 = vperm.xlu1 %6107, %v355_v50  }
  0xe9   :  { %600 = vperm.xlu0 %6106, %v362_v51   ;;  %575 = vperm.xlu1 %6107, %v357_v52  }
  0xed   :  { %610 = vperm.xlu0 %6106, %v364_v53   ;;  %585 = vperm.xlu1 %6107, %v359_v54   ;;  %v382_v54 = vld [vmem:[%s7794_s4 + $0x1f8] sm:$0xff] }
  0xf1   :  { %620 = vperm.xlu0 %6106, %v366_v55   ;;  %595 = vperm.xlu1 %6107, %v361_v56   ;;  %v377_v55 = vld [vmem:[%s7794_s4 + $0x1d0] sm:$0xff] }
  0xf5   :  { %630 = vperm.xlu0 %6106, %v368_v57   ;;  %605 = vperm.xlu1 %6107, %v363_v58  }
  0xf9   :  { %640 = vperm.xlu0 %6106, %v370_v59   ;;  %615 = vperm.xlu1 %6107, %v365_v60  }
  0xfd   :  { %650 = vperm.xlu0 %6106, %v372_v61   ;;  %625 = vperm.xlu1 %6107, %v367_v62  }
 0x101   :  { %660 = vperm.xlu0 %6106, %v374_v0   ;;  %635 = vperm.xlu1 %6107, %v369_v7  }
 0x103   :  { %v6098_v11 = vpop.permute.xlu0 %6097  ;;  %v6088_v12 = vpop.permute.xlu1 %6087 }
 0x104   :  { %v6100_v16 = vunpack.i.h.bf16 %v6098_v11  ;;  %v6099_v17 = vunpack.i.l.bf16 %v6098_v11  ;;  %v6090_v18 = vunpack.i.h.bf16 %v6088_v12  ;;  %v6089_v19 = vunpack.i.l.bf16 %v6088_v12  ;;  %v379_v11 = vld [vmem:[%s7794_s4 + $0x1e0] sm:$0xff] }
 0x105   :  { %670 = vperm.xlu0 %6106, %v376_v6   ;;  %645 = vperm.xlu1 %6107, %v371_v10   ;;  %v2192_v10 = vld [vmem:[%s7796_s6 + $0x8] sm:$0xff] }
 0x106   :  { %v194_v30 = vsel %vm191_vm0, %v6099_v17, %v6100_v16  ;;  %v211_v37 = vsel %vm208_vm1, %v6089_v19, %v6090_v18 }
 0x107   :  { %v6093_v22 = vpop.permute.xlu1 %6092  ;;  %v243_v48 = vsel %vm241_vm2, %v194_v30, %v222_v24  ;;  %v233_v50 = vrot.slane %v211_v37, 4  ;;  %v2193_v24 = vld [vmem:[%s7796_s6 + $0x10] sm:$0xff]  ;;  %v2203_v37 = vld [vmem:[%s7796_s6 + $0x60] sm:$0xff] }
 0x108   :  { %v6095_v26 = vunpack.i.h.bf16 %v6093_v22  ;;  %v6094_v27 = vunpack.i.l.bf16 %v6093_v22  ;;  %v2198_v22 = vld [vmem:[%s7796_s6 + $0x38] sm:$0xff]  ;;  %v2197_v30 = vld [vmem:[%s7796_s6 + $0x30] sm:$0xff] }
 0x109   :  { %680 = vperm.xlu0 %6106, %v378_v20   ;;  %655 = vperm.xlu1 %6107, %v373_v21   ;;  %v2191_v20 = vld [vmem:[%s7796_s6] sm:$0xff]  ;;  %v6111_v21 = vld [vmem:[%s7793_s3 + $0x8] sm:$0xff]  }
 0x10a   :  { %v210_v35 = vsel %vm208_vm1, %v6090_v18, %v6094_v27  ;;  %v212_v36 = vsel %vm208_vm1, %v6095_v26, %v6089_v19  ;;  %v209_v38 = vsel %vm208_vm1, %v6094_v27, %v6095_v26  ;;  %v381_v18 = vld [vmem:[%s7794_s4 + $0x1f0] sm:$0xff]  ;;  %v2196_v19 = vld [vmem:[%s7796_s6 + $0x28] sm:$0xff]  ;;  %v2195_v26 = vld [vmem:[%s7796_s6 + $0x20] sm:$0xff] }
 0x10b   :  { %v6103_v39 = vpop.permute.xlu1 %6102  ;;  %v214_v40 = vsel %vm6647_vm3, 0.0, %v210_v35  ;;  %v216_v41 = vsel %vm6653_vm5, 0.0, %v212_v36  ;;  %v235_v51 = vrot.slane %v209_v38, 4  ;;  %v6112_v27 = vld [vmem:[%s7793_s3 + $0x10] sm:$0xff]   ;;  %v2208_v36 = vld [vmem:[%s7796_s6 + $0x88] sm:$0xff]  ;;  %v6114_v38 = vld [vmem:[%s7793_s3 + $0x20] sm:$0xff]  }
 0x10c   :  { %v6105_v44 = vunpack.i.h.bf16 %v6103_v39  ;;  %v6104_v45 = vunpack.i.l.bf16 %v6103_v39  ;;  %v234_v46 = vrot.slane %v214_v40, 4  ;;  %v236_v49 = vrot.slane %v216_v41, 4  ;;  %v2201_v35 = vld [vmem:[%s7796_s6 + $0x50] sm:$0xff]  ;;  %v2210_v39 = vld [vmem:[%s7796_s6 + $0x98] sm:$0xff]  ;;  %v2212_v41 = vld [vmem:[%s7796_s6 + $0xa8] sm:$0xff] }
 0x10d   :  { %690 = vperm.xlu0 %6106, %v380_v33   ;;  %665 = vperm.xlu1 %6107, %v375_v34   ;;  %v6113_v33 = vld [vmem:[%s7793_s3 + $0x18] sm:$0xff]   ;;  %v2205_v40 = vld [vmem:[%s7796_s6 + $0x70] sm:$0xff] }
 0x10e   :  { %v195_v52 = vsel %vm191_vm0, %v6105_v44, %v6099_v17  ;;  %v193_v53 = vsel %vm191_vm0, %v6100_v16, %v6104_v45  ;;  %v248_v56 = vsel %vm246_vm4, %v243_v48, %v234_v46  ;;  %v192_v57 = vsel %vm191_vm0, %v6104_v45, %v6105_v44  ;;  %v6110_v16 = vld [vmem:[%s7793_s3] sm:$0xff]   ;;  %v2194_v17 = vld [vmem:[%s7796_s6 + $0x18] sm:$0xff]  ;;  %v6115_v45 = vld [vmem:[%s7793_s3 + $0x28] sm:$0xff]  }
 0x10f   :  { %v316_v58 = vpack.c.bf16 %v248_v56, %v248_v56  ;;  %v245_v59 = vsel %vm241_vm2, %v192_v57, %v224_v31  ;;  %v196_v60 = vsel %vm6679_vm7, 0.0, %v195_v52  ;;  %v198_v61 = vsel %vm6684_vm8, 0.0, %v193_v53  ;;  %v2204_v31 = vld [vmem:[%s7796_s6 + $0x68] sm:$0xff]  ;;  %v2206_v34 = vld [vmem:[%s7796_s6 + $0x78] sm:$0xff]  ;;  %v2209_v48 = vld [vmem:[%s7796_s6 + $0x90] sm:$0xff] }
 0x110   :  { %v250_v62 = vsel %vm246_vm4, %v245_v59, %v236_v49  ;;  %v242_v0 = vsel %vm241_vm2, %v196_v60, %v221_v32  ;;  %v244_v7 = vsel %vm241_vm2, %v198_v61, %v223_v43  ;;  %v2199_v32 = vld [vmem:[%s7796_s6 + $0x40] sm:$0xff]  ;;  %v2214_v46 = vld [vmem:[%s7796_s6 + $0xb8] sm:$0xff]  ;;  %v6116_v53 = vld [vmem:[%s7793_s3 + $0x30] sm:$0xff]  }
 0x111   :  { %700 = vperm.xlu0 %6106, %v382_v54   ;;  %675 = vperm.xlu1 %6107, %v377_v55   ;;  %v318_v8 = vpack.c.bf16 %v250_v62, %v250_v62  ;;  %v247_v9 = vsel %vm246_vm4, %v242_v0, %v233_v50  ;;  %v249_v6 = vsel %vm246_vm4, %v244_v7, %v235_v51  ;;  %v2207_v43 = vld [vmem:[%s7796_s6 + $0x80] sm:$0xff]  ;;  %v2216_v51 = vld [vmem:[%s7796_s6 + $0xc8] sm:$0xff]  ;;  %v2218_v54 = vld [vmem:[%s7796_s6 + $0xd8] sm:$0xff] }
 0x112   :  { %5355 = vmatprep.subr.msk.bf16.mxu0 %vm960_vm6, %v316_v58  ;;  %v315_v12 = vpack.c.bf16 %v247_v9, %v247_v9  ;;  %v317_v13 = vpack.c.bf16 %v249_v6, %v249_v6  ;;  %v2211_v52 = vld [vmem:[%s7796_s6 + $0xa0] sm:$0xff]  ;;  %v2213_v55 = vld [vmem:[%s7796_s6 + $0xb0] sm:$0xff]  ;;  %v2220_v58 = vld [vmem:[%s7796_s6 + $0xe8] sm:$0xff] }
 0x113   :  { %5388 = vmatprep.subr.msk.bf16.mxu1 %vm960_vm6, %v318_v8  ;;  %v2215_v59 = vld [vmem:[%s7796_s6 + $0xc0] sm:$0xff]  ;;  %v6117_v60 = vld [vmem:[%s7793_s3 + $0x38] sm:$0xff]   ;;  %v2217_v7 = vld [vmem:[%s7796_s6 + $0xd0] sm:$0xff] }
 0x114   :  { %v962_v14 = vsel %vm960_vm6, %v315_v12, 0  ;;  %v968_v15 = vsel %vm960_vm6, %v317_v13, 0  ;;  %v6817_v44 = vpop.permute.xlu0 %385  ;;  %v2222_v0 = vld [vmem:[%s7796_s6 + $0xf8] sm:$0xff]  ;;  %v2224_v8 = vld [vmem:[%s7796_s6 + $0x108] sm:$0xff]  ;;  %v2219_v9 = vld [vmem:[%s7796_s6 + $0xe0] sm:$0xff] }
 0x115   :  { %2262 = vperm.xlu0 %6106, %v2192_v10   ;;  %685 = vperm.xlu1 %6107, %v379_v11   ;;  %v6118_v11 = vld [vmem:[%s7793_s3 + $0x40] sm:$0xff]   ;;  %v2226_v12 = vld [vmem:[%s7796_s6 + $0x118] sm:$0xff]  ;;  %v2221_v13 = vld [vmem:[%s7796_s6 + $0xf0] sm:$0xff] }
 0x116   :  { %974 = vmatpush1.bf16.msra.mxu0 %v962_v14  ;;  %1327 = vmatpush1.bf16.msra.mxu1 %v968_v15 }
 0x118   :  { %v6830_v49 = vpop.permute.xlu0 %400 }
 0x119   :  { %5356 = vmatmul.mubr.msk.bf16.vlgmr.msra.gmra.mrb[0].mxu0 %vm863_vm9, %v6110_v16  ;;  %5389 = vmatmul.mubr.msk.bf16.vlgmr.msra.gmra.mrb[0].mxu1 %vm863_vm9, %v6110_v16  ;;  %v2228_v16 = vld [vmem:[%s7796_s6 + $0x128] sm:$0xff] }
 0x11a   :  { %2272 = vperm.xlu0 %6106, %v2194_v17   ;;  %695 = vperm.xlu1 %6107, %v381_v18   ;;  %v2223_v17 = vld [vmem:[%s7796_s6 + $0x100] sm:$0xff]  ;;  %v6119_v18 = vld [vmem:[%s7793_s3 + $0x48] sm:$0xff]  }
 0x11b   :  { %1015 = vmatprep.mubr.bf16.mxu0 %v6363_v1  ;;  %1368 = vmatprep.mubr.bf16.mxu1 %v6363_v1 }
 0x11c   :  { %v6832_v50 = vpop.permute.xlu1 %390  ;;  %v6851_v56 = vpop.permute.xlu0 %410 }
 0x11e   :  { %2282 = vperm.xlu0 %6106, %v2196_v19   ;;  %2257 = vperm.xlu1 %6107, %v2191_v20   ;;  %v2230_v19 = vld [vmem:[%s7796_s6 + $0x138] sm:$0xff]  ;;  %v2225_v20 = vld [vmem:[%s7796_s6 + $0x110] sm:$0xff] }
 0x120   :  { %v6853_v57 = vpop.permute.xlu1 %395  ;;  %v6868_v61 = vpop.permute.xlu0 %420 }
 0x121   :  { %5357 = vmatmul.mubr.msk.bf16.gmra.mrb[4].mxu0 %vm863_vm9, %v6111_v21  ;;  %5390 = vmatmul.mubr.msk.bf16.gmra.mrb[4].mxu1 %vm863_vm9, %v6111_v21 }
 0x122   :  { %2292 = vperm.xlu0 %6106, %v2198_v22   ;;  %2267 = vperm.xlu1 %6107, %v2193_v24   ;;  %v2232_v24 = vld [vmem:[%s7796_s6 + $0x148] sm:$0xff] }
 0x123   :  { %1025 = vmatprep.mubr.bf16.mxu0 %v6363_v1  ;;  %1378 = vmatprep.mubr.bf16.mxu1 %v6363_v1 }
 0x124   :  { %v6870_v62 = vpop.permute.xlu1 %405  ;;  %v6888_v6 = vpop.permute.xlu0 %430 }
 0x126   :  { %2302 = vperm.xlu0 %6106, %v2200_v25   ;;  %2277 = vperm.xlu1 %6107, %v2195_v26   ;;  %v2227_v25 = vld [vmem:[%s7796_s6 + $0x120] sm:$0xff]  ;;  %v6120_v26 = vld [vmem:[%s7793_s3 + $0x50] sm:$0xff]  }
 0x128   :  { %v6890_v10 = vpop.permute.xlu1 %415  ;;  %v6903_v14 = vpop.permute.xlu0 %440 }
 0x129   :  { %5358 = vmatmul.mubr.msk.bf16.gmra.mrb[8].mxu0 %vm863_vm9, %v6112_v27  ;;  %5391 = vmatmul.mubr.msk.bf16.gmra.mrb[8].mxu1 %vm863_vm9, %v6112_v27 }
 0x12a   :  { %2312 = vperm.xlu0 %6106, %v2202_v29   ;;  %2287 = vperm.xlu1 %6107, %v2197_v30   ;;  %v2234_v30 = vld [vmem:[%s7796_s6 + $0x158] sm:$0xff] }
 0x12b   :  { %1035 = vmatprep.mubr.bf16.mxu0 %v6363_v1  ;;  %1388 = vmatprep.mubr.bf16.mxu1 %v6363_v1 }
 0x12c   :  { %v6905_v15 = vpop.permute.xlu1 %425  ;;  %v6924_v21 = vpop.permute.xlu0 %450 }
 0x12e   :  { %2322 = vperm.xlu0 %6106, %v2204_v31   ;;  %2297 = vperm.xlu1 %6107, %v2199_v32   ;;  %v2229_v31 = vld [vmem:[%s7796_s6 + $0x130] sm:$0xff]  ;;  %v2236_v32 = vld [vmem:[%s7796_s6 + $0x168] sm:$0xff] }
 0x130   :  { %v6926_v22 = vpop.permute.xlu1 %435  ;;  %v6941_v27 = vpop.permute.xlu0 %460 }
 0x131   :  { %5359 = vmatmul.mubr.msk.bf16.gmra.mrb[12].mxu0 %vm863_vm9, %v6113_v33  ;;  %5392 = vmatmul.mubr.msk.bf16.gmra.mrb[12].mxu1 %vm863_vm9, %v6113_v33  ;;  %v2231_v33 = vld [vmem:[%s7796_s6 + $0x140] sm:$0xff] }
 0x132   :  { %2332 = vperm.xlu0 %6106, %v2206_v34   ;;  %2307 = vperm.xlu1 %6107, %v2201_v35  }
 0x133   :  { %1045 = vmatprep.mubr.bf16.mxu0 %v6363_v1  ;;  %1398 = vmatprep.mubr.bf16.mxu1 %v6363_v1 }
 0x134   :  { %v6943_v29 = vpop.permute.xlu1 %445  ;;  %v6961_v34 = vpop.permute.xlu0 %470 }
 0x136   :  { %2342 = vperm.xlu0 %6106, %v2208_v36   ;;  %2317 = vperm.xlu1 %6107, %v2203_v37   ;;  %v6121_v36 = vld [vmem:[%s7793_s3 + $0x58] sm:$0xff]  }
 0x137   :  { %v2238_v37 = vld [vmem:[%s7796_s6 + $0x178] sm:$0xff] }
 0x138   :  { %v6963_v35 = vpop.permute.xlu1 %455 }
 0x139   :  { %5360 = vmatmul.mubr.msk.bf16.gmra.mrb[16].mxu0 %vm863_vm9, %v6114_v38  ;;  %5393 = vmatmul.mubr.msk.bf16.gmra.mrb[16].mxu1 %vm863_vm9, %v6114_v38  ;;  %v2233_v38 = vld [vmem:[%s7796_s6 + $0x150] sm:$0xff] }
 0x13a   :  { %2352 = vperm.xlu0 %6106, %v2210_v39   ;;  %2327 = vperm.xlu1 %6107, %v2205_v40   ;;  %v6976_v39 = vpop.permute.xlu0 %480 }
 0x13b   :  { %1055 = vmatprep.mubr.bf16.mxu0 %v6363_v1  ;;  %1408 = vmatprep.mubr.bf16.mxu1 %v6363_v1 }
 0x13c   :  { %v6978_v40 = vpop.permute.xlu1 %465 }
 0x13e   :  { %2362 = vperm.xlu0 %6106, %v2212_v41   ;;  %2337 = vperm.xlu1 %6107, %v2207_v43   ;;  %v2240_v41 = vld [vmem:[%s7796_s6 + $0x188] sm:$0xff]  ;;  %v2235_v43 = vld [vmem:[%s7796_s6 + $0x160] sm:$0xff] }
 0x141   :  { %5361 = vmatmul.mubr.msk.bf16.gmra.mrb[20].mxu0 %vm863_vm9, %v6115_v45  ;;  %5394 = vmatmul.mubr.msk.bf16.gmra.mrb[20].mxu1 %vm863_vm9, %v6115_v45  ;;  %v6122_v45 = vld [vmem:[%s7793_s3 + $0x60] sm:$0xff]  }
 0x142   :  { %2372 = vperm.xlu0 %6106, %v2214_v46   ;;  %2347 = vperm.xlu1 %6107, %v2209_v48   ;;  %v2242_v46 = vld [vmem:[%s7796_s6 + $0x198] sm:$0xff]  ;;  %v2237_v48 = vld [vmem:[%s7796_s6 + $0x170] sm:$0xff] }
 0x143   :  { %1065 = vmatprep.mubr.bf16.mxu0 %v6363_v1  ;;  %1418 = vmatprep.mubr.bf16.mxu1 %v6363_v1 }
 0x146   :  { %2382 = vperm.xlu0 %6106, %v2216_v51   ;;  %2357 = vperm.xlu1 %6107, %v2211_v52   ;;  %v6997_v51 = vpop.permute.xlu0 %490  ;;  %v6999_v52 = vpop.permute.xlu1 %475 }
 0x149   :  { %5362 = vmatmul.mubr.msk.bf16.gmra.mrb[24].mxu0 %vm863_vm9, %v6116_v53  ;;  %5395 = vmatmul.mubr.msk.bf16.gmra.mrb[24].mxu1 %vm863_vm9, %v6116_v53  ;;  %v2244_v53 = vld [vmem:[%s7796_s6 + $0x1a8] sm:$0xff] }
 0x14a   :  { %2392 = vperm.xlu0 %6106, %v2218_v54   ;;  %2367 = vperm.xlu1 %6107, %v2213_v55   ;;  %v2239_v54 = vld [vmem:[%s7796_s6 + $0x180] sm:$0xff]  ;;  %v6123_v55 = vld [vmem:[%s7793_s3 + $0x68] sm:$0xff]  }
 0x14b   :  { %1075 = vmatprep.mubr.bf16.mxu0 %v6363_v1  ;;  %1428 = vmatprep.mubr.bf16.mxu1 %v6363_v1 }
 0x14e   :  { %2402 = vperm.xlu0 %6106, %v2220_v58   ;;  %2377 = vperm.xlu1 %6107, %v2215_v59   ;;  %v7014_v58 = vpop.permute.xlu0 %500  ;;  %v7016_v59 = vpop.permute.xlu1 %485 }
 0x151   :  { %5363 = vmatmul.mubr.msk.bf16.gmra.mrb[28].mxu0 %vm863_vm9, %v6117_v60  ;;  %5396 = vmatmul.mubr.msk.bf16.gmra.mrb[28].mxu1 %vm863_vm9, %v6117_v60  ;;  %v2246_v60 = vld [vmem:[%s7796_s6 + $0x1b8] sm:$0xff] }
 0x152   :  { %2412 = vperm.xlu0 %6106, %v2222_v0   ;;  %2387 = vperm.xlu1 %6107, %v2217_v7   ;;  %v2241_v0 = vld [vmem:[%s7796_s6 + $0x190] sm:$0xff]  ;;  %v2248_v7 = vld [vmem:[%s7796_s6 + $0x1c8] sm:$0xff] }
 0x153   :  { %1085 = vmatprep.mubr.bf16.mxu0 %v6363_v1  ;;  %1438 = vmatprep.mubr.bf16.mxu1 %v6363_v1 }
 0x156   :  { %2422 = vperm.xlu0 %6106, %v2224_v8   ;;  %2397 = vperm.xlu1 %6107, %v2219_v9   ;;  %v2243_v8 = vld [vmem:[%s7796_s6 + $0x1a0] sm:$0xff]  ;;  %v7034_v9 = vpop.permute.xlu0 %510 }
 0x159   :  { %5364 = vmatmul.mubr.msk.bf16.gmra.mrb[32].mxu0 %vm863_vm9, %v6118_v11  ;;  %5397 = vmatmul.mubr.msk.bf16.gmra.mrb[32].mxu1 %vm863_vm9, %v6118_v11  ;;  %v7036_v11 = vpop.permute.xlu1 %495 }
 0x15a   :  { %2432 = vperm.xlu0 %6106, %v2226_v12   ;;  %2407 = vperm.xlu1 %6107, %v2221_v13   ;;  %v6124_v12 = vld [vmem:[%s7793_s3 + $0x70] sm:$0xff]   ;;  %v2250_v13 = vld [vmem:[%s7796_s6 + $0x1d8] sm:$0xff] }
 0x15b   :  { %1095 = vmatprep.mubr.bf16.mxu0 %v6363_v1  ;;  %1448 = vmatprep.mubr.bf16.mxu1 %v6363_v1 }
 0x15e   :  { %2442 = vperm.xlu0 %6106, %v2228_v16   ;;  %2417 = vperm.xlu1 %6107, %v2223_v17   ;;  %v2245_v16 = vld [vmem:[%s7796_s6 + $0x1b0] sm:$0xff]  ;;  %v7049_v17 = vpop.permute.xlu0 %520 }
 0x161   :  { %5365 = vmatmul.mubr.msk.bf16.gmra.mrb[36].mxu0 %vm863_vm9, %v6119_v18  ;;  %5398 = vmatmul.mubr.msk.bf16.gmra.mrb[36].mxu1 %vm863_vm9, %v6119_v18  ;;  %v7051_v18 = vpop.permute.xlu1 %505 }
 0x162   :  { %2452 = vperm.xlu0 %6106, %v2230_v19   ;;  %2427 = vperm.xlu1 %6107, %v2225_v20   ;;  %v2252_v19 = vld [vmem:[%s7796_s6 + $0x1e8] sm:$0xff]  ;;  %v2247_v20 = vld [vmem:[%s7796_s6 + $0x1c0] sm:$0xff] }
 0x163   :  { %1105 = vmatprep.mubr.bf16.mxu0 %v6363_v1  ;;  %1458 = vmatprep.mubr.bf16.mxu1 %v6363_v1 }
 0x166   :  { %2462 = vperm.xlu0 %6106, %v2232_v24   ;;  %2437 = vperm.xlu1 %6107, %v2227_v25   ;;  %v6125_v24 = vld [vmem:[%s7793_s3 + $0x78] sm:$0xff]  }
 0x167   :  { %v2254_v25 = vld [vmem:[%s7796_s6 + $0x1f8] sm:$0xff] }
 0x169   :  { %5366 = vmatmul.mubr.msk.bf16.gmra.mrb[40].mxu0 %vm863_vm9, %v6120_v26  ;;  %5399 = vmatmul.mubr.msk.bf16.gmra.mrb[40].mxu1 %vm863_vm9, %v6120_v26  ;;  %v2249_v26 = vld [vmem:[%s7796_s6 + $0x1d0] sm:$0xff] }
 0x16a   :  { %2472 = vperm.xlu0 %6106, %v2234_v30   ;;  %2447 = vperm.xlu1 %6107, %v2229_v31   ;;  %v7070_v30 = vpop.permute.xlu0 %530  ;;  %v7072_v31 = vpop.permute.xlu1 %515 }
 0x16b   :  { %1115 = vmatprep.mubr.bf16.mxu0 %v6363_v1  ;;  %1468 = vmatprep.mubr.bf16.mxu1 %v6363_v1 }
 0x16e   :  { %2482 = vperm.xlu0 %6106, %v2236_v32   ;;  %2457 = vperm.xlu1 %6107, %v2231_v33   ;;  %v5192_v32 = vld [vmem:[%s7798_s8 + $0x2] sm:$0x3] }
 0x16f   :  { %v2251_v33 = vld [vmem:[%s7796_s6 + $0x1e0] sm:$0xff] }
 0x171   :  { %5367 = vmatmul.mubr.msk.bf16.gmra.mrb[44].mxu0 %vm863_vm9, %v6121_v36  ;;  %5400 = vmatmul.mubr.msk.bf16.gmra.mrb[44].mxu1 %vm863_vm9, %v6121_v36  ;;  %v6126_v36 = vld [vmem:[%s7793_s3 + $0x80] sm:$0xff]  }
 0x172   :  { %2492 = vperm.xlu0 %6106, %v2238_v37   ;;  %2467 = vperm.xlu1 %6107, %v2233_v38   ;;  %v7087_v37 = vpop.permute.xlu0 %540  ;;  %v7089_v38 = vpop.permute.xlu1 %525 }
 0x173   :  { %1125 = vmatprep.mubr.bf16.mxu0 %v6363_v1  ;;  %1478 = vmatprep.mubr.bf16.mxu1 %v6363_v1 }
 0x176   :  { %2502 = vperm.xlu0 %6106, %v2240_v41   ;;  %2477 = vperm.xlu1 %6107, %v2235_v43   ;;  %v2253_v41 = vld [vmem:[%s7796_s6 + $0x1f0] sm:$0xff]  ;;  %v5191_v43 = vld [vmem:[%s7798_s8] sm:$0x3] }
 0x179   :  { %5368 = vmatmul.mubr.msk.bf16.gmra.mrb[48].mxu0 %vm863_vm9, %v6122_v45  ;;  %5401 = vmatmul.mubr.msk.bf16.gmra.mrb[48].mxu1 %vm863_vm9, %v6122_v45  ;;  %v7101_v45 = vpop.permute.xlu1 %535 }
 0x17a   :  { %2512 = vperm.xlu0 %6106, %v2242_v46   ;;  %2487 = vperm.xlu1 %6107, %v2237_v48   ;;  %v6127_v46 = vld [vmem:[%s7793_s3 + $0x88] sm:$0xff]   ;;  %v5263_v48 = vld [vmem:[%s7799_s9] sm:$0x3] }
 0x17b   :  { %1135 = vmatprep.mubr.bf16.mxu0 %v6363_v1  ;;  %1488 = vmatprep.mubr.bf16.mxu1 %v6363_v1 }
 0x17e   :  { %2522 = vperm.xlu0 %6106, %v2244_v53   ;;  %2497 = vperm.xlu1 %6107, %v2239_v54   ;;  %v7111_v53 = vpop.permute.xlu1 %545  ;;  %v6128_v54 = vld [vmem:[%s7793_s3 + $0x90] sm:$0xff]  }
 0x181   :  { %5369 = vmatmul.mubr.msk.bf16.gmra.mrb[52].mxu0 %vm863_vm9, %v6123_v55  ;;  %5402 = vmatmul.mubr.msk.bf16.gmra.mrb[52].mxu1 %vm863_vm9, %v6123_v55  ;;  %v6129_v55 = vld [vmem:[%s7793_s3 + $0x98] sm:$0xff]  }
 0x182   :  { %2532 = vperm.xlu0 %6106, %v2246_v60   ;;  %2507 = vperm.xlu1 %6107, %v2241_v0   ;;  %v6130_v60 = vld [vmem:[%s7793_s3 + $0xa0] sm:$0xff]   ;;  %v6131_v0 = vld [vmem:[%s7793_s3 + $0xa8] sm:$0xff]  }
 0x183   :  { %1145 = vmatprep.mubr.bf16.mxu0 %v6363_v1  ;;  %1498 = vmatprep.mubr.bf16.mxu1 %v6363_v1 }
 0x186   :  { %2542 = vperm.xlu0 %6106, %v2248_v7   ;;  %2517 = vperm.xlu1 %6107, %v2243_v8   ;;  %v6132_v7 = vld [vmem:[%s7793_s3 + $0xb0] sm:$0xff]   ;;  %v6133_v8 = vld [vmem:[%s7793_s3 + $0xb8] sm:$0xff]  }
 0x189   :  { %5370 = vmatmul.mubr.msk.bf16.gmra.mrb[56].mxu0 %vm863_vm9, %v6124_v12  ;;  %5403 = vmatmul.mubr.msk.bf16.gmra.mrb[56].mxu1 %vm863_vm9, %v6124_v12  ;;  %v6134_v12 = vld [vmem:[%s7793_s3 + $0xc0] sm:$0xff]  }
 0x18a   :  { %2552 = vperm.xlu0 %6106, %v2250_v13   ;;  %2527 = vperm.xlu1 %6107, %v2245_v16   ;;  %v6135_v13 = vld [vmem:[%s7793_s3 + $0xc8] sm:$0xff]   ;;  %v6136_v16 = vld [vmem:[%s7793_s3 + $0xd0] sm:$0xff]  }
 0x18b   :  { %1155 = vmatprep.mubr.bf16.mxu0 %v6363_v1  ;;  %1508 = vmatprep.mubr.bf16.mxu1 %v6363_v1 }
 0x18e   :  { %2562 = vperm.xlu0 %6106, %v2252_v19   ;;  %2537 = vperm.xlu1 %6107, %v2247_v20  }
 0x191   :  { %5371 = vmatmul.mubr.msk.bf16.gmra.mrb[60].mxu0 %vm863_vm9, %v6125_v24  ;;  %5404 = vmatmul.mubr.msk.bf16.gmra.mrb[60].mxu1 %vm863_vm9, %v6125_v24 }
 0x192   :  { %2572 = vperm.xlu0 %6106, %v2254_v25   ;;  %2547 = vperm.xlu1 %6107, %v2249_v26   ;;  %v6137_v25 = vld [vmem:[%s7793_s3 + $0xd8] sm:$0xff]  }
 0x193   :  { %1165 = vmatprep.mubr.bf16.mxu0 %v6363_v1  ;;  %1518 = vmatprep.mubr.bf16.mxu1 %v6363_v1 }
 0x196   :  { %5240 = vperm.xlu0 %6106, %v5192_v32   ;;  %2557 = vperm.xlu1 %6107, %v2251_v33  }
 0x199   :  { %5372 = vmatmul.mubr.msk.bf16.gmra.mrb[64].mxu0 %vm863_vm9, %v6126_v36  ;;  %5405 = vmatmul.mubr.msk.bf16.gmra.mrb[64].mxu1 %vm863_vm9, %v6126_v36 }
 0x19a   :  { %2567 = vperm.xlu1 %6107, %v2253_v41   ;;  %1175 = vmatprep.mubr.bf16.mxu0 %v6363_v1 }
 0x19b   :  { %1528 = vmatprep.mubr.bf16.mxu1 %v6363_v1 }
 0x19e   :  { %5207 = vperm.xlu1 %6107, %v5191_v43  }
 0x1a1   :  { %5373 = vmatmul.mubr.msk.bf16.gmra.mrb[68].mxu0 %vm863_vm9, %v6127_v46  ;;  %5406 = vmatmul.mubr.msk.bf16.gmra.mrb[68].mxu1 %vm863_vm9, %v6127_v46 }
 0x1a2   :  { %5266 = vperm.xlu1 %6107, %v5263_v48   ;;  %1185 = vmatprep.mubr.bf16.mxu0 %v6363_v1 }
 0x1a3   :  { %1538 = vmatprep.mubr.bf16.mxu1 %v6363_v1 }
 0x1a9   :  { %5374 = vmatmul.mubr.msk.bf16.gmra.mrb[72].mxu0 %vm863_vm9, %v6128_v54  ;;  %5407 = vmatmul.mubr.msk.bf16.gmra.mrb[72].mxu1 %vm863_vm9, %v6128_v54 }
 0x1aa   :  { %1195 = vmatprep.mubr.bf16.mxu0 %v6363_v1  ;;  %1548 = vmatprep.mubr.bf16.mxu1 %v6363_v1 }
 0x1b1   :  { %5375 = vmatmul.mubr.msk.bf16.gmra.mrb[76].mxu0 %vm863_vm9, %v6129_v55  ;;  %5408 = vmatmul.mubr.msk.bf16.gmra.mrb[76].mxu1 %vm863_vm9, %v6129_v55 }
 0x1b2   :  { %1205 = vmatprep.mubr.bf16.mxu0 %v6363_v1  ;;  %1558 = vmatprep.mubr.bf16.mxu1 %v6363_v1 }
 0x1b9   :  { %5376 = vmatmul.mubr.msk.bf16.gmra.mrb[80].mxu0 %vm863_vm9, %v6130_v60  ;;  %5409 = vmatmul.mubr.msk.bf16.gmra.mrb[80].mxu1 %vm863_vm9, %v6130_v60 }
 0x1ba   :  { %1215 = vmatprep.mubr.bf16.mxu0 %v6363_v1  ;;  %1568 = vmatprep.mubr.bf16.mxu1 %v6363_v1 }
 0x1c1   :  { %5377 = vmatmul.mubr.msk.bf16.gmra.mrb[84].mxu0 %vm863_vm9, %v6131_v0  ;;  %5410 = vmatmul.mubr.msk.bf16.gmra.mrb[84].mxu1 %vm863_vm9, %v6131_v0 }
 0x1c2   :  { %1225 = vmatprep.mubr.bf16.mxu0 %v6363_v1  ;;  %1578 = vmatprep.mubr.bf16.mxu1 %v6363_v1 }
 0x1c9   :  { %5378 = vmatmul.mubr.msk.bf16.gmra.mrb[88].mxu0 %vm863_vm9, %v6132_v7  ;;  %5411 = vmatmul.mubr.msk.bf16.gmra.mrb[88].mxu1 %vm863_vm9, %v6132_v7 }
 0x1ca   :  { %1235 = vmatprep.mubr.bf16.mxu0 %v6363_v1  ;;  %1588 = vmatprep.mubr.bf16.mxu1 %v6363_v1 }
 0x1d1   :  { %5379 = vmatmul.mubr.msk.bf16.gmra.mrb[92].mxu0 %vm863_vm9, %v6133_v8  ;;  %5412 = vmatmul.mubr.msk.bf16.gmra.mrb[92].mxu1 %vm863_vm9, %v6133_v8 }
 0x1d2   :  { %1245 = vmatprep.mubr.bf16.mxu0 %v6363_v1  ;;  %1598 = vmatprep.mubr.bf16.mxu1 %v6363_v1 }
 0x1d9   :  { %5380 = vmatmul.mubr.msk.bf16.gmra.mrb[96].mxu0 %vm863_vm9, %v6134_v12  ;;  %5413 = vmatmul.mubr.msk.bf16.gmra.mrb[96].mxu1 %vm863_vm9, %v6134_v12 }
 0x1da   :  { %1255 = vmatprep.mubr.bf16.mxu0 %v6363_v1  ;;  %1608 = vmatprep.mubr.bf16.mxu1 %v6363_v1 }
 0x1e1   :  { %5381 = vmatmul.mubr.msk.bf16.gmra.mrb[100].mxu0 %vm863_vm9, %v6135_v13  ;;  %5414 = vmatmul.mubr.msk.bf16.gmra.mrb[100].mxu1 %vm863_vm9, %v6135_v13 }
 0x1e2   :  { %1265 = vmatprep.mubr.bf16.mxu0 %v6363_v1  ;;  %1618 = vmatprep.mubr.bf16.mxu1 %v6363_v1 }
 0x1e9   :  { %5382 = vmatmul.mubr.msk.bf16.gmra.mrb[104].mxu0 %vm863_vm9, %v6136_v16  ;;  %5415 = vmatmul.mubr.msk.bf16.gmra.mrb[104].mxu1 %vm863_vm9, %v6136_v16 }
 0x1ea   :  { %1275 = vmatprep.mubr.bf16.mxu0 %v6363_v1  ;;  %1628 = vmatprep.mubr.bf16.mxu1 %v6363_v1 }
 0x1ec   :  { %v1007_v19 = vpop.f32.mrb[0].mxu0  ;;  %v1360_v20 = vpop.f32.mrb[0].mxu1 }
 0x1ed   :  { %v1361_v24 = vadd.f32 %v1360_v20, %v6817_v44  ;;  %v1008_v26 = vadd.f32 %v1007_v19, %v6817_v44  ;;  %v1009_v32 = vpop.f32.mrb[1].mxu0  ;;  %v1362_v33 = vpop.f32.mrb[1].mxu1 }
 0x1ee   :  { %v1010_v36 = vadd.f32 %v1009_v32, %v6817_v44  ;;  %v1363_v41 = vadd.f32 %v1362_v33, %v6817_v44  ;;  %v1011_v43 = vpop.f32.mrb[2].mxu0  ;;  %v1364_v46 = vpop.f32.mrb[2].mxu1 }
 0x1ef   :  { %v1681_v48 = vmax.f32 %v1361_v24, 0.0  ;;  %v1012_v54 = vadd.f32 %v1011_v43, %v6832_v50  ;;  %v1365_v55 = vadd.f32 %v1364_v46, %v6832_v50  ;;  %v1013_v60 = vpop.f32.mrb[3].mxu0  ;;  %v1366_v0 = vpop.f32.mrb[3].mxu1  ;;  %v1679_v13 = vmax.f32 %v1008_v26, 0.0 }
 0x1f0   :  { %v1014_v7 = vadd.f32 %v1013_v60, %v6832_v50  ;;  %v1367_v8 = vadd.f32 %v1366_v0, %v6832_v50  ;;  %v1682_v12 = vmax.f32 %v1363_v41, 0.0  ;;  %v1680_v19 = vmax.f32 %v1010_v36, 0.0 }
 0x1f1   :  { %5383 = vmatmul.mubr.msk.bf16.gmra.mrb[108].mxu0 %vm863_vm9, %v6137_v25  ;;  %5416 = vmatmul.mubr.msk.bf16.gmra.mrb[108].mxu1 %vm863_vm9, %v6137_v25  ;;  %v1683_v44 = vmax.f32 %v1012_v54, 0.0  ;;  %v1685_v16 = vmax.f32 %v1365_v55, 0.0  ;;  %v6138_v25 = vld [vmem:[%s7793_s3 + $0xe0] sm:$0xff]  }
 0x1f2   :  { %1285 = vmatprep.mubr.bf16.mxu0 %v6363_v1  ;;  %1638 = vmatprep.mubr.bf16.mxu1 %v6363_v1  ;;  %v1684_v20 = vmax.f32 %v1014_v7, 0.0  ;;  %v1686_v24 = vmax.f32 %v1367_v8, 0.0 }
 0x1f3   :  { %v2063_v43 = vpack.c.bf16 %v1683_v44, %v1679_v13  ;;  %v2065_v46 = vpack.c.bf16 %v1685_v16, %v1681_v48 }
 0x1f4   :  { %v1017_v32 = vpop.f32.mrb[4].mxu0  ;;  %v1370_v33 = vpop.f32.mrb[4].mxu1  ;;  %v2064_v60 = vpack.c.bf16 %v1684_v20, %v1680_v19  ;;  %v2066_v0 = vpack.c.bf16 %v1686_v24, %v1682_v12 }
 0x1f5   :  { %v1371_v50 = vadd.f32 %v1370_v33, %v6853_v57  ;;  %v1018_v26 = vadd.f32 %v1017_v32, %v6853_v57  ;;  %v1019_v41 = vpop.f32.mrb[5].mxu0  ;;  %v1372_v54 = vpop.f32.mrb[5].mxu1 }
 0x1f6   :  { %v1020_v36 = vadd.f32 %v1019_v41, %v6853_v57  ;;  %v1373_v55 = vadd.f32 %v1372_v54, %v6853_v57  ;;  %v1021_v7 = vpop.f32.mrb[6].mxu0  ;;  %v1374_v8 = vpop.f32.mrb[6].mxu1  ;;  %3215 = vmatprep.subr.bf16.mxu0 %v2064_v60  ;;  %3921 = vmatprep.subr.bf16.mxu1 %v2066_v0 }
 0x1f7   :  { %v1689_v48 = vmax.f32 %v1371_v50, 0.0  ;;  %v1022_v13 = vadd.f32 %v1021_v7, %v6830_v49  ;;  %v1375_v12 = vadd.f32 %v1374_v8, %v6830_v49  ;;  %v1023_v44 = vpop.f32.mrb[7].mxu0  ;;  %v1376_v16 = vpop.f32.mrb[7].mxu1  ;;  %3216 = vmatpush1.bf16.msra.mxu0 %v2063_v43  ;;  %3922 = vmatpush1.bf16.msra.mxu1 %v2065_v46  ;;  %v1687_v57 = vmax.f32 %v1018_v26, 0.0 }
 0x1f8   :  { %v1690_v19 = vmax.f32 %v1373_v55, 0.0  ;;  %v1024_v20 = vadd.f32 %v1023_v44, %v6830_v49  ;;  %v1377_v24 = vadd.f32 %v1376_v16, %v6830_v49  ;;  %v1688_v50 = vmax.f32 %v1020_v36, 0.0 }
 0x1f9   :  { %5384 = vmatmul.mubr.msk.bf16.gmra.mrb[112].mxu0 %vm863_vm9, %v6138_v25  ;;  %5417 = vmatmul.mubr.msk.bf16.gmra.mrb[112].mxu1 %vm863_vm9, %v6138_v25  ;;  %v1691_v32 = vmax.f32 %v1022_v13, 0.0  ;;  %v1693_v33 = vmax.f32 %v1375_v12, 0.0  ;;  %v6139_v25 = vld [vmem:[%s7793_s3 + $0xe8] sm:$0xff]  }
 0x1fa   :  { %1295 = vmatprep.mubr.bf16.mxu0 %v6363_v1  ;;  %1648 = vmatprep.mubr.bf16.mxu1 %v6363_v1  ;;  %v1692_v60 = vmax.f32 %v1024_v20, 0.0  ;;  %v1694_v43 = vmax.f32 %v1377_v24, 0.0 }
 0x1fb   :  { %v2067_v46 = vpack.c.bf16 %v1691_v32, %v1687_v57  ;;  %v2069_v0 = vpack.c.bf16 %v1693_v33, %v1689_v48 }
 0x1fc   :  { %v1027_v41 = vpop.f32.mrb[8].mxu0  ;;  %v1380_v54 = vpop.f32.mrb[8].mxu1  ;;  %v2068_v55 = vpack.c.bf16 %v1692_v60, %v1688_v50  ;;  %v2070_v49 = vpack.c.bf16 %v1694_v43, %v1690_v19 }
 0x1fd   :  { %v1381_v7 = vadd.f32 %v1380_v54, %v6870_v62  ;;  %v1028_v26 = vadd.f32 %v1027_v41, %v6870_v62  ;;  %v1029_v8 = vpop.f32.mrb[9].mxu0  ;;  %v1382_v13 = vpop.f32.mrb[9].mxu1 }
 0x1fe   :  { %v1030_v36 = vadd.f32 %v1029_v8, %v6870_v62  ;;  %v1383_v12 = vadd.f32 %v1382_v13, %v6870_v62  ;;  %v1031_v44 = vpop.f32.mrb[10].mxu0  ;;  %v1384_v48 = vpop.f32.mrb[10].mxu1  ;;  %3217 = vmatprep.subr.bf16.mxu0 %v2068_v55  ;;  %3923 = vmatprep.subr.bf16.mxu1 %v2070_v49 }
 0x1ff   :  { %v1697_v16 = vmax.f32 %v1381_v7, 0.0  ;;  %v1032_v19 = vadd.f32 %v1031_v44, %v6851_v56  ;;  %v1385_v20 = vadd.f32 %v1384_v48, %v6851_v56  ;;  %v1033_v24 = vpop.f32.mrb[11].mxu0  ;;  %v1386_v57 = vpop.f32.mrb[11].mxu1  ;;  %3218 = vmatpush1.bf16.msra.mxu0 %v2067_v46  ;;  %3924 = vmatpush1.bf16.msra.mxu1 %v2069_v0  ;;  %v1695_v62 = vmax.f32 %v1028_v26, 0.0 }
 0x200   :  { %v1698_v32 = vmax.f32 %v1383_v12, 0.0  ;;  %v1034_v33 = vadd.f32 %v1033_v24, %v6851_v56  ;;  %v1387_v50 = vadd.f32 %v1386_v57, %v6851_v56  ;;  %v1696_v41 = vmax.f32 %v1030_v36, 0.0 }
 0x201   :  { %5385 = vmatmul.mubr.msk.bf16.gmra.mrb[116].mxu0 %vm863_vm9, %v6139_v25  ;;  %5418 = vmatmul.mubr.msk.bf16.gmra.mrb[116].mxu1 %vm863_vm9, %v6139_v25  ;;  %v1699_v60 = vmax.f32 %v1032_v19, 0.0  ;;  %v1701_v43 = vmax.f32 %v1385_v20, 0.0  ;;  %v6140_v25 = vld [vmem:[%s7793_s3 + $0xf0] sm:$0xff]  }
 0x202   :  { %1305 = vmatprep.mubr.bf16.mxu0 %v6363_v1  ;;  %1658 = vmatprep.mubr.bf16.mxu1 %v6363_v1  ;;  %v1700_v54 = vmax.f32 %v1034_v33, 0.0  ;;  %v1702_v46 = vmax.f32 %v1387_v50, 0.0 }
 0x203   :  { %v2071_v0 = vpack.c.bf16 %v1699_v60, %v1695_v62  ;;  %v2073_v55 = vpack.c.bf16 %v1701_v43, %v1697_v16 }
 0x204   :  { %v1037_v49 = vpop.f32.mrb[12].mxu0  ;;  %v1390_v7 = vpop.f32.mrb[12].mxu1  ;;  %v2072_v8 = vpack.c.bf16 %v1700_v54, %v1696_v41  ;;  %v2074_v56 = vpack.c.bf16 %v1702_v46, %v1698_v32 }
 0x205   :  { %v1391_v13 = vadd.f32 %v1390_v7, %v6890_v10  ;;  %v1038_v26 = vadd.f32 %v1037_v49, %v6890_v10  ;;  %v1039_v12 = vpop.f32.mrb[13].mxu0  ;;  %v1392_v44 = vpop.f32.mrb[13].mxu1 }
 0x206   :  { %v1040_v36 = vadd.f32 %v1039_v12, %v6890_v10  ;;  %v1393_v48 = vadd.f32 %v1392_v44, %v6890_v10  ;;  %v1041_v19 = vpop.f32.mrb[14].mxu0  ;;  %v1394_v16 = vpop.f32.mrb[14].mxu1  ;;  %3219 = vmatprep.subr.bf16.mxu0 %v2072_v8  ;;  %3925 = vmatprep.subr.bf16.mxu1 %v2074_v56 }
 0x207   :  { %v1705_v20 = vmax.f32 %v1391_v13, 0.0  ;;  %v1042_v24 = vadd.f32 %v1041_v19, %v6868_v61  ;;  %v1395_v57 = vadd.f32 %v1394_v16, %v6868_v61  ;;  %v1043_v32 = vpop.f32.mrb[15].mxu0  ;;  %v1396_v33 = vpop.f32.mrb[15].mxu1  ;;  %3220 = vmatpush1.bf16.msra.mxu0 %v2071_v0  ;;  %3926 = vmatpush1.bf16.msra.mxu1 %v2073_v55  ;;  %v1703_v10 = vmax.f32 %v1038_v26, 0.0 }
 0x208   :  { %v1706_v50 = vmax.f32 %v1393_v48, 0.0  ;;  %v1044_v62 = vadd.f32 %v1043_v32, %v6868_v61  ;;  %v1397_v60 = vadd.f32 %v1396_v33, %v6868_v61  ;;  %v1704_v54 = vmax.f32 %v1040_v36, 0.0 }
 0x209   :  { %5386 = vmatmul.mubr.msk.bf16.gmra.mrb[120].mxu0 %vm863_vm9, %v6140_v25  ;;  %5419 = vmatmul.mubr.msk.bf16.gmra.mrb[120].mxu1 %vm863_vm9, %v6140_v25  ;;  %v1707_v43 = vmax.f32 %v1042_v24, 0.0  ;;  %v1709_v41 = vmax.f32 %v1395_v57, 0.0  ;;  %v6141_v25 = vld [vmem:[%s7793_s3 + $0xf8] sm:$0xff]  }
 0x20a   :  { %1315 = vmatprep.mubr.bf16.mxu0 %v6363_v1  ;;  %1668 = vmatprep.mubr.bf16.mxu1 %v6363_v1  ;;  %v1708_v46 = vmax.f32 %v1044_v62, 0.0  ;;  %v1710_v0 = vmax.f32 %v1397_v60, 0.0  ;;  %v6144_v1 = vld [vmem:[%s7795_s5 + $0x4] ss:$16 sps:$4 sm:$0xff]  }
 0x20b   :  { %v2075_v55 = vpack.c.bf16 %v1707_v43, %v1703_v10  ;;  %v2077_v49 = vpack.c.bf16 %v1709_v41, %v1705_v20 }
 0x20c   :  { %v1047_v7 = vpop.f32.mrb[16].mxu0  ;;  %v1400_v8 = vpop.f32.mrb[16].mxu1  ;;  %v2076_v56 = vpack.c.bf16 %v1708_v46, %v1704_v54  ;;  %v2078_v61 = vpack.c.bf16 %v1710_v0, %v1706_v50 }
 0x20d   :  { %v1401_v13 = vadd.f32 %v1400_v8, %v6905_v15  ;;  %v1048_v26 = vadd.f32 %v1047_v7, %v6905_v15  ;;  %v1049_v12 = vpop.f32.mrb[17].mxu0  ;;  %v1402_v44 = vpop.f32.mrb[17].mxu1 }
 0x20e   :  { %v1050_v36 = vadd.f32 %v1049_v12, %v6905_v15  ;;  %v1403_v48 = vadd.f32 %v1402_v44, %v6905_v15  ;;  %v1051_v19 = vpop.f32.mrb[18].mxu0  ;;  %v1404_v16 = vpop.f32.mrb[18].mxu1  ;;  %3221 = vmatprep.subr.bf16.mxu0 %v2076_v56  ;;  %3927 = vmatprep.subr.bf16.mxu1 %v2078_v61 }
 0x20f   :  { %v1713_v20 = vmax.f32 %v1401_v13, 0.0  ;;  %v1052_v24 = vadd.f32 %v1051_v19, %v6888_v6  ;;  %v1405_v57 = vadd.f32 %v1404_v16, %v6888_v6  ;;  %v1053_v32 = vpop.f32.mrb[19].mxu0  ;;  %v1406_v33 = vpop.f32.mrb[19].mxu1  ;;  %3222 = vmatpush1.bf16.msra.mxu0 %v2075_v55  ;;  %3928 = vmatpush1.bf16.msra.mxu1 %v2077_v49  ;;  %v1711_v15 = vmax.f32 %v1048_v26, 0.0 }
 0x210   :  { %v1714_v50 = vmax.f32 %v1403_v48, 0.0  ;;  %v1054_v62 = vadd.f32 %v1053_v32, %v6888_v6  ;;  %v1407_v60 = vadd.f32 %v1406_v33, %v6888_v6  ;;  %v1712_v41 = vmax.f32 %v1050_v36, 0.0 }
 0x211   :  { %5387 = vmatmul.mubr.msk.bf16.gmra.mrb[124].mxu0 %vm863_vm9, %v6141_v25  ;;  %5420 = vmatmul.mubr.msk.bf16.gmra.mrb[124].mxu1 %vm863_vm9, %v6141_v25  ;;  %v1715_v10 = vmax.f32 %v1052_v24, 0.0  ;;  %v1717_v43 = vmax.f32 %v1405_v57, 0.0 }
 0x212   :  { %3247 = vmatprep.mubr.bf16.mxu0 %v6144_v1  ;;  %3953 = vmatprep.mubr.bf16.mxu1 %v6144_v1  ;;  %v1716_v54 = vmax.f32 %v1054_v62, 0.0  ;;  %v1718_v46 = vmax.f32 %v1407_v60, 0.0 }
 0x213   :  { %v2079_v0 = vpack.c.bf16 %v1715_v10, %v1711_v15  ;;  %v2081_v55 = vpack.c.bf16 %v1717_v43, %v1713_v20 }
 0x214   :  { %v1057_v49 = vpop.f32.mrb[20].mxu0  ;;  %v1410_v7 = vpop.f32.mrb[20].mxu1  ;;  %v2080_v8 = vpack.c.bf16 %v1716_v54, %v1712_v41  ;;  %v2082_v56 = vpack.c.bf16 %v1718_v46, %v1714_v50 }
 0x215   :  { %v1411_v6 = vadd.f32 %v1410_v7, %v6926_v22  ;;  %v1058_v61 = vadd.f32 %v1057_v49, %v6926_v22  ;;  %v1059_v13 = vpop.f32.mrb[21].mxu0  ;;  %v1412_v25 = vpop.f32.mrb[21].mxu1 }
 0x216   :  { %v1060_v26 = vadd.f32 %v1059_v13, %v6926_v22  ;;  %v1413_v12 = vadd.f32 %v1412_v25, %v6926_v22  ;;  %v1061_v44 = vpop.f32.mrb[22].mxu0  ;;  %v1414_v1 = vpop.f32.mrb[22].mxu1  ;;  %3223 = vmatprep.subr.bf16.mxu0 %v2080_v8  ;;  %3929 = vmatprep.subr.bf16.mxu1 %v2082_v56 }
 0x217   :  { %v1721_v36 = vmax.f32 %v1411_v6, 0.0  ;;  %v1062_v48 = vadd.f32 %v1061_v44, %v6903_v14  ;;  %v1415_v19 = vadd.f32 %v1414_v1, %v6903_v14  ;;  %v1063_v16 = vpop.f32.mrb[23].mxu0  ;;  %v1416_v20 = vpop.f32.mrb[23].mxu1  ;;  %3224 = vmatpush1.bf16.msra.mxu0 %v2079_v0  ;;  %3930 = vmatpush1.bf16.msra.mxu1 %v2081_v55  ;;  %v1719_v33 = vmax.f32 %v1058_v61, 0.0 }
 0x218   :  { %v1722_v24 = vmax.f32 %v1413_v12, 0.0  ;;  %v1064_v57 = vadd.f32 %v1063_v16, %v6903_v14  ;;  %v1417_v32 = vadd.f32 %v1416_v20, %v6903_v14  ;;  %v1720_v62 = vmax.f32 %v1060_v26, 0.0 }
 0x219   :  { %v1723_v22 = vmax.f32 %v1062_v48, 0.0  ;;  %v1725_v50 = vmax.f32 %v1415_v19, 0.0 }
 0x21a   :  { %v1724_v60 = vmax.f32 %v1064_v57, 0.0  ;;  %v1726_v15 = vmax.f32 %v1417_v32, 0.0 }
 0x21b   :  { %v2083_v10 = vpack.c.bf16 %v1723_v22, %v1719_v33  ;;  %v2085_v43 = vpack.c.bf16 %v1725_v50, %v1721_v36 }
 0x21c   :  { %v1067_v41 = vpop.f32.mrb[24].mxu0  ;;  %v1420_v54 = vpop.f32.mrb[24].mxu1  ;;  %v2084_v46 = vpack.c.bf16 %v1724_v60, %v1720_v62  ;;  %v2086_v49 = vpack.c.bf16 %v1726_v15, %v1722_v24 }
 0x21d   :  { %v1068_v0 = vadd.f32 %v1067_v41, %v6943_v29  ;;  %v1421_v55 = vadd.f32 %v1420_v54, %v6943_v29  ;;  %v1069_v7 = vpop.f32.mrb[25].mxu0  ;;  %v1422_v14 = vpop.f32.mrb[25].mxu1 }
 0x21e   :  { %v1070_v8 = vadd.f32 %v1069_v7, %v6943_v29  ;;  %v1071_v56 = vpop.f32.mrb[26].mxu0  ;;  %v1423_v6 = vadd.f32 %v1422_v14, %v6943_v29  ;;  %v1424_v13 = vpop.f32.mrb[26].mxu1  ;;  %3225 = vmatprep.subr.bf16.mxu0 %v2084_v46  ;;  %3931 = vmatprep.subr.bf16.mxu1 %v2086_v49 }
 0x21f   :  { %v1072_v61 = vadd.f32 %v1071_v56, %v6924_v21  ;;  %v1073_v25 = vpop.f32.mrb[27].mxu0  ;;  %v1729_v26 = vmax.f32 %v1421_v55, 0.0  ;;  %v1425_v12 = vadd.f32 %v1424_v13, %v6924_v21  ;;  %v1426_v1 = vpop.f32.mrb[27].mxu1  ;;  %3226 = vmatpush1.bf16.msra.mxu0 %v2083_v10  ;;  %3932 = vmatpush1.bf16.msra.mxu1 %v2085_v43  ;;  %v1727_v36 = vmax.f32 %v1068_v0, 0.0 }
 0x220   :  { %v1074_v44 = vadd.f32 %v1073_v25, %v6924_v21  ;;  %v1730_v48 = vmax.f32 %v1423_v6, 0.0  ;;  %v1427_v16 = vadd.f32 %v1426_v1, %v6924_v21  ;;  %v1728_v29 = vmax.f32 %v1070_v8, 0.0 }
 0x221   :  { %v1731_v19 = vmax.f32 %v1072_v61, 0.0  ;;  %v1733_v20 = vmax.f32 %v1425_v12, 0.0 }
 0x222   :  { %v1732_v24 = vmax.f32 %v1074_v44, 0.0  ;;  %v1734_v32 = vmax.f32 %v1427_v16, 0.0 }
 0x223   :  { %v2087_v57 = vpack.c.bf16 %v1731_v19, %v1727_v36  ;;  %v2089_v33 = vpack.c.bf16 %v1733_v20, %v1729_v26 }
 0x224   :  { %v2088_v22 = vpack.c.bf16 %v1732_v24, %v1728_v29  ;;  %v1077_v50 = vpop.f32.mrb[28].mxu0  ;;  %v1430_v62 = vpop.f32.mrb[28].mxu1  ;;  %v2090_v60 = vpack.c.bf16 %v1734_v32, %v1730_v48 }
 0x225   :  { %v1078_v15 = vadd.f32 %v1077_v50, %v6963_v35  ;;  %v1431_v10 = vadd.f32 %v1430_v62, %v6963_v35  ;;  %v1079_v43 = vpop.f32.mrb[29].mxu0  ;;  %v1432_v41 = vpop.f32.mrb[29].mxu1 }
 0x226   :  { %v1080_v54 = vadd.f32 %v1079_v43, %v6963_v35  ;;  %v1433_v21 = vadd.f32 %v1432_v41, %v6963_v35  ;;  %v1081_v46 = vpop.f32.mrb[30].mxu0  ;;  %v1434_v49 = vpop.f32.mrb[30].mxu1  ;;  %3227 = vmatprep.subr.bf16.mxu0 %v2088_v22  ;;  %3933 = vmatprep.subr.bf16.mxu1 %v2090_v60 }
 0x227   :  { %v1737_v0 = vmax.f32 %v1431_v10, 0.0  ;;  %v1082_v55 = vadd.f32 %v1081_v46, %v6941_v27  ;;  %v1435_v7 = vadd.f32 %v1434_v49, %v6941_v27  ;;  %v1083_v8 = vpop.f32.mrb[31].mxu0  ;;  %v1436_v14 = vpop.f32.mrb[31].mxu1  ;;  %3228 = vmatpush1.bf16.msra.mxu0 %v2087_v57  ;;  %3934 = vmatpush1.bf16.msra.mxu1 %v2089_v33  ;;  %v1735_v13 = vmax.f32 %v1078_v15, 0.0 }
 0x228   :  { %v1738_v56 = vmax.f32 %v1433_v21, 0.0  ;;  %v1084_v6 = vadd.f32 %v1083_v8, %v6941_v27  ;;  %v1437_v61 = vadd.f32 %v1436_v14, %v6941_v27  ;;  %v1736_v26 = vmax.f32 %v1080_v54, 0.0 }
 0x229   :  { %v1739_v35 = vmax.f32 %v1082_v55, 0.0  ;;  %v1741_v25 = vmax.f32 %v1435_v7, 0.0 }
 0x22a   :  { %v1740_v12 = vmax.f32 %v1084_v6, 0.0  ;;  %v1742_v44 = vmax.f32 %v1437_v61, 0.0 }
 0x22b   :  { %v2091_v1 = vpack.c.bf16 %v1739_v35, %v1735_v13  ;;  %v2093_v36 = vpack.c.bf16 %v1741_v25, %v1737_v0 }
 0x22c   :  { %v2092_v48 = vpack.c.bf16 %v1740_v12, %v1736_v26  ;;  %v2094_v19 = vpack.c.bf16 %v1742_v44, %v1738_v56  ;;  %v1087_v16 = vpop.f32.mrb[32].mxu0  ;;  %v1440_v29 = vpop.f32.mrb[32].mxu1 }
 0x22d   :  { %v1088_v20 = vadd.f32 %v1087_v16, %v6978_v40  ;;  %v1441_v24 = vadd.f32 %v1440_v29, %v6978_v40  ;;  %v1089_v57 = vpop.f32.mrb[33].mxu0  ;;  %v1442_v32 = vpop.f32.mrb[33].mxu1 }
 0x22e   :  { %v1090_v27 = vadd.f32 %v1089_v57, %v6978_v40  ;;  %v1443_v33 = vadd.f32 %v1442_v32, %v6978_v40  ;;  %v1091_v22 = vpop.f32.mrb[34].mxu0  ;;  %v1444_v50 = vpop.f32.mrb[34].mxu1  ;;  %3229 = vmatprep.subr.bf16.mxu0 %v2092_v48  ;;  %3935 = vmatprep.subr.bf16.mxu1 %v2094_v19 }
 0x22f   :  { %v1092_v62 = vadd.f32 %v1091_v22, %v6961_v34  ;;  %v1445_v60 = vadd.f32 %v1444_v50, %v6961_v34  ;;  %v1093_v15 = vpop.f32.mrb[35].mxu0  ;;  %v1446_v10 = vpop.f32.mrb[35].mxu1  ;;  %3230 = vmatpush1.bf16.msra.mxu0 %v2091_v1  ;;  %3936 = vmatpush1.bf16.msra.mxu1 %v2093_v36  ;;  %v1743_v54 = vmax.f32 %v1088_v20, 0.0  ;;  %v1745_v21 = vmax.f32 %v1441_v24, 0.0 }
 0x230   :  { %v1094_v43 = vadd.f32 %v1093_v15, %v6961_v34  ;;  %v1447_v41 = vadd.f32 %v1446_v10, %v6961_v34  ;;  %v1744_v49 = vmax.f32 %v1090_v27, 0.0  ;;  %v1746_v0 = vmax.f32 %v1443_v33, 0.0 }
 0x231   :  { %v1747_v46 = vmax.f32 %v1092_v62, 0.0  ;;  %v1749_v40 = vmax.f32 %v1445_v60, 0.0 }
 0x232   :  { %v1748_v55 = vmax.f32 %v1094_v43, 0.0  ;;  %v1750_v7 = vmax.f32 %v1447_v41, 0.0 }
 0x233   :  { %v2095_v8 = vpack.c.bf16 %v1747_v46, %v1743_v54  ;;  %v2097_v14 = vpack.c.bf16 %v1749_v40, %v1745_v21 }
 0x234   :  { %v2096_v56 = vpack.c.bf16 %v1748_v55, %v1744_v49  ;;  %v2098_v6 = vpack.c.bf16 %v1750_v7, %v1746_v0  ;;  %v1097_v61 = vpop.f32.mrb[36].mxu0  ;;  %v1450_v13 = vpop.f32.mrb[36].mxu1 }
 0x235   :  { %v1098_v35 = vadd.f32 %v1097_v61, %v6999_v52  ;;  %v1451_v25 = vadd.f32 %v1450_v13, %v6999_v52  ;;  %v1099_v26 = vpop.f32.mrb[37].mxu0  ;;  %v1452_v34 = vpop.f32.mrb[37].mxu1 }
 0x236   :  { %v1100_v12 = vadd.f32 %v1099_v26, %v6999_v52  ;;  %v1453_v44 = vadd.f32 %v1452_v34, %v6999_v52  ;;  %v1101_v1 = vpop.f32.mrb[38].mxu0  ;;  %v1454_v36 = vpop.f32.mrb[38].mxu1  ;;  %3231 = vmatprep.subr.bf16.mxu0 %v2096_v56  ;;  %3937 = vmatprep.subr.bf16.mxu1 %v2098_v6 }
 0x237   :  { %v1102_v48 = vadd.f32 %v1101_v1, %v6976_v39  ;;  %v1455_v19 = vadd.f32 %v1454_v36, %v6976_v39  ;;  %v1103_v16 = vpop.f32.mrb[39].mxu0  ;;  %v1456_v29 = vpop.f32.mrb[39].mxu1  ;;  %3232 = vmatpush1.bf16.msra.mxu0 %v2095_v8  ;;  %3938 = vmatpush1.bf16.msra.mxu1 %v2097_v14  ;;  %v1751_v57 = vmax.f32 %v1098_v35, 0.0  ;;  %v1753_v32 = vmax.f32 %v1451_v25, 0.0 }
 0x238   :  { %v1104_v20 = vadd.f32 %v1103_v16, %v6976_v39  ;;  %v1457_v24 = vadd.f32 %v1456_v29, %v6976_v39  ;;  %v1752_v33 = vmax.f32 %v1100_v12, 0.0  ;;  %v1754_v22 = vmax.f32 %v1453_v44, 0.0 }
 0x239   :  { %v1755_v27 = vmax.f32 %v1102_v48, 0.0  ;;  %v1757_v52 = vmax.f32 %v1455_v19, 0.0 }
 0x23a   :  { %v1756_v50 = vmax.f32 %v1104_v20, 0.0  ;;  %v1758_v62 = vmax.f32 %v1457_v24, 0.0 }
 0x23b   :  { %v2099_v60 = vpack.c.bf16 %v1755_v27, %v1751_v57  ;;  %v2101_v15 = vpack.c.bf16 %v1757_v52, %v1753_v32 }
 0x23c   :  { %v2100_v10 = vpack.c.bf16 %v1756_v50, %v1752_v33  ;;  %v2102_v43 = vpack.c.bf16 %v1758_v62, %v1754_v22  ;;  %v1107_v41 = vpop.f32.mrb[40].mxu0  ;;  %v1460_v54 = vpop.f32.mrb[40].mxu1 }
 0x23d   :  { %v1108_v21 = vadd.f32 %v1107_v41, %v7016_v59  ;;  %v1461_v46 = vadd.f32 %v1460_v54, %v7016_v59  ;;  %v1109_v40 = vpop.f32.mrb[41].mxu0  ;;  %v1462_v39 = vpop.f32.mrb[41].mxu1 }
 0x23e   :  { %v1110_v49 = vadd.f32 %v1109_v40, %v7016_v59  ;;  %v1463_v0 = vadd.f32 %v1462_v39, %v7016_v59  ;;  %v1111_v55 = vpop.f32.mrb[42].mxu0  ;;  %v1464_v7 = vpop.f32.mrb[42].mxu1  ;;  %3233 = vmatprep.subr.bf16.mxu0 %v2100_v10  ;;  %3939 = vmatprep.subr.bf16.mxu1 %v2102_v43 }
 0x23f   :  { %v1112_v8 = vadd.f32 %v1111_v55, %v6997_v51  ;;  %v1465_v14 = vadd.f32 %v1464_v7, %v6997_v51  ;;  %v1113_v56 = vpop.f32.mrb[43].mxu0  ;;  %v1466_v6 = vpop.f32.mrb[43].mxu1  ;;  %3234 = vmatpush1.bf16.msra.mxu0 %v2099_v60  ;;  %3940 = vmatpush1.bf16.msra.mxu1 %v2101_v15  ;;  %v1759_v35 = vmax.f32 %v1108_v21, 0.0  ;;  %v1761_v25 = vmax.f32 %v1461_v46, 0.0 }
 0x240   :  { %v1114_v61 = vadd.f32 %v1113_v56, %v6997_v51  ;;  %v1467_v13 = vadd.f32 %v1466_v6, %v6997_v51  ;;  %v1760_v34 = vmax.f32 %v1110_v49, 0.0  ;;  %v1762_v12 = vmax.f32 %v1463_v0, 0.0 }
 0x241   :  { %v1763_v26 = vmax.f32 %v1112_v8, 0.0  ;;  %v1765_v59 = vmax.f32 %v1465_v14, 0.0 }
 0x242   :  { %v1764_v44 = vmax.f32 %v1114_v61, 0.0  ;;  %v1766_v1 = vmax.f32 %v1467_v13, 0.0 }
 0x243   :  { %v2103_v36 = vpack.c.bf16 %v1763_v26, %v1759_v35  ;;  %v2105_v48 = vpack.c.bf16 %v1765_v59, %v1761_v25 }
 0x244   :  { %v2104_v19 = vpack.c.bf16 %v1764_v44, %v1760_v34  ;;  %v2106_v16 = vpack.c.bf16 %v1766_v1, %v1762_v12  ;;  %v1117_v29 = vpop.f32.mrb[44].mxu0  ;;  %v1470_v20 = vpop.f32.mrb[44].mxu1 }
 0x245   :  { %v1118_v24 = vadd.f32 %v1117_v29, %v7036_v11  ;;  %v1471_v57 = vadd.f32 %v1470_v20, %v7036_v11  ;;  %v1119_v32 = vpop.f32.mrb[45].mxu0  ;;  %v1472_v51 = vpop.f32.mrb[45].mxu1 }
 0x246   :  { %v1120_v27 = vadd.f32 %v1119_v32, %v7036_v11  ;;  %v1473_v52 = vadd.f32 %v1472_v51, %v7036_v11  ;;  %v1121_v33 = vpop.f32.mrb[46].mxu0  ;;  %v1474_v22 = vpop.f32.mrb[46].mxu1  ;;  %3235 = vmatprep.subr.bf16.mxu0 %v2104_v19  ;;  %3941 = vmatprep.subr.bf16.mxu1 %v2106_v16 }
 0x247   :  { %v1122_v50 = vadd.f32 %v1121_v33, %v7014_v58  ;;  %v1475_v62 = vadd.f32 %v1474_v22, %v7014_v58  ;;  %v1123_v60 = vpop.f32.mrb[47].mxu0  ;;  %v1476_v15 = vpop.f32.mrb[47].mxu1  ;;  %3236 = vmatpush1.bf16.msra.mxu0 %v2103_v36  ;;  %3942 = vmatpush1.bf16.msra.mxu1 %v2105_v48  ;;  %v1767_v41 = vmax.f32 %v1118_v24, 0.0  ;;  %v1769_v54 = vmax.f32 %v1471_v57, 0.0 }
 0x248   :  { %v1124_v10 = vadd.f32 %v1123_v60, %v7014_v58  ;;  %v1477_v43 = vadd.f32 %v1476_v15, %v7014_v58  ;;  %v1768_v46 = vmax.f32 %v1120_v27, 0.0  ;;  %v1770_v40 = vmax.f32 %v1473_v52, 0.0 }
 0x249   :  { %v1771_v21 = vmax.f32 %v1122_v50, 0.0  ;;  %v1773_v11 = vmax.f32 %v1475_v62, 0.0 }
 0x24a   :  { %v1772_v39 = vmax.f32 %v1124_v10, 0.0  ;;  %v1774_v49 = vmax.f32 %v1477_v43, 0.0 }
 0x24b   :  { %v2107_v0 = vpack.c.bf16 %v1771_v21, %v1767_v41  ;;  %v2109_v55 = vpack.c.bf16 %v1773_v11, %v1769_v54 }
 0x24c   :  { %v2108_v7 = vpack.c.bf16 %v1772_v39, %v1768_v46  ;;  %v2110_v8 = vpack.c.bf16 %v1774_v49, %v1770_v40  ;;  %v1127_v14 = vpop.f32.mrb[48].mxu0  ;;  %v1480_v56 = vpop.f32.mrb[48].mxu1 }
 0x24d   :  { %v1128_v6 = vadd.f32 %v1127_v14, %v7051_v18  ;;  %v1481_v61 = vadd.f32 %v1480_v56, %v7051_v18  ;;  %v1129_v13 = vpop.f32.mrb[49].mxu0  ;;  %v1482_v58 = vpop.f32.mrb[49].mxu1 }
 0x24e   :  { %v1130_v35 = vadd.f32 %v1129_v13, %v7051_v18  ;;  %v1483_v25 = vadd.f32 %v1482_v58, %v7051_v18  ;;  %v1131_v26 = vpop.f32.mrb[50].mxu0  ;;  %v1484_v59 = vpop.f32.mrb[50].mxu1  ;;  %3237 = vmatprep.subr.bf16.mxu0 %v2108_v7  ;;  %3943 = vmatprep.subr.bf16.mxu1 %v2110_v8 }
 0x24f   :  { %v1132_v34 = vadd.f32 %v1131_v26, %v7034_v9  ;;  %v1485_v12 = vadd.f32 %v1484_v59, %v7034_v9  ;;  %v1133_v44 = vpop.f32.mrb[51].mxu0  ;;  %v1486_v1 = vpop.f32.mrb[51].mxu1  ;;  %3238 = vmatpush1.bf16.msra.mxu0 %v2107_v0  ;;  %3944 = vmatpush1.bf16.msra.mxu1 %v2109_v55  ;;  %v1775_v19 = vmax.f32 %v1128_v6, 0.0  ;;  %v1777_v16 = vmax.f32 %v1481_v61, 0.0 }
 0x250   :  { %v1134_v36 = vadd.f32 %v1133_v44, %v7034_v9  ;;  %v1487_v48 = vadd.f32 %v1486_v1, %v7034_v9  ;;  %v1776_v20 = vmax.f32 %v1130_v35, 0.0  ;;  %v1778_v24 = vmax.f32 %v1483_v25, 0.0 }
 0x251   :  { %v1779_v29 = vmax.f32 %v1132_v34, 0.0  ;;  %v1781_v18 = vmax.f32 %v1485_v12, 0.0 }
 0x252   :  { %v1780_v57 = vmax.f32 %v1134_v36, 0.0  ;;  %v1782_v32 = vmax.f32 %v1487_v48, 0.0 }
 0x253   :  { %v2111_v51 = vpack.c.bf16 %v1779_v29, %v1775_v19  ;;  %v2113_v27 = vpack.c.bf16 %v1781_v18, %v1777_v16 }
 0x254   :  { %v2112_v52 = vpack.c.bf16 %v1780_v57, %v1776_v20  ;;  %v2114_v33 = vpack.c.bf16 %v1782_v32, %v1778_v24  ;;  %v1137_v22 = vpop.f32.mrb[52].mxu0  ;;  %v1490_v50 = vpop.f32.mrb[52].mxu1 }
 0x255   :  { %v1138_v62 = vadd.f32 %v1137_v22, %v7072_v31  ;;  %v1491_v60 = vadd.f32 %v1490_v50, %v7072_v31  ;;  %v1139_v15 = vpop.f32.mrb[53].mxu0  ;;  %v1492_v9 = vpop.f32.mrb[53].mxu1 }
 0x256   :  { %v1140_v10 = vadd.f32 %v1139_v15, %v7072_v31  ;;  %v1493_v43 = vadd.f32 %v1492_v9, %v7072_v31  ;;  %v1141_v41 = vpop.f32.mrb[54].mxu0  ;;  %v1494_v54 = vpop.f32.mrb[54].mxu1  ;;  %3239 = vmatprep.subr.bf16.mxu0 %v2112_v52  ;;  %3945 = vmatprep.subr.bf16.mxu1 %v2114_v33 }
 0x257   :  { %v1142_v21 = vadd.f32 %v1141_v41, %v7049_v17  ;;  %v1495_v11 = vadd.f32 %v1494_v54, %v7049_v17  ;;  %v1143_v46 = vpop.f32.mrb[55].mxu0  ;;  %v1496_v40 = vpop.f32.mrb[55].mxu1  ;;  %3240 = vmatpush1.bf16.msra.mxu0 %v2111_v51  ;;  %3946 = vmatpush1.bf16.msra.mxu1 %v2113_v27  ;;  %v1783_v0 = vmax.f32 %v1138_v62, 0.0  ;;  %v1785_v55 = vmax.f32 %v1491_v60, 0.0 }
 0x258   :  { %v1144_v39 = vadd.f32 %v1143_v46, %v7049_v17  ;;  %v1497_v49 = vadd.f32 %v1496_v40, %v7049_v17  ;;  %v1784_v8 = vmax.f32 %v1140_v10, 0.0  ;;  %v1786_v14 = vmax.f32 %v1493_v43, 0.0 }
 0x259   :  { %v1787_v7 = vmax.f32 %v1142_v21, 0.0  ;;  %v1789_v31 = vmax.f32 %v1495_v11, 0.0 }
 0x25a   :  { %v1788_v56 = vmax.f32 %v1144_v39, 0.0  ;;  %v1790_v6 = vmax.f32 %v1497_v49, 0.0 }
 0x25b   :  { %v2115_v61 = vpack.c.bf16 %v1787_v7, %v1783_v0  ;;  %v2117_v13 = vpack.c.bf16 %v1789_v31, %v1785_v55 }
 0x25c   :  { %v2116_v58 = vpack.c.bf16 %v1788_v56, %v1784_v8  ;;  %v2118_v35 = vpack.c.bf16 %v1790_v6, %v1786_v14  ;;  %v1147_v25 = vpop.f32.mrb[56].mxu0  ;;  %v1500_v26 = vpop.f32.mrb[56].mxu1 }
 0x25d   :  { %v1148_v59 = vadd.f32 %v1147_v25, %v7089_v38  ;;  %v1501_v34 = vadd.f32 %v1500_v26, %v7089_v38  ;;  %v1149_v12 = vpop.f32.mrb[57].mxu0  ;;  %v1502_v17 = vpop.f32.mrb[57].mxu1 }
 0x25e   :  { %v1150_v44 = vadd.f32 %v1149_v12, %v7089_v38  ;;  %v1503_v1 = vadd.f32 %v1502_v17, %v7089_v38  ;;  %v1151_v36 = vpop.f32.mrb[58].mxu0  ;;  %v1504_v48 = vpop.f32.mrb[58].mxu1  ;;  %3241 = vmatprep.subr.bf16.mxu0 %v2116_v58  ;;  %3947 = vmatprep.subr.bf16.mxu1 %v2118_v35 }
 0x25f   :  { %v1152_v19 = vadd.f32 %v1151_v36, %v7070_v30  ;;  %v1505_v16 = vadd.f32 %v1504_v48, %v7070_v30  ;;  %v1153_v29 = vpop.f32.mrb[59].mxu0  ;;  %v1506_v18 = vpop.f32.mrb[59].mxu1  ;;  %3242 = vmatpush1.bf16.msra.mxu0 %v2115_v61  ;;  %3948 = vmatpush1.bf16.msra.mxu1 %v2117_v13  ;;  %v1791_v57 = vmax.f32 %v1148_v59, 0.0  ;;  %v1793_v32 = vmax.f32 %v1501_v34, 0.0 }
 0x260   :  { %v1154_v20 = vadd.f32 %v1153_v29, %v7070_v30  ;;  %v1507_v24 = vadd.f32 %v1506_v18, %v7070_v30  ;;  %v1792_v27 = vmax.f32 %v1150_v44, 0.0  ;;  %v1794_v52 = vmax.f32 %v1503_v1, 0.0  ;;  %v551_v35 = vpop.permute.xlu0 %550  ;;  %v6142_v18 = vld [vmem:[%s7795_s5] ss:$16 sps:$4 sm:$0xff]  }
 0x261   :  { %v1795_v51 = vmax.f32 %v1152_v19, 0.0  ;;  %v1797_v38 = vmax.f32 %v1505_v16, 0.0 }
 0x262   :  { %v1796_v33 = vmax.f32 %v1154_v20, 0.0  ;;  %v1798_v22 = vmax.f32 %v1507_v24, 0.0 }
 0x263   :  { %v2119_v50 = vpack.c.bf16 %v1795_v51, %v1791_v57  ;;  %v2121_v62 = vpack.c.bf16 %v1797_v38, %v1793_v32  ;;  %v6145_v51 = vld [vmem:[%s7795_s5 + $0x24] ss:$16 sps:$4 sm:$0xff]  }
 0x264   :  { %v2120_v60 = vpack.c.bf16 %v1796_v33, %v1792_v27  ;;  %v2122_v15 = vpack.c.bf16 %v1798_v22, %v1794_v52  ;;  %v1157_v9 = vpop.f32.mrb[60].mxu0  ;;  %v1510_v10 = vpop.f32.mrb[60].mxu1 }
 0x265   :  { %v1158_v43 = vadd.f32 %v1157_v9, %v7101_v45  ;;  %v1511_v41 = vadd.f32 %v1510_v10, %v7101_v45  ;;  %v1159_v54 = vpop.f32.mrb[61].mxu0  ;;  %v1512_v30 = vpop.f32.mrb[61].mxu1 }
 0x266   :  { %v1160_v21 = vadd.f32 %v1159_v54, %v7101_v45  ;;  %v1513_v11 = vadd.f32 %v1512_v30, %v7101_v45  ;;  %v1161_v46 = vpop.f32.mrb[62].mxu0  ;;  %v1514_v40 = vpop.f32.mrb[62].mxu1  ;;  %3243 = vmatprep.subr.bf16.mxu0 %v2120_v60  ;;  %3949 = vmatprep.subr.bf16.mxu1 %v2122_v15 }
 0x267   :  { %v1162_v39 = vadd.f32 %v1161_v46, %v7087_v37  ;;  %v1515_v49 = vadd.f32 %v1514_v40, %v7087_v37  ;;  %v1163_v0 = vpop.f32.mrb[63].mxu0  ;;  %v1516_v55 = vpop.f32.mrb[63].mxu1  ;;  %3244 = vmatpush1.bf16.msra.mxu0 %v2119_v50  ;;  %3950 = vmatpush1.bf16.msra.mxu1 %v2121_v62  ;;  %v1799_v8 = vmax.f32 %v1158_v43, 0.0  ;;  %v1801_v14 = vmax.f32 %v1511_v41, 0.0 }
 0x268   :  { %v1164_v7 = vadd.f32 %v1163_v0, %v7087_v37  ;;  %v1517_v31 = vadd.f32 %v1516_v55, %v7087_v37  ;;  %v1800_v6 = vmax.f32 %v1160_v21, 0.0  ;;  %v1802_v61 = vmax.f32 %v1513_v11, 0.0  ;;  %v561_v9 = vpop.permute.xlu0 %560  ;;  %v556_v10 = vpop.permute.xlu1 %555 }
 0x269   :  { %v1803_v56 = vmax.f32 %v1162_v39, 0.0  ;;  %v1805_v45 = vmax.f32 %v1515_v49, 0.0 }
 0x26a   :  { %v1804_v13 = vmax.f32 %v1164_v7, 0.0  ;;  %v1806_v58 = vmax.f32 %v1517_v31, 0.0 }
 0x26b   :  { %v2123_v25 = vpack.c.bf16 %v1803_v56, %v1799_v8  ;;  %v2125_v26 = vpack.c.bf16 %v1805_v45, %v1801_v14  ;;  %v6147_v8 = vld [vmem:[%s7795_s5 + $0x20] ss:$16 sps:$4 sm:$0xff]  }
 0x26c   :  { %v2124_v59 = vpack.c.bf16 %v1804_v13, %v1800_v6  ;;  %v2126_v34 = vpack.c.bf16 %v1806_v58, %v1802_v61  ;;  %v1167_v12 = vpop.f32.mrb[64].mxu0  ;;  %v1520_v17 = vpop.f32.mrb[64].mxu1  ;;  %v6148_v61 = vld [vmem:[%s7795_s5 + $0x44] ss:$16 sps:$4 sm:$0xff]  }
 0x26d   :  { %v1168_v44 = vadd.f32 %v1167_v12, %v7111_v53  ;;  %v1521_v1 = vadd.f32 %v1520_v17, %v7111_v53  ;;  %v1169_v37 = vpop.f32.mrb[65].mxu0  ;;  %v1522_v36 = vpop.f32.mrb[65].mxu1 }
 0x26e   :  { %v1170_v48 = vadd.f32 %v1169_v37, %v7111_v53  ;;  %v1523_v19 = vadd.f32 %v1522_v36, %v7111_v53  ;;  %v1171_v16 = vpop.f32.mrb[66].mxu0  ;;  %v1524_v29 = vpop.f32.mrb[66].mxu1  ;;  %3245 = vmatprep.subr.bf16.mxu0 %v2124_v59  ;;  %3951 = vmatprep.subr.bf16.mxu1 %v2126_v34 }
 0x26f   :  { %v1172_v20 = vadd.f32 %v1171_v16, %v551_v35  ;;  %v1525_v24 = vadd.f32 %v1524_v29, %v551_v35  ;;  %v1173_v57 = vpop.f32.mrb[67].mxu0  ;;  %v1526_v32 = vpop.f32.mrb[67].mxu1  ;;  %3246 = vmatpush1.bf16.msra.mxu0 %v2123_v25  ;;  %3952 = vmatpush1.bf16.msra.mxu1 %v2125_v26  ;;  %v1807_v27 = vmax.f32 %v1168_v44, 0.0  ;;  %v1809_v52 = vmax.f32 %v1521_v1, 0.0 }
 0x270   :  { %v1174_v38 = vadd.f32 %v1173_v57, %v551_v35  ;;  %v1527_v53 = vadd.f32 %v1526_v32, %v551_v35  ;;  %v1808_v50 = vmax.f32 %v1170_v48, 0.0  ;;  %v1810_v62 = vmax.f32 %v1523_v19, 0.0  ;;  %v571_v1 = vpop.permute.xlu0 %570  ;;  %v566_v37 = vpop.permute.xlu1 %565 }
 0x271   :  { %v1811_v33 = vmax.f32 %v1172_v20, 0.0  ;;  %v1813_v22 = vmax.f32 %v1525_v24, 0.0 }
 0x272   :  { %v1812_v60 = vmax.f32 %v1174_v38, 0.0  ;;  %v1814_v15 = vmax.f32 %v1527_v53, 0.0  ;;  %3248 = vmatmul.mubr.bf16.vlgmr.msra.gmra.mrb[128].mxu0 %v6142_v18  ;;  %3954 = vmatmul.mubr.bf16.vlgmr.msra.gmra.mrb[128].mxu1 %v6142_v18 }
 0x273   :  { %v2127_v43 = vpack.c.bf16 %v1811_v33, %v1807_v27  ;;  %v2129_v41 = vpack.c.bf16 %v1813_v22, %v1809_v52  ;;  %3257 = vmatprep.mubr.bf16.mxu0 %v6145_v51  ;;  %3963 = vmatprep.mubr.bf16.mxu1 %v6145_v51  ;;  %v6150_v52 = vld [vmem:[%s7795_s5 + $0x40] ss:$16 sps:$4 sm:$0xff]  }
 0x274   :  { %v2128_v54 = vpack.c.bf16 %v1812_v60, %v1808_v50  ;;  %v2130_v30 = vpack.c.bf16 %v1814_v15, %v1810_v62  ;;  %v1177_v21 = vpop.f32.mrb[68].mxu0  ;;  %v1530_v11 = vpop.f32.mrb[68].mxu1  ;;  %v6151_v60 = vld [vmem:[%s7795_s5 + $0x64] ss:$16 sps:$4 sm:$0xff]  }
 0x275   :  { %v1178_v46 = vadd.f32 %v1177_v21, %v556_v10  ;;  %v1531_v40 = vadd.f32 %v1530_v11, %v556_v10  ;;  %v1179_v39 = vpop.f32.mrb[69].mxu0  ;;  %v1532_v49 = vpop.f32.mrb[69].mxu1 }
 0x276   :  { %v1180_v0 = vadd.f32 %v1179_v39, %v556_v10  ;;  %v1533_v55 = vadd.f32 %v1532_v49, %v556_v10  ;;  %v1181_v7 = vpop.f32.mrb[70].mxu0  ;;  %v1534_v31 = vpop.f32.mrb[70].mxu1  ;;  %3568 = vmatprep.subr.bf16.mxu0 %v2128_v54  ;;  %4274 = vmatprep.subr.bf16.mxu1 %v2130_v30 }
 0x277   :  { %v1182_v14 = vadd.f32 %v1181_v7, %v561_v9  ;;  %v1535_v56 = vadd.f32 %v1534_v31, %v561_v9  ;;  %v1183_v45 = vpop.f32.mrb[71].mxu0  ;;  %v1536_v6 = vpop.f32.mrb[71].mxu1  ;;  %3569 = vmatpush1.bf16.msra.mxu0 %v2127_v43  ;;  %4275 = vmatpush1.bf16.msra.mxu1 %v2129_v41  ;;  %v1815_v35 = vmax.f32 %v1178_v46, 0.0  ;;  %v1817_v25 = vmax.f32 %v1531_v40, 0.0 }
 0x278   :  { %v1184_v13 = vadd.f32 %v1183_v45, %v561_v9  ;;  %v1537_v58 = vadd.f32 %v1536_v6, %v561_v9  ;;  %v1816_v34 = vmax.f32 %v1180_v0, 0.0  ;;  %v1818_v12 = vmax.f32 %v1533_v55, 0.0  ;;  %v581_v40 = vpop.permute.xlu0 %580  ;;  %v576_v39 = vpop.permute.xlu1 %575 }
 0x279   :  { %v1819_v26 = vmax.f32 %v1182_v14, 0.0  ;;  %v1821_v59 = vmax.f32 %v1535_v56, 0.0 }
 0x27a   :  { %v1820_v17 = vmax.f32 %v1184_v13, 0.0  ;;  %v1822_v44 = vmax.f32 %v1537_v58, 0.0  ;;  %3258 = vmatmul.mubr.bf16.gmra.mrb[132].mxu0 %v6147_v8  ;;  %3964 = vmatmul.mubr.bf16.gmra.mrb[132].mxu1 %v6147_v8 }
 0x27b   :  { %v2131_v36 = vpack.c.bf16 %v1819_v26, %v1815_v35  ;;  %v2133_v48 = vpack.c.bf16 %v1821_v59, %v1817_v25  ;;  %3267 = vmatprep.mubr.bf16.mxu0 %v6148_v61  ;;  %3973 = vmatprep.mubr.bf16.mxu1 %v6148_v61  ;;  %v6153_v25 = vld [vmem:[%s7795_s5 + $0x60] ss:$16 sps:$4 sm:$0xff]  }
 0x27c   :  { %v2132_v19 = vpack.c.bf16 %v1820_v17, %v1816_v34  ;;  %v2134_v16 = vpack.c.bf16 %v1822_v44, %v1818_v12  ;;  %v1187_v29 = vpop.f32.mrb[72].mxu0  ;;  %v1540_v18 = vpop.f32.mrb[72].mxu1  ;;  %v6154_v17 = vld [vmem:[%s7795_s5 + $0x84] ss:$16 sps:$4 sm:$0xff]  }
 0x27d   :  { %v1188_v20 = vadd.f32 %v1187_v29, %v566_v37  ;;  %v1541_v24 = vadd.f32 %v1540_v18, %v566_v37  ;;  %v1189_v57 = vpop.f32.mrb[73].mxu0  ;;  %v1542_v32 = vpop.f32.mrb[73].mxu1 }
 0x27e   :  { %v1190_v51 = vadd.f32 %v1189_v57, %v566_v37  ;;  %v1543_v38 = vadd.f32 %v1542_v32, %v566_v37  ;;  %v1191_v53 = vpop.f32.mrb[74].mxu0  ;;  %v1544_v27 = vpop.f32.mrb[74].mxu1  ;;  %3570 = vmatprep.subr.bf16.mxu0 %v2132_v19  ;;  %4276 = vmatprep.subr.bf16.mxu1 %v2134_v16 }
 0x27f   :  { %v1192_v33 = vadd.f32 %v1191_v53, %v571_v1  ;;  %v1545_v22 = vadd.f32 %v1544_v27, %v571_v1  ;;  %v1193_v50 = vpop.f32.mrb[75].mxu0  ;;  %v1546_v62 = vpop.f32.mrb[75].mxu1  ;;  %3571 = vmatpush1.bf16.msra.mxu0 %v2131_v36  ;;  %4277 = vmatpush1.bf16.msra.mxu1 %v2133_v48  ;;  %v1823_v10 = vmax.f32 %v1188_v20, 0.0  ;;  %v1825_v43 = vmax.f32 %v1541_v24, 0.0 }
 0x280   :  { %v1194_v15 = vadd.f32 %v1193_v50, %v571_v1  ;;  %v1547_v9 = vadd.f32 %v1546_v62, %v571_v1  ;;  %v1824_v30 = vmax.f32 %v1190_v51, 0.0  ;;  %v1826_v21 = vmax.f32 %v1543_v38, 0.0  ;;  %v591_v24 = vpop.permute.xlu0 %590  ;;  %v586_v57 = vpop.permute.xlu1 %585 }
 0x281   :  { %v1827_v41 = vmax.f32 %v1192_v33, 0.0  ;;  %v1829_v54 = vmax.f32 %v1545_v22, 0.0 }
 0x282   :  { %v1828_v11 = vmax.f32 %v1194_v15, 0.0  ;;  %v1830_v46 = vmax.f32 %v1547_v9, 0.0  ;;  %3268 = vmatmul.mubr.bf16.gmra.mrb[136].mxu0 %v6150_v52  ;;  %3974 = vmatmul.mubr.bf16.gmra.mrb[136].mxu1 %v6150_v52 }
 0x283   :  { %v2135_v49 = vpack.c.bf16 %v1827_v41, %v1823_v10  ;;  %v2137_v0 = vpack.c.bf16 %v1829_v54, %v1825_v43  ;;  %3277 = vmatprep.mubr.bf16.mxu0 %v6151_v60  ;;  %3983 = vmatprep.mubr.bf16.mxu1 %v6151_v60  ;;  %v6156_v43 = vld [vmem:[%s7795_s5 + $0x80] ss:$16 sps:$4 sm:$0xff]  }
 0x284   :  { %v2136_v55 = vpack.c.bf16 %v1828_v11, %v1824_v30  ;;  %v2138_v7 = vpack.c.bf16 %v1830_v46, %v1826_v21  ;;  %v1197_v31 = vpop.f32.mrb[76].mxu0  ;;  %v1550_v8 = vpop.f32.mrb[76].mxu1  ;;  %v6157_v11 = vld [vmem:[%s7795_s5 + $0xa4] ss:$16 sps:$4 sm:$0xff]  }
 0x285   :  { %v1198_v14 = vadd.f32 %v1197_v31, %v576_v39  ;;  %v1551_v56 = vadd.f32 %v1550_v8, %v576_v39  ;;  %v1199_v45 = vpop.f32.mrb[77].mxu0  ;;  %v1552_v6 = vpop.f32.mrb[77].mxu1 }
 0x286   :  { %v1200_v61 = vadd.f32 %v1199_v45, %v576_v39  ;;  %v1553_v13 = vadd.f32 %v1552_v6, %v576_v39  ;;  %v1201_v58 = vpop.f32.mrb[78].mxu0  ;;  %v1554_v35 = vpop.f32.mrb[78].mxu1  ;;  %3572 = vmatprep.subr.bf16.mxu0 %v2136_v55  ;;  %4278 = vmatprep.subr.bf16.mxu1 %v2138_v7 }
 0x287   :  { %v1202_v26 = vadd.f32 %v1201_v58, %v581_v40  ;;  %v1555_v59 = vadd.f32 %v1554_v35, %v581_v40  ;;  %v1203_v34 = vpop.f32.mrb[79].mxu0  ;;  %v1556_v12 = vpop.f32.mrb[79].mxu1  ;;  %3573 = vmatpush1.bf16.msra.mxu0 %v2135_v49  ;;  %4279 = vmatpush1.bf16.msra.mxu1 %v2137_v0  ;;  %v1831_v37 = vmax.f32 %v1198_v14, 0.0  ;;  %v1833_v36 = vmax.f32 %v1551_v56, 0.0 }
 0x288   :  { %v1204_v44 = vadd.f32 %v1203_v34, %v581_v40  ;;  %v1557_v1 = vadd.f32 %v1556_v12, %v581_v40  ;;  %v1832_v16 = vmax.f32 %v1200_v61, 0.0  ;;  %v1834_v29 = vmax.f32 %v1553_v13, 0.0  ;;  %v601_v56 = vpop.permute.xlu0 %600  ;;  %v596_v45 = vpop.permute.xlu1 %595 }
 0x289   :  { %v1835_v48 = vmax.f32 %v1202_v26, 0.0  ;;  %v1837_v19 = vmax.f32 %v1555_v59, 0.0 }
 0x28a   :  { %v1836_v18 = vmax.f32 %v1204_v44, 0.0  ;;  %v1838_v20 = vmax.f32 %v1557_v1, 0.0  ;;  %3278 = vmatmul.mubr.bf16.gmra.mrb[140].mxu0 %v6153_v25  ;;  %3984 = vmatmul.mubr.bf16.gmra.mrb[140].mxu1 %v6153_v25 }
 0x28b   :  { %v2139_v32 = vpack.c.bf16 %v1835_v48, %v1831_v37  ;;  %v2141_v51 = vpack.c.bf16 %v1837_v19, %v1833_v36  ;;  %3287 = vmatprep.mubr.bf16.mxu0 %v6154_v17  ;;  %3993 = vmatprep.mubr.bf16.mxu1 %v6154_v17  ;;  %v6159_v36 = vld [vmem:[%s7795_s5 + $0xa0] ss:$16 sps:$4 sm:$0xff]  }
 0x28c   :  { %v2140_v38 = vpack.c.bf16 %v1836_v18, %v1832_v16  ;;  %v2142_v53 = vpack.c.bf16 %v1838_v20, %v1834_v29  ;;  %v1207_v27 = vpop.f32.mrb[80].mxu0  ;;  %v1560_v52 = vpop.f32.mrb[80].mxu1  ;;  %v6160_v18 = vld [vmem:[%s7795_s5 + $0xc4] ss:$16 sps:$4 sm:$0xff]  }
 0x28d   :  { %v1208_v33 = vadd.f32 %v1207_v27, %v586_v57  ;;  %v1561_v22 = vadd.f32 %v1560_v52, %v586_v57  ;;  %v1209_v50 = vpop.f32.mrb[81].mxu0  ;;  %v1562_v62 = vpop.f32.mrb[81].mxu1 }
 0x28e   :  { %v1210_v60 = vadd.f32 %v1209_v50, %v586_v57  ;;  %v1563_v15 = vadd.f32 %v1562_v62, %v586_v57  ;;  %v1211_v9 = vpop.f32.mrb[82].mxu0  ;;  %v1564_v10 = vpop.f32.mrb[82].mxu1  ;;  %3574 = vmatprep.subr.bf16.mxu0 %v2140_v38  ;;  %4280 = vmatprep.subr.bf16.mxu1 %v2142_v53 }
 0x28f   :  { %v1212_v41 = vadd.f32 %v1211_v9, %v591_v24  ;;  %v1565_v54 = vadd.f32 %v1564_v10, %v591_v24  ;;  %v1213_v30 = vpop.f32.mrb[83].mxu0  ;;  %v1566_v21 = vpop.f32.mrb[83].mxu1  ;;  %3575 = vmatpush1.bf16.msra.mxu0 %v2139_v32  ;;  %4281 = vmatpush1.bf16.msra.mxu1 %v2141_v51  ;;  %v1839_v39 = vmax.f32 %v1208_v33, 0.0  ;;  %v1841_v49 = vmax.f32 %v1561_v22, 0.0 }
 0x290   :  { %v1214_v46 = vadd.f32 %v1213_v30, %v591_v24  ;;  %v1567_v40 = vadd.f32 %v1566_v21, %v591_v24  ;;  %v1840_v7 = vmax.f32 %v1210_v60, 0.0  ;;  %v1842_v31 = vmax.f32 %v1563_v15, 0.0  ;;  %v611_v22 = vpop.permute.xlu0 %610  ;;  %v606_v50 = vpop.permute.xlu1 %605 }
 0x291   :  { %v1843_v0 = vmax.f32 %v1212_v41, 0.0  ;;  %v1845_v55 = vmax.f32 %v1565_v54, 0.0 }
 0x292   :  { %v1844_v8 = vmax.f32 %v1214_v46, 0.0  ;;  %v1846_v14 = vmax.f32 %v1567_v40, 0.0  ;;  %3288 = vmatmul.mubr.bf16.gmra.mrb[144].mxu0 %v6156_v43  ;;  %3994 = vmatmul.mubr.bf16.gmra.mrb[144].mxu1 %v6156_v43 }
 0x293   :  { %v2143_v6 = vpack.c.bf16 %v1843_v0, %v1839_v39  ;;  %v2145_v61 = vpack.c.bf16 %v1845_v55, %v1841_v49  ;;  %3297 = vmatprep.mubr.bf16.mxu0 %v6157_v11  ;;  %4003 = vmatprep.mubr.bf16.mxu1 %v6157_v11  ;;  %v6162_v49 = vld [vmem:[%s7795_s5 + $0xc0] ss:$16 sps:$4 sm:$0xff]  }
 0x294   :  { %v2144_v13 = vpack.c.bf16 %v1844_v8, %v1840_v7  ;;  %v2146_v58 = vpack.c.bf16 %v1846_v14, %v1842_v31  ;;  %v1217_v35 = vpop.f32.mrb[84].mxu0  ;;  %v1570_v25 = vpop.f32.mrb[84].mxu1  ;;  %v6163_v8 = vld [vmem:[%s7795_s5 + $0xe4] ss:$16 sps:$4 sm:$0xff]  }
 0x295   :  { %v1218_v26 = vadd.f32 %v1217_v35, %v596_v45  ;;  %v1571_v59 = vadd.f32 %v1570_v25, %v596_v45  ;;  %v1219_v34 = vpop.f32.mrb[85].mxu0  ;;  %v1572_v12 = vpop.f32.mrb[85].mxu1 }
 0x296   :  { %v1220_v17 = vadd.f32 %v1219_v34, %v596_v45  ;;  %v1573_v44 = vadd.f32 %v1572_v12, %v596_v45  ;;  %v1221_v1 = vpop.f32.mrb[86].mxu0  ;;  %v1574_v37 = vpop.f32.mrb[86].mxu1  ;;  %3576 = vmatprep.subr.bf16.mxu0 %v2144_v13  ;;  %4282 = vmatprep.subr.bf16.mxu1 %v2146_v58 }
 0x297   :  { %v1222_v48 = vadd.f32 %v1221_v1, %v601_v56  ;;  %v1575_v19 = vadd.f32 %v1574_v37, %v601_v56  ;;  %v1223_v16 = vpop.f32.mrb[87].mxu0  ;;  %v1576_v29 = vpop.f32.mrb[87].mxu1  ;;  %3577 = vmatpush1.bf16.msra.mxu0 %v2143_v6  ;;  %4283 = vmatpush1.bf16.msra.mxu1 %v2145_v61  ;;  %v1847_v57 = vmax.f32 %v1218_v26, 0.0  ;;  %v1849_v32 = vmax.f32 %v1571_v59, 0.0 }
 0x298   :  { %v1224_v20 = vadd.f32 %v1223_v16, %v601_v56  ;;  %v1577_v24 = vadd.f32 %v1576_v29, %v601_v56  ;;  %v1848_v53 = vmax.f32 %v1220_v17, 0.0  ;;  %v1850_v27 = vmax.f32 %v1573_v44, 0.0  ;;  %v621_v59 = vpop.permute.xlu0 %620  ;;  %v616_v34 = vpop.permute.xlu1 %615 }
 0x299   :  { %v1851_v51 = vmax.f32 %v1222_v48, 0.0  ;;  %v1853_v38 = vmax.f32 %v1575_v19, 0.0 }
 0x29a   :  { %v1852_v52 = vmax.f32 %v1224_v20, 0.0  ;;  %v1854_v33 = vmax.f32 %v1577_v24, 0.0  ;;  %3298 = vmatmul.mubr.bf16.gmra.mrb[148].mxu0 %v6159_v36  ;;  %4004 = vmatmul.mubr.bf16.gmra.mrb[148].mxu1 %v6159_v36 }
 0x29b   :  { %v2147_v62 = vpack.c.bf16 %v1851_v51, %v1847_v57  ;;  %v2149_v60 = vpack.c.bf16 %v1853_v38, %v1849_v32  ;;  %3307 = vmatprep.mubr.bf16.mxu0 %v6160_v18  ;;  %4013 = vmatprep.mubr.bf16.mxu1 %v6160_v18  ;;  %v6165_v32 = vld [vmem:[%s7795_s5 + $0xe0] ss:$16 sps:$4 sm:$0xff]  }
 0x29c   :  { %v2148_v15 = vpack.c.bf16 %v1852_v52, %v1848_v53  ;;  %v2150_v9 = vpack.c.bf16 %v1854_v33, %v1850_v27  ;;  %v1227_v10 = vpop.f32.mrb[88].mxu0  ;;  %v1580_v43 = vpop.f32.mrb[88].mxu1  ;;  %v6166_v52 = vld [vmem:[%s7795_s5 + $0x104] ss:$16 sps:$4 sm:$0xff]  }
 0x29d   :  { %v1228_v41 = vadd.f32 %v1227_v10, %v606_v50  ;;  %v1581_v54 = vadd.f32 %v1580_v43, %v606_v50  ;;  %v1229_v30 = vpop.f32.mrb[89].mxu0  ;;  %v1582_v21 = vpop.f32.mrb[89].mxu1 }
 0x29e   :  { %v1230_v11 = vadd.f32 %v1229_v30, %v606_v50  ;;  %v1583_v46 = vadd.f32 %v1582_v21, %v606_v50  ;;  %v1231_v40 = vpop.f32.mrb[90].mxu0  ;;  %v1584_v39 = vpop.f32.mrb[90].mxu1  ;;  %3578 = vmatprep.subr.bf16.mxu0 %v2148_v15  ;;  %4284 = vmatprep.subr.bf16.mxu1 %v2150_v9 }
 0x29f   :  { %v1232_v0 = vadd.f32 %v1231_v40, %v611_v22  ;;  %v1585_v55 = vadd.f32 %v1584_v39, %v611_v22  ;;  %v1233_v7 = vpop.f32.mrb[91].mxu0  ;;  %v1586_v31 = vpop.f32.mrb[91].mxu1  ;;  %3579 = vmatpush1.bf16.msra.mxu0 %v2147_v62  ;;  %4285 = vmatpush1.bf16.msra.mxu1 %v2149_v60  ;;  %v1855_v45 = vmax.f32 %v1228_v41, 0.0  ;;  %v1857_v6 = vmax.f32 %v1581_v54, 0.0 }
 0x2a0   :  { %v1234_v14 = vadd.f32 %v1233_v7, %v611_v22  ;;  %v1587_v56 = vadd.f32 %v1586_v31, %v611_v22  ;;  %v1856_v58 = vmax.f32 %v1230_v11, 0.0  ;;  %v1858_v35 = vmax.f32 %v1583_v46, 0.0  ;;  %v631_v54 = vpop.permute.xlu0 %630  ;;  %v626_v30 = vpop.permute.xlu1 %625 }
 0x2a1   :  { %v1859_v61 = vmax.f32 %v1232_v0, 0.0  ;;  %v1861_v13 = vmax.f32 %v1585_v55, 0.0 }
 0x2a2   :  { %v1860_v25 = vmax.f32 %v1234_v14, 0.0  ;;  %v1862_v26 = vmax.f32 %v1587_v56, 0.0  ;;  %3308 = vmatmul.mubr.bf16.gmra.mrb[152].mxu0 %v6162_v49  ;;  %4014 = vmatmul.mubr.bf16.gmra.mrb[152].mxu1 %v6162_v49 }
 0x2a3   :  { %v2151_v12 = vpack.c.bf16 %v1859_v61, %v1855_v45  ;;  %v2153_v17 = vpack.c.bf16 %v1861_v13, %v1857_v6  ;;  %3317 = vmatprep.mubr.bf16.mxu0 %v6163_v8  ;;  %4023 = vmatprep.mubr.bf16.mxu1 %v6163_v8  ;;  %v6168_v6 = vld [vmem:[%s7795_s5 + $0x100] ss:$16 sps:$4 sm:$0xff]  }
 0x2a4   :  { %v2152_v44 = vpack.c.bf16 %v1860_v25, %v1856_v58  ;;  %v2154_v1 = vpack.c.bf16 %v1862_v26, %v1858_v35  ;;  %v1237_v37 = vpop.f32.mrb[92].mxu0  ;;  %v1590_v36 = vpop.f32.mrb[92].mxu1  ;;  %v6169_v25 = vld [vmem:[%s7795_s5 + $0x124] ss:$16 sps:$4 sm:$0xff]  }
 0x2a5   :  { %v1238_v48 = vadd.f32 %v1237_v37, %v616_v34  ;;  %v1591_v19 = vadd.f32 %v1590_v36, %v616_v34  ;;  %v1239_v16 = vpop.f32.mrb[93].mxu0  ;;  %v1592_v29 = vpop.f32.mrb[93].mxu1 }
 0x2a6   :  { %v1240_v18 = vadd.f32 %v1239_v16, %v616_v34  ;;  %v1593_v20 = vadd.f32 %v1592_v29, %v616_v34  ;;  %v1241_v24 = vpop.f32.mrb[94].mxu0  ;;  %v1594_v57 = vpop.f32.mrb[94].mxu1  ;;  %3580 = vmatprep.subr.bf16.mxu0 %v2152_v44  ;;  %4286 = vmatprep.subr.bf16.mxu1 %v2154_v1 }
 0x2a7   :  { %v1242_v51 = vadd.f32 %v1241_v24, %v621_v59  ;;  %v1595_v38 = vadd.f32 %v1594_v57, %v621_v59  ;;  %v1243_v53 = vpop.f32.mrb[95].mxu0  ;;  %v1596_v27 = vpop.f32.mrb[95].mxu1  ;;  %3581 = vmatpush1.bf16.msra.mxu0 %v2151_v12  ;;  %4287 = vmatpush1.bf16.msra.mxu1 %v2153_v17  ;;  %v1863_v50 = vmax.f32 %v1238_v48, 0.0  ;;  %v1865_v62 = vmax.f32 %v1591_v19, 0.0 }
 0x2a8   :  { %v1244_v33 = vadd.f32 %v1243_v53, %v621_v59  ;;  %v1597_v22 = vadd.f32 %v1596_v27, %v621_v59  ;;  %v1864_v9 = vmax.f32 %v1240_v18, 0.0  ;;  %v1866_v10 = vmax.f32 %v1593_v20, 0.0  ;;  %v641_v19 = vpop.permute.xlu0 %640  ;;  %v636_v16 = vpop.permute.xlu1 %635 }
 0x2a9   :  { %v1867_v60 = vmax.f32 %v1242_v51, 0.0  ;;  %v1869_v15 = vmax.f32 %v1595_v38, 0.0 }
 0x2aa   :  { %v1868_v43 = vmax.f32 %v1244_v33, 0.0  ;;  %v1870_v41 = vmax.f32 %v1597_v22, 0.0  ;;  %3318 = vmatmul.mubr.bf16.gmra.mrb[156].mxu0 %v6165_v32  ;;  %4024 = vmatmul.mubr.bf16.gmra.mrb[156].mxu1 %v6165_v32 }
 0x2ab   :  { %v2155_v21 = vpack.c.bf16 %v1867_v60, %v1863_v50  ;;  %v2157_v11 = vpack.c.bf16 %v1869_v15, %v1865_v62  ;;  %3327 = vmatprep.mubr.bf16.mxu0 %v6166_v52  ;;  %4033 = vmatprep.mubr.bf16.mxu1 %v6166_v52  ;;  %v6171_v62 = vld [vmem:[%s7795_s5 + $0x120] ss:$16 sps:$4 sm:$0xff]  }
 0x2ac   :  { %v2156_v46 = vpack.c.bf16 %v1868_v43, %v1864_v9  ;;  %v2158_v40 = vpack.c.bf16 %v1870_v41, %v1866_v10  ;;  %v1247_v39 = vpop.f32.mrb[96].mxu0  ;;  %v1600_v49 = vpop.f32.mrb[96].mxu1  ;;  %v6172_v43 = vld [vmem:[%s7795_s5 + $0x144] ss:$16 sps:$4 sm:$0xff]  }
 0x2ad   :  { %v1248_v0 = vadd.f32 %v1247_v39, %v626_v30  ;;  %v1601_v55 = vadd.f32 %v1600_v49, %v626_v30  ;;  %v1249_v7 = vpop.f32.mrb[97].mxu0  ;;  %v1602_v31 = vpop.f32.mrb[97].mxu1 }
 0x2ae   :  { %v1250_v8 = vadd.f32 %v1249_v7, %v626_v30  ;;  %v1603_v14 = vadd.f32 %v1602_v31, %v626_v30  ;;  %v1251_v56 = vpop.f32.mrb[98].mxu0  ;;  %v1604_v45 = vpop.f32.mrb[98].mxu1  ;;  %3582 = vmatprep.subr.bf16.mxu0 %v2156_v46  ;;  %4288 = vmatprep.subr.bf16.mxu1 %v2158_v40 }
 0x2af   :  { %v1252_v61 = vadd.f32 %v1251_v56, %v631_v54  ;;  %v1605_v13 = vadd.f32 %v1604_v45, %v631_v54  ;;  %v1253_v58 = vpop.f32.mrb[99].mxu0  ;;  %v1606_v35 = vpop.f32.mrb[99].mxu1  ;;  %3583 = vmatpush1.bf16.msra.mxu0 %v2155_v21  ;;  %4289 = vmatpush1.bf16.msra.mxu1 %v2157_v11  ;;  %v1871_v34 = vmax.f32 %v1248_v0, 0.0  ;;  %v1873_v12 = vmax.f32 %v1601_v55, 0.0 }
 0x2b0   :  { %v1254_v26 = vadd.f32 %v1253_v58, %v631_v54  ;;  %v1607_v59 = vadd.f32 %v1606_v35, %v631_v54  ;;  %v1872_v1 = vmax.f32 %v1250_v8, 0.0  ;;  %v1874_v37 = vmax.f32 %v1603_v14, 0.0  ;;  %v651_v55 = vpop.permute.xlu0 %650  ;;  %v646_v7 = vpop.permute.xlu1 %645 }
 0x2b1   :  { %v1875_v17 = vmax.f32 %v1252_v61, 0.0  ;;  %v1877_v44 = vmax.f32 %v1605_v13, 0.0 }
 0x2b2   :  { %v1876_v36 = vmax.f32 %v1254_v26, 0.0  ;;  %v1878_v48 = vmax.f32 %v1607_v59, 0.0  ;;  %3328 = vmatmul.mubr.bf16.gmra.mrb[160].mxu0 %v6168_v6  ;;  %4034 = vmatmul.mubr.bf16.gmra.mrb[160].mxu1 %v6168_v6 }
 0x2b3   :  { %v2159_v29 = vpack.c.bf16 %v1875_v17, %v1871_v34  ;;  %v2161_v18 = vpack.c.bf16 %v1877_v44, %v1873_v12  ;;  %3337 = vmatprep.mubr.bf16.mxu0 %v6169_v25  ;;  %4043 = vmatprep.mubr.bf16.mxu1 %v6169_v25  ;;  %v6174_v12 = vld [vmem:[%s7795_s5 + $0x140] ss:$16 sps:$4 sm:$0xff]  }
 0x2b4   :  { %v2160_v20 = vpack.c.bf16 %v1876_v36, %v1872_v1  ;;  %v2162_v24 = vpack.c.bf16 %v1878_v48, %v1874_v37  ;;  %v1257_v57 = vpop.f32.mrb[100].mxu0  ;;  %v1610_v32 = vpop.f32.mrb[100].mxu1  ;;  %v6175_v36 = vld [vmem:[%s7795_s5 + $0x164] ss:$16 sps:$4 sm:$0xff]  }
 0x2b5   :  { %v1258_v51 = vadd.f32 %v1257_v57, %v636_v16  ;;  %v1611_v38 = vadd.f32 %v1610_v32, %v636_v16  ;;  %v1259_v53 = vpop.f32.mrb[101].mxu0  ;;  %v1612_v27 = vpop.f32.mrb[101].mxu1 }
 0x2b6   :  { %v1260_v52 = vadd.f32 %v1259_v53, %v636_v16  ;;  %v1613_v33 = vadd.f32 %v1612_v27, %v636_v16  ;;  %v1261_v22 = vpop.f32.mrb[102].mxu0  ;;  %v1614_v50 = vpop.f32.mrb[102].mxu1  ;;  %3584 = vmatprep.subr.bf16.mxu0 %v2160_v20  ;;  %4290 = vmatprep.subr.bf16.mxu1 %v2162_v24 }
 0x2b7   :  { %v1262_v60 = vadd.f32 %v1261_v22, %v641_v19  ;;  %v1615_v15 = vadd.f32 %v1614_v50, %v641_v19  ;;  %v1263_v9 = vpop.f32.mrb[103].mxu0  ;;  %v1616_v10 = vpop.f32.mrb[103].mxu1  ;;  %3585 = vmatpush1.bf16.msra.mxu0 %v2159_v29  ;;  %4291 = vmatpush1.bf16.msra.mxu1 %v2161_v18  ;;  %v1879_v30 = vmax.f32 %v1258_v51, 0.0  ;;  %v1881_v21 = vmax.f32 %v1611_v38, 0.0 }
 0x2b8   :  { %v1264_v41 = vadd.f32 %v1263_v9, %v641_v19  ;;  %v1617_v54 = vadd.f32 %v1616_v10, %v641_v19  ;;  %v1880_v40 = vmax.f32 %v1260_v52, 0.0  ;;  %v1882_v39 = vmax.f32 %v1613_v33, 0.0  ;;  %v661_v38 = vpop.permute.xlu0 %660  ;;  %v656_v53 = vpop.permute.xlu1 %655 }
 0x2b9   :  { %v1883_v11 = vmax.f32 %v1262_v60, 0.0  ;;  %v1885_v46 = vmax.f32 %v1615_v15, 0.0 }
 0x2ba   :  { %v1884_v49 = vmax.f32 %v1264_v41, 0.0  ;;  %v1886_v0 = vmax.f32 %v1617_v54, 0.0  ;;  %3338 = vmatmul.mubr.bf16.gmra.mrb[164].mxu0 %v6171_v62  ;;  %4044 = vmatmul.mubr.bf16.gmra.mrb[164].mxu1 %v6171_v62 }
 0x2bb   :  { %v2163_v31 = vpack.c.bf16 %v1883_v11, %v1879_v30  ;;  %v2165_v8 = vpack.c.bf16 %v1885_v46, %v1881_v21  ;;  %3347 = vmatprep.mubr.bf16.mxu0 %v6172_v43  ;;  %4053 = vmatprep.mubr.bf16.mxu1 %v6172_v43  ;;  %v6177_v21 = vld [vmem:[%s7795_s5 + $0x160] ss:$16 sps:$4 sm:$0xff]  }
 0x2bc   :  { %v2164_v14 = vpack.c.bf16 %v1884_v49, %v1880_v40  ;;  %v2166_v56 = vpack.c.bf16 %v1886_v0, %v1882_v39  ;;  %v1267_v45 = vpop.f32.mrb[104].mxu0  ;;  %v1620_v6 = vpop.f32.mrb[104].mxu1  ;;  %v6178_v49 = vld [vmem:[%s7795_s5 + $0x184] ss:$16 sps:$4 sm:$0xff]  }
 0x2bd   :  { %v1268_v61 = vadd.f32 %v1267_v45, %v646_v7  ;;  %v1621_v13 = vadd.f32 %v1620_v6, %v646_v7  ;;  %v1269_v58 = vpop.f32.mrb[105].mxu0  ;;  %v1622_v35 = vpop.f32.mrb[105].mxu1 }
 0x2be   :  { %v1270_v25 = vadd.f32 %v1269_v58, %v646_v7  ;;  %v1623_v26 = vadd.f32 %v1622_v35, %v646_v7  ;;  %v1271_v59 = vpop.f32.mrb[106].mxu0  ;;  %v1624_v34 = vpop.f32.mrb[106].mxu1  ;;  %3586 = vmatprep.subr.bf16.mxu0 %v2164_v14  ;;  %4292 = vmatprep.subr.bf16.mxu1 %v2166_v56 }
 0x2bf   :  { %v1272_v17 = vadd.f32 %v1271_v59, %v651_v55  ;;  %v1625_v44 = vadd.f32 %v1624_v34, %v651_v55  ;;  %v1273_v1 = vpop.f32.mrb[107].mxu0  ;;  %v1626_v37 = vpop.f32.mrb[107].mxu1  ;;  %3587 = vmatpush1.bf16.msra.mxu0 %v2163_v31  ;;  %4293 = vmatpush1.bf16.msra.mxu1 %v2165_v8  ;;  %v1887_v16 = vmax.f32 %v1268_v61, 0.0  ;;  %v1889_v29 = vmax.f32 %v1621_v13, 0.0 }
 0x2c0   :  { %v1274_v48 = vadd.f32 %v1273_v1, %v651_v55  ;;  %v1627_v19 = vadd.f32 %v1626_v37, %v651_v55  ;;  %v1888_v24 = vmax.f32 %v1270_v25, 0.0  ;;  %v1890_v57 = vmax.f32 %v1623_v26, 0.0  ;;  %v671_v13 = vpop.permute.xlu0 %670  ;;  %v666_v58 = vpop.permute.xlu1 %665 }
 0x2c1   :  { %v1891_v18 = vmax.f32 %v1272_v17, 0.0  ;;  %v1893_v20 = vmax.f32 %v1625_v44, 0.0 }
 0x2c2   :  { %v1892_v32 = vmax.f32 %v1274_v48, 0.0  ;;  %v1894_v51 = vmax.f32 %v1627_v19, 0.0  ;;  %3348 = vmatmul.mubr.bf16.gmra.mrb[168].mxu0 %v6174_v12  ;;  %4054 = vmatmul.mubr.bf16.gmra.mrb[168].mxu1 %v6174_v12 }
 0x2c3   :  { %v2167_v27 = vpack.c.bf16 %v1891_v18, %v1887_v16  ;;  %v2169_v52 = vpack.c.bf16 %v1893_v20, %v1889_v29  ;;  %3357 = vmatprep.mubr.bf16.mxu0 %v6175_v36  ;;  %4063 = vmatprep.mubr.bf16.mxu1 %v6175_v36  ;;  %v6180_v29 = vld [vmem:[%s7795_s5 + $0x180] ss:$16 sps:$4 sm:$0xff]  }
 0x2c4   :  { %v2168_v33 = vpack.c.bf16 %v1892_v32, %v1888_v24  ;;  %v2170_v22 = vpack.c.bf16 %v1894_v51, %v1890_v57  ;;  %v1277_v50 = vpop.f32.mrb[108].mxu0  ;;  %v1630_v62 = vpop.f32.mrb[108].mxu1  ;;  %v6181_v32 = vld [vmem:[%s7795_s5 + $0x1a4] ss:$16 sps:$4 sm:$0xff]  }
 0x2c5   :  { %v1278_v60 = vadd.f32 %v1277_v50, %v656_v53  ;;  %v1631_v15 = vadd.f32 %v1630_v62, %v656_v53  ;;  %v1279_v9 = vpop.f32.mrb[109].mxu0  ;;  %v1632_v10 = vpop.f32.mrb[109].mxu1 }
 0x2c6   :  { %v1280_v43 = vadd.f32 %v1279_v9, %v656_v53  ;;  %v1633_v41 = vadd.f32 %v1632_v10, %v656_v53  ;;  %v1281_v54 = vpop.f32.mrb[110].mxu0  ;;  %v1634_v30 = vpop.f32.mrb[110].mxu1  ;;  %3588 = vmatprep.subr.bf16.mxu0 %v2168_v33  ;;  %4294 = vmatprep.subr.bf16.mxu1 %v2170_v22 }
 0x2c7   :  { %v1282_v11 = vadd.f32 %v1281_v54, %v661_v38  ;;  %v1635_v46 = vadd.f32 %v1634_v30, %v661_v38  ;;  %v1283_v40 = vpop.f32.mrb[111].mxu0  ;;  %v1636_v39 = vpop.f32.mrb[111].mxu1  ;;  %3589 = vmatpush1.bf16.msra.mxu0 %v2167_v27  ;;  %4295 = vmatpush1.bf16.msra.mxu1 %v2169_v52  ;;  %v1895_v7 = vmax.f32 %v1278_v60, 0.0  ;;  %v1897_v31 = vmax.f32 %v1631_v15, 0.0 }
 0x2c8   :  { %v1284_v0 = vadd.f32 %v1283_v40, %v661_v38  ;;  %v1637_v55 = vadd.f32 %v1636_v39, %v661_v38  ;;  %v1896_v56 = vmax.f32 %v1280_v43, 0.0  ;;  %v1898_v45 = vmax.f32 %v1633_v41, 0.0  ;;  %v681_v15 = vpop.permute.xlu0 %680  ;;  %v676_v9 = vpop.permute.xlu1 %675 }
 0x2c9   :  { %v1899_v8 = vmax.f32 %v1282_v11, 0.0  ;;  %v1901_v14 = vmax.f32 %v1635_v46, 0.0 }
 0x2ca   :  { %v1900_v6 = vmax.f32 %v1284_v0, 0.0  ;;  %v1902_v61 = vmax.f32 %v1637_v55, 0.0  ;;  %3358 = vmatmul.mubr.bf16.gmra.mrb[172].mxu0 %v6177_v21  ;;  %4064 = vmatmul.mubr.bf16.gmra.mrb[172].mxu1 %v6177_v21 }
 0x2cb   :  { %v2171_v35 = vpack.c.bf16 %v1899_v8, %v1895_v7  ;;  %v2173_v25 = vpack.c.bf16 %v1901_v14, %v1897_v31  ;;  %3367 = vmatprep.mubr.bf16.mxu0 %v6178_v49  ;;  %4073 = vmatprep.mubr.bf16.mxu1 %v6178_v49  ;;  %v6183_v31 = vld [vmem:[%s7795_s5 + $0x1a0] ss:$16 sps:$4 sm:$0xff]  }
 0x2cc   :  { %v2172_v26 = vpack.c.bf16 %v1900_v6, %v1896_v56  ;;  %v2174_v59 = vpack.c.bf16 %v1902_v61, %v1898_v45  ;;  %v1287_v34 = vpop.f32.mrb[112].mxu0  ;;  %v1640_v12 = vpop.f32.mrb[112].mxu1  ;;  %v6184_v6 = vld [vmem:[%s7795_s5 + $0x1c4] ss:$16 sps:$4 sm:$0xff]  }
 0x2cd   :  { %v1288_v17 = vadd.f32 %v1287_v34, %v666_v58  ;;  %v1641_v44 = vadd.f32 %v1640_v12, %v666_v58  ;;  %v1289_v1 = vpop.f32.mrb[113].mxu0  ;;  %v1642_v37 = vpop.f32.mrb[113].mxu1 }
 0x2ce   :  { %v1290_v36 = vadd.f32 %v1289_v1, %v666_v58  ;;  %v1643_v48 = vadd.f32 %v1642_v37, %v666_v58  ;;  %v1291_v19 = vpop.f32.mrb[114].mxu0  ;;  %v1644_v16 = vpop.f32.mrb[114].mxu1  ;;  %3590 = vmatprep.subr.bf16.mxu0 %v2172_v26  ;;  %4296 = vmatprep.subr.bf16.mxu1 %v2174_v59 }
 0x2cf   :  { %v1292_v18 = vadd.f32 %v1291_v19, %v671_v13  ;;  %v1645_v20 = vadd.f32 %v1644_v16, %v671_v13  ;;  %v1293_v24 = vpop.f32.mrb[115].mxu0  ;;  %v1646_v57 = vpop.f32.mrb[115].mxu1  ;;  %3591 = vmatpush1.bf16.msra.mxu0 %v2171_v35  ;;  %4297 = vmatpush1.bf16.msra.mxu1 %v2173_v25  ;;  %v1903_v53 = vmax.f32 %v1288_v17, 0.0  ;;  %v1905_v27 = vmax.f32 %v1641_v44, 0.0 }
 0x2d0   :  { %v1294_v51 = vadd.f32 %v1293_v24, %v671_v13  ;;  %v1647_v38 = vadd.f32 %v1646_v57, %v671_v13  ;;  %v1904_v22 = vmax.f32 %v1290_v36, 0.0  ;;  %v1906_v50 = vmax.f32 %v1643_v48, 0.0  ;;  %v691_v44 = vpop.permute.xlu0 %690  ;;  %v686_v1 = vpop.permute.xlu1 %685 }
 0x2d1   :  { %v1907_v52 = vmax.f32 %v1292_v18, 0.0  ;;  %v1909_v33 = vmax.f32 %v1645_v20, 0.0 }
 0x2d2   :  { %v1908_v62 = vmax.f32 %v1294_v51, 0.0  ;;  %v1910_v60 = vmax.f32 %v1647_v38, 0.0  ;;  %3368 = vmatmul.mubr.bf16.gmra.mrb[176].mxu0 %v6180_v29  ;;  %4074 = vmatmul.mubr.bf16.gmra.mrb[176].mxu1 %v6180_v29 }
 0x2d3   :  { %v2175_v10 = vpack.c.bf16 %v1907_v52, %v1903_v53  ;;  %v2177_v43 = vpack.c.bf16 %v1909_v33, %v1905_v27  ;;  %3377 = vmatprep.mubr.bf16.mxu0 %v6181_v32  ;;  %4083 = vmatprep.mubr.bf16.mxu1 %v6181_v32  ;;  %v6186_v27 = vld [vmem:[%s7795_s5 + $0x1c0] ss:$16 sps:$4 sm:$0xff]  }
 0x2d4   :  { %v2176_v41 = vpack.c.bf16 %v1908_v62, %v1904_v22  ;;  %v2178_v54 = vpack.c.bf16 %v1910_v60, %v1906_v50  ;;  %v1297_v30 = vpop.f32.mrb[116].mxu0  ;;  %v1650_v21 = vpop.f32.mrb[116].mxu1  ;;  %v6187_v62 = vld [vmem:[%s7795_s5 + $0x1e4] ss:$16 sps:$4 sm:$0xff]  }
 0x2d5   :  { %v1298_v11 = vadd.f32 %v1297_v30, %v676_v9  ;;  %v1651_v46 = vadd.f32 %v1650_v21, %v676_v9  ;;  %v1299_v40 = vpop.f32.mrb[117].mxu0  ;;  %v1652_v39 = vpop.f32.mrb[117].mxu1 }
 0x2d6   :  { %v1300_v49 = vadd.f32 %v1299_v40, %v676_v9  ;;  %v1653_v0 = vadd.f32 %v1652_v39, %v676_v9  ;;  %v1301_v55 = vpop.f32.mrb[118].mxu0  ;;  %v1654_v7 = vpop.f32.mrb[118].mxu1  ;;  %3592 = vmatprep.subr.bf16.mxu0 %v2176_v41  ;;  %4298 = vmatprep.subr.bf16.mxu1 %v2178_v54 }
 0x2d7   :  { %v1302_v8 = vadd.f32 %v1301_v55, %v681_v15  ;;  %v1655_v14 = vadd.f32 %v1654_v7, %v681_v15  ;;  %v1303_v56 = vpop.f32.mrb[119].mxu0  ;;  %v1656_v45 = vpop.f32.mrb[119].mxu1  ;;  %3593 = vmatpush1.bf16.msra.mxu0 %v2175_v10  ;;  %4299 = vmatpush1.bf16.msra.mxu1 %v2177_v43  ;;  %v1911_v58 = vmax.f32 %v1298_v11, 0.0  ;;  %v1913_v35 = vmax.f32 %v1651_v46, 0.0 }
 0x2d8   :  { %v1304_v61 = vadd.f32 %v1303_v56, %v681_v15  ;;  %v1657_v13 = vadd.f32 %v1656_v45, %v681_v15  ;;  %v1912_v59 = vmax.f32 %v1300_v49, 0.0  ;;  %v1914_v34 = vmax.f32 %v1653_v0, 0.0  ;;  %v701_v46 = vpop.permute.xlu0 %700  ;;  %v696_v40 = vpop.permute.xlu1 %695 }
 0x2d9   :  { %v1915_v25 = vmax.f32 %v1302_v8, 0.0  ;;  %v1917_v26 = vmax.f32 %v1655_v14, 0.0 }
 0x2da   :  { %v1916_v12 = vmax.f32 %v1304_v61, 0.0  ;;  %v1918_v17 = vmax.f32 %v1657_v13, 0.0  ;;  %3378 = vmatmul.mubr.bf16.gmra.mrb[180].mxu0 %v6183_v31  ;;  %4084 = vmatmul.mubr.bf16.gmra.mrb[180].mxu1 %v6183_v31 }
 0x2db   :  { %v2179_v37 = vpack.c.bf16 %v1915_v25, %v1911_v58  ;;  %v2181_v36 = vpack.c.bf16 %v1917_v26, %v1913_v35  ;;  %3387 = vmatprep.mubr.bf16.mxu0 %v6184_v6  ;;  %4093 = vmatprep.mubr.bf16.mxu1 %v6184_v6  ;;  %v6189_v35 = vld [vmem:[%s7795_s5 + $0x1e0] ss:$16 sps:$4 sm:$0xff]  }
 0x2dc   :  { %v2180_v48 = vpack.c.bf16 %v1916_v12, %v1912_v59  ;;  %v2182_v19 = vpack.c.bf16 %v1918_v17, %v1914_v34  ;;  %v1307_v16 = vpop.f32.mrb[120].mxu0  ;;  %v1660_v29 = vpop.f32.mrb[120].mxu1  ;;  %v6190_v12 = vld [vmem:[%s7795_s5 + $0x204] ss:$16 sps:$4 sm:$0xff]  }
 0x2dd   :  { %v1308_v18 = vadd.f32 %v1307_v16, %v686_v1  ;;  %v1661_v20 = vadd.f32 %v1660_v29, %v686_v1  ;;  %v1309_v24 = vpop.f32.mrb[121].mxu0  ;;  %v1662_v57 = vpop.f32.mrb[121].mxu1 }
 0x2de   :  { %v1310_v32 = vadd.f32 %v1309_v24, %v686_v1  ;;  %v1663_v51 = vadd.f32 %v1662_v57, %v686_v1  ;;  %v1311_v38 = vpop.f32.mrb[122].mxu0  ;;  %v1664_v53 = vpop.f32.mrb[122].mxu1  ;;  %3594 = vmatprep.subr.bf16.mxu0 %v2180_v48  ;;  %4300 = vmatprep.subr.bf16.mxu1 %v2182_v19 }
 0x2df   :  { %v1312_v52 = vadd.f32 %v1311_v38, %v691_v44  ;;  %v1665_v33 = vadd.f32 %v1664_v53, %v691_v44  ;;  %v1313_v22 = vpop.f32.mrb[123].mxu0  ;;  %v1666_v50 = vpop.f32.mrb[123].mxu1  ;;  %3595 = vmatpush1.bf16.msra.mxu0 %v2179_v37  ;;  %4301 = vmatpush1.bf16.msra.mxu1 %v2181_v36  ;;  %v1919_v9 = vmax.f32 %v1308_v18, 0.0  ;;  %v1921_v10 = vmax.f32 %v1661_v20, 0.0  ;;  %v6193_v38 = vld [vmem:[%s7795_s5 + $0x224] ss:$16 sps:$4 sm:$0xff]  }
 0x2e0   :  { %v1314_v60 = vadd.f32 %v1313_v22, %v691_v44  ;;  %v1667_v15 = vadd.f32 %v1666_v50, %v691_v44  ;;  %v1920_v54 = vmax.f32 %v1310_v32, 0.0  ;;  %v1922_v30 = vmax.f32 %v1663_v51, 0.0  ;;  %v6192_v51 = vld [vmem:[%s7795_s5 + $0x200] ss:$16 sps:$4 sm:$0xff]   ;;  %v6202_v50 = vld [vmem:[%s7795_s5 + $0x284] ss:$16 sps:$4 sm:$0xff]  }
 0x2e1   :  { %v1923_v43 = vmax.f32 %v1312_v52, 0.0  ;;  %v1925_v41 = vmax.f32 %v1665_v33, 0.0  ;;  %v6195_v53 = vld [vmem:[%s7795_s5 + $0x220] ss:$16 sps:$4 sm:$0xff]   ;;  %v6199_v33 = vld [vmem:[%s7795_s5 + $0x264] ss:$16 sps:$4 sm:$0xff]  }
 0x2e2   :  { %v1924_v21 = vmax.f32 %v1314_v60, 0.0  ;;  %v1926_v11 = vmax.f32 %v1667_v15, 0.0  ;;  %3388 = vmatmul.mubr.bf16.gmra.mrb[184].mxu0 %v6186_v27  ;;  %4094 = vmatmul.mubr.bf16.gmra.mrb[184].mxu1 %v6186_v27  ;;  %v6196_v27 = vld [vmem:[%s7795_s5 + $0x244] ss:$16 sps:$4 sm:$0xff]   ;;  %v6198_v52 = vld [vmem:[%s7795_s5 + $0x240] ss:$16 sps:$4 sm:$0xff]  }
 0x2e3   :  { %v2183_v39 = vpack.c.bf16 %v1923_v43, %v1919_v9  ;;  %v2185_v49 = vpack.c.bf16 %v1925_v41, %v1921_v10  ;;  %3397 = vmatprep.mubr.bf16.mxu0 %v6187_v62  ;;  %4103 = vmatprep.mubr.bf16.mxu1 %v6187_v62  ;;  %v6201_v22 = vld [vmem:[%s7795_s5 + $0x260] ss:$16 sps:$4 sm:$0xff]   ;;  %v6205_v60 = vld [vmem:[%s7795_s5 + $0x2a4] ss:$16 sps:$4 sm:$0xff]  }
 0x2e4   :  { %v2184_v0 = vpack.c.bf16 %v1924_v21, %v1920_v54  ;;  %v2186_v55 = vpack.c.bf16 %v1926_v11, %v1922_v30  ;;  %v1317_v7 = vpop.f32.mrb[124].mxu0  ;;  %v1670_v31 = vpop.f32.mrb[124].mxu1  ;;  %v6204_v62 = vld [vmem:[%s7795_s5 + $0x280] ss:$16 sps:$4 sm:$0xff]   ;;  %v6208_v9 = vld [vmem:[%s7795_s5 + $0x2c4] ss:$16 sps:$4 sm:$0xff]  }
 0x2e5   :  { %v1318_v8 = vadd.f32 %v1317_v7, %v696_v40  ;;  %v1671_v14 = vadd.f32 %v1670_v31, %v696_v40  ;;  %v1319_v56 = vpop.f32.mrb[125].mxu0  ;;  %v1672_v45 = vpop.f32.mrb[125].mxu1  ;;  %v6207_v15 = vld [vmem:[%s7795_s5 + $0x2a0] ss:$16 sps:$4 sm:$0xff]   ;;  %v6211_v43 = vld [vmem:[%s7795_s5 + $0x2e4] ss:$16 sps:$4 sm:$0xff]  }
 0x2e6   :  { %v1320_v6 = vadd.f32 %v1319_v56, %v696_v40  ;;  %v1673_v61 = vadd.f32 %v1672_v45, %v696_v40  ;;  %v1321_v13 = vpop.f32.mrb[126].mxu0  ;;  %v1674_v58 = vpop.f32.mrb[126].mxu1  ;;  %3596 = vmatprep.subr.bf16.mxu0 %v2184_v0  ;;  %4302 = vmatprep.subr.bf16.mxu1 %v2186_v55  ;;  %v6210_v10 = vld [vmem:[%s7795_s5 + $0x2c0] ss:$16 sps:$4 sm:$0xff]   ;;  %v6214_v54 = vld [vmem:[%s7795_s5 + $0x304] ss:$16 sps:$4 sm:$0xff]  }
 0x2e7   :  { %v1322_v25 = vadd.f32 %v1321_v13, %v701_v46  ;;  %v1675_v26 = vadd.f32 %v1674_v58, %v701_v46  ;;  %v1323_v59 = vpop.f32.mrb[127].mxu0  ;;  %v1676_v34 = vpop.f32.mrb[127].mxu1  ;;  %3597 = vmatpush1.bf16.msra.mxu0 %v2183_v39  ;;  %4303 = vmatpush1.bf16.msra.mxu1 %v2185_v49  ;;  %v1927_v1 = vmax.f32 %v1318_v8, 0.0  ;;  %v1929_v37 = vmax.f32 %v1671_v14, 0.0  ;;  %v6213_v41 = vld [vmem:[%s7795_s5 + $0x2e0] ss:$16 sps:$4 sm:$0xff]  }
 0x2e8   :  { %v1324_v17 = vadd.f32 %v1323_v59, %v701_v46  ;;  %v1677_v44 = vadd.f32 %v1676_v34, %v701_v46  ;;  %v1928_v19 = vmax.f32 %v1320_v6, 0.0  ;;  %v1930_v16 = vmax.f32 %v1673_v61, 0.0  ;;  %v6216_v30 = vld [vmem:[%s7795_s5 + $0x300] ss:$16 sps:$4 sm:$0xff]   ;;  %v6217_v21 = vld [vmem:[%s7795_s5 + $0x324] ss:$16 sps:$4 sm:$0xff]  }
 0x2e9   :  { %v1931_v36 = vmax.f32 %v1322_v25, 0.0  ;;  %v1933_v48 = vmax.f32 %v1675_v26, 0.0  ;;  %v6219_v11 = vld [vmem:[%s7795_s5 + $0x320] ss:$16 sps:$4 sm:$0xff]   ;;  %v6220_v46 = vld [vmem:[%s7795_s5 + $0x344] ss:$16 sps:$4 sm:$0xff]  }
 0x2ea   :  { %v1932_v29 = vmax.f32 %v1324_v17, 0.0  ;;  %v1934_v18 = vmax.f32 %v1677_v44, 0.0  ;;  %3398 = vmatmul.mubr.bf16.gmra.mrb[188].mxu0 %v6189_v35  ;;  %4104 = vmatmul.mubr.bf16.gmra.mrb[188].mxu1 %v6189_v35  ;;  %v6222_v40 = vld [vmem:[%s7795_s5 + $0x340] ss:$16 sps:$4 sm:$0xff]   ;;  %v6223_v39 = vld [vmem:[%s7795_s5 + $0x364] ss:$16 sps:$4 sm:$0xff]  }
 0x2eb   :  { %v2187_v20 = vpack.c.bf16 %v1931_v36, %v1927_v1  ;;  %v2189_v24 = vpack.c.bf16 %v1933_v48, %v1929_v37  ;;  %3407 = vmatprep.mubr.bf16.mxu0 %v6190_v12  ;;  %4113 = vmatprep.mubr.bf16.mxu1 %v6190_v12  ;;  %v6225_v49 = vld [vmem:[%s7795_s5 + $0x360] ss:$16 sps:$4 sm:$0xff]   ;;  %v6226_v0 = vld [vmem:[%s7795_s5 + $0x384] ss:$16 sps:$4 sm:$0xff]   ;;  %v6240_v6 = vld [vmem:[%s7795_s5 + $0xc] ss:$16 sps:$4 sm:$0xff]  }
 0x2ec   :  { %v2188_v57 = vpack.c.bf16 %v1932_v29, %v1928_v19  ;;  %v2190_v32 = vpack.c.bf16 %v1934_v18, %v1930_v16  ;;  %v6228_v55 = vld [vmem:[%s7795_s5 + $0x380] ss:$16 sps:$4 sm:$0xff]   ;;  %v6229_v7 = vld [vmem:[%s7795_s5 + $0x3a4] ss:$16 sps:$4 sm:$0xff]   ;;  %v6238_v61 = vld [vmem:[%s7795_s5 + $0x8] ss:$16 sps:$4 sm:$0xff]  }
 0x2ed   :  { %v6231_v31 = vld [vmem:[%s7795_s5 + $0x3a0] ss:$16 sps:$4 sm:$0xff]   ;;  %v6232_v8 = vld [vmem:[%s7795_s5 + $0x3c4] ss:$16 sps:$4 sm:$0xff]   ;;  %v6241_v13 = vld [vmem:[%s7795_s5 + $0x2c] ss:$16 sps:$4 sm:$0xff]  }
 0x2ee   :  { %3598 = vmatprep.subr.bf16.mxu0 %v2188_v57  ;;  %4304 = vmatprep.subr.bf16.mxu1 %v2190_v32  ;;  %v6234_v14 = vld [vmem:[%s7795_s5 + $0x3c0] ss:$16 sps:$4 sm:$0xff]   ;;  %v6235_v56 = vld [vmem:[%s7795_s5 + $0x3e4] ss:$16 sps:$4 sm:$0xff]   ;;  %v6243_v58 = vld [vmem:[%s7795_s5 + $0x28] ss:$16 sps:$4 sm:$0xff]  }
 0x2ef   :  { %3599 = vmatpush1.bf16.msra.mxu0 %v2187_v20  ;;  %4305 = vmatpush1.bf16.msra.mxu1 %v2189_v24  ;;  %v6237_v45 = vld [vmem:[%s7795_s5 + $0x3e0] ss:$16 sps:$4 sm:$0xff]   ;;  %v6244_v35 = vld [vmem:[%s7795_s5 + $0x4c] ss:$16 sps:$4 sm:$0xff]   ;;  %v6246_v25 = vld [vmem:[%s7795_s5 + $0x48] ss:$16 sps:$4 sm:$0xff]  }
 0x2f0   :  { %v6247_v26 = vld [vmem:[%s7795_s5 + $0x6c] ss:$16 sps:$4 sm:$0xff]   ;;  %v6249_v59 = vld [vmem:[%s7795_s5 + $0x68] ss:$16 sps:$4 sm:$0xff]  }
 0x2f1   :  { %v6250_v34 = vld [vmem:[%s7795_s5 + $0x8c] ss:$16 sps:$4 sm:$0xff]   ;;  %v6252_v12 = vld [vmem:[%s7795_s5 + $0x88] ss:$16 sps:$4 sm:$0xff]  }
 0x2f2   :  { %3408 = vmatmul.mubr.bf16.gmra.mrb[192].mxu0 %v6192_v51  ;;  %4114 = vmatmul.mubr.bf16.gmra.mrb[192].mxu1 %v6192_v51  ;;  %v6253_v17 = vld [vmem:[%s7795_s5 + $0xac] ss:$16 sps:$4 sm:$0xff]   ;;  %v6255_v44 = vld [vmem:[%s7795_s5 + $0xa8] ss:$16 sps:$4 sm:$0xff]  }
 0x2f3   :  { %3417 = vmatprep.mubr.bf16.mxu0 %v6193_v38  ;;  %4123 = vmatprep.mubr.bf16.mxu1 %v6193_v38  ;;  %v6256_v1 = vld [vmem:[%s7795_s5 + $0xcc] ss:$16 sps:$4 sm:$0xff]   ;;  %v6258_v37 = vld [vmem:[%s7795_s5 + $0xc8] ss:$16 sps:$4 sm:$0xff]  }
 0x2f4   :  { %v6259_v36 = vld [vmem:[%s7795_s5 + $0xec] ss:$16 sps:$4 sm:$0xff]   ;;  %v6261_v48 = vld [vmem:[%s7795_s5 + $0xe8] ss:$16 sps:$4 sm:$0xff]  }
 0x2f5   :  { %v6262_v19 = vld [vmem:[%s7795_s5 + $0x10c] ss:$16 sps:$4 sm:$0xff]   ;;  %v6264_v16 = vld [vmem:[%s7795_s5 + $0x108] ss:$16 sps:$4 sm:$0xff]  }
 0x2f6   :  { %v6265_v29 = vld [vmem:[%s7795_s5 + $0x12c] ss:$16 sps:$4 sm:$0xff]   ;;  %v6267_v18 = vld [vmem:[%s7795_s5 + $0x128] ss:$16 sps:$4 sm:$0xff]  }
 0x2f7   :  { %v6268_v20 = vld [vmem:[%s7795_s5 + $0x14c] ss:$16 sps:$4 sm:$0xff]   ;;  %v6270_v24 = vld [vmem:[%s7795_s5 + $0x148] ss:$16 sps:$4 sm:$0xff]  }
 0x2f8   :  { %v6271_v57 = vld [vmem:[%s7795_s5 + $0x16c] ss:$16 sps:$4 sm:$0xff]   ;;  %v6273_v32 = vld [vmem:[%s7795_s5 + $0x168] ss:$16 sps:$4 sm:$0xff]  }
 0x2f9   :  { %v6274_v51 = vld [vmem:[%s7795_s5 + $0x18c] ss:$16 sps:$4 sm:$0xff]   ;;  %v6276_v38 = vld [vmem:[%s7795_s5 + $0x188] ss:$16 sps:$4 sm:$0xff]  }
 0x2fa   :  { %3418 = vmatmul.mubr.bf16.gmra.mrb[196].mxu0 %v6195_v53  ;;  %4124 = vmatmul.mubr.bf16.gmra.mrb[196].mxu1 %v6195_v53  ;;  %v6277_v53 = vld [vmem:[%s7795_s5 + $0x1ac] ss:$16 sps:$4 sm:$0xff]  }
 0x2fb   :  { %3427 = vmatprep.mubr.bf16.mxu0 %v6196_v27  ;;  %4133 = vmatprep.mubr.bf16.mxu1 %v6196_v27  ;;  %v6279_v27 = vld [vmem:[%s7795_s5 + $0x1a8] ss:$16 sps:$4 sm:$0xff]  }
 0x302   :  { %3428 = vmatmul.mubr.bf16.gmra.mrb[200].mxu0 %v6198_v52  ;;  %4134 = vmatmul.mubr.bf16.gmra.mrb[200].mxu1 %v6198_v52  ;;  %v6280_v52 = vld [vmem:[%s7795_s5 + $0x1cc] ss:$16 sps:$4 sm:$0xff]  }
 0x303   :  { %3437 = vmatprep.mubr.bf16.mxu0 %v6199_v33  ;;  %4143 = vmatprep.mubr.bf16.mxu1 %v6199_v33  ;;  %v6282_v33 = vld [vmem:[%s7795_s5 + $0x1c8] ss:$16 sps:$4 sm:$0xff]  }
 0x30a   :  { %3438 = vmatmul.mubr.bf16.gmra.mrb[204].mxu0 %v6201_v22  ;;  %4144 = vmatmul.mubr.bf16.gmra.mrb[204].mxu1 %v6201_v22  ;;  %v6283_v22 = vld [vmem:[%s7795_s5 + $0x1ec] ss:$16 sps:$4 sm:$0xff]  }
 0x30b   :  { %3447 = vmatprep.mubr.bf16.mxu0 %v6202_v50  ;;  %4153 = vmatprep.mubr.bf16.mxu1 %v6202_v50  ;;  %v6285_v50 = vld [vmem:[%s7795_s5 + $0x1e8] ss:$16 sps:$4 sm:$0xff]  }
 0x312   :  { %3448 = vmatmul.mubr.bf16.gmra.mrb[208].mxu0 %v6204_v62  ;;  %4154 = vmatmul.mubr.bf16.gmra.mrb[208].mxu1 %v6204_v62  ;;  %v6286_v62 = vld [vmem:[%s7795_s5 + $0x20c] ss:$16 sps:$4 sm:$0xff]  }
 0x313   :  { %3457 = vmatprep.mubr.bf16.mxu0 %v6205_v60  ;;  %4163 = vmatprep.mubr.bf16.mxu1 %v6205_v60  ;;  %v6288_v60 = vld [vmem:[%s7795_s5 + $0x208] ss:$16 sps:$4 sm:$0xff]  }
 0x31a   :  { %3458 = vmatmul.mubr.bf16.gmra.mrb[212].mxu0 %v6207_v15  ;;  %4164 = vmatmul.mubr.bf16.gmra.mrb[212].mxu1 %v6207_v15  ;;  %v6289_v15 = vld [vmem:[%s7795_s5 + $0x22c] ss:$16 sps:$4 sm:$0xff]  }
 0x31b   :  { %3467 = vmatprep.mubr.bf16.mxu0 %v6208_v9  ;;  %4173 = vmatprep.mubr.bf16.mxu1 %v6208_v9  ;;  %v6291_v9 = vld [vmem:[%s7795_s5 + $0x228] ss:$16 sps:$4 sm:$0xff]  }
 0x322   :  { %3468 = vmatmul.mubr.bf16.gmra.mrb[216].mxu0 %v6210_v10  ;;  %4174 = vmatmul.mubr.bf16.gmra.mrb[216].mxu1 %v6210_v10  ;;  %v6292_v10 = vld [vmem:[%s7795_s5 + $0x24c] ss:$16 sps:$4 sm:$0xff]  }
 0x323   :  { %3477 = vmatprep.mubr.bf16.mxu0 %v6211_v43  ;;  %4183 = vmatprep.mubr.bf16.mxu1 %v6211_v43  ;;  %v6294_v43 = vld [vmem:[%s7795_s5 + $0x248] ss:$16 sps:$4 sm:$0xff]  }
 0x32a   :  { %3478 = vmatmul.mubr.bf16.gmra.mrb[220].mxu0 %v6213_v41  ;;  %4184 = vmatmul.mubr.bf16.gmra.mrb[220].mxu1 %v6213_v41  ;;  %v6295_v41 = vld [vmem:[%s7795_s5 + $0x26c] ss:$16 sps:$4 sm:$0xff]  }
 0x32b   :  { %3487 = vmatprep.mubr.bf16.mxu0 %v6214_v54  ;;  %4193 = vmatprep.mubr.bf16.mxu1 %v6214_v54  ;;  %v6297_v54 = vld [vmem:[%s7795_s5 + $0x268] ss:$16 sps:$4 sm:$0xff]  }
 0x332   :  { %3488 = vmatmul.mubr.bf16.gmra.mrb[224].mxu0 %v6216_v30  ;;  %4194 = vmatmul.mubr.bf16.gmra.mrb[224].mxu1 %v6216_v30  ;;  %v6298_v30 = vld [vmem:[%s7795_s5 + $0x28c] ss:$16 sps:$4 sm:$0xff]  }
 0x333   :  { %3497 = vmatprep.mubr.bf16.mxu0 %v6217_v21  ;;  %4203 = vmatprep.mubr.bf16.mxu1 %v6217_v21  ;;  %v6300_v21 = vld [vmem:[%s7795_s5 + $0x288] ss:$16 sps:$4 sm:$0xff]  }
 0x33a   :  { %3498 = vmatmul.mubr.bf16.gmra.mrb[228].mxu0 %v6219_v11  ;;  %4204 = vmatmul.mubr.bf16.gmra.mrb[228].mxu1 %v6219_v11  ;;  %v6301_v11 = vld [vmem:[%s7795_s5 + $0x2ac] ss:$16 sps:$4 sm:$0xff]  }
 0x33b   :  { %3507 = vmatprep.mubr.bf16.mxu0 %v6220_v46  ;;  %4213 = vmatprep.mubr.bf16.mxu1 %v6220_v46  ;;  %v6303_v46 = vld [vmem:[%s7795_s5 + $0x2a8] ss:$16 sps:$4 sm:$0xff]  }
 0x342   :  { %3508 = vmatmul.mubr.bf16.gmra.mrb[232].mxu0 %v6222_v40  ;;  %4214 = vmatmul.mubr.bf16.gmra.mrb[232].mxu1 %v6222_v40  ;;  %v6304_v40 = vld [vmem:[%s7795_s5 + $0x2cc] ss:$16 sps:$4 sm:$0xff]  }
 0x343   :  { %3517 = vmatprep.mubr.bf16.mxu0 %v6223_v39  ;;  %4223 = vmatprep.mubr.bf16.mxu1 %v6223_v39  ;;  %v6306_v39 = vld [vmem:[%s7795_s5 + $0x2c8] ss:$16 sps:$4 sm:$0xff]  }
 0x34a   :  { %3518 = vmatmul.mubr.bf16.gmra.mrb[236].mxu0 %v6225_v49  ;;  %4224 = vmatmul.mubr.bf16.gmra.mrb[236].mxu1 %v6225_v49  ;;  %v6307_v49 = vld [vmem:[%s7795_s5 + $0x2ec] ss:$16 sps:$4 sm:$0xff]  }
 0x34b   :  { %3527 = vmatprep.mubr.bf16.mxu0 %v6226_v0  ;;  %4233 = vmatprep.mubr.bf16.mxu1 %v6226_v0  ;;  %v6309_v0 = vld [vmem:[%s7795_s5 + $0x2e8] ss:$16 sps:$4 sm:$0xff]  }
 0x352   :  { %3528 = vmatmul.mubr.bf16.gmra.mrb[240].mxu0 %v6228_v55  ;;  %4234 = vmatmul.mubr.bf16.gmra.mrb[240].mxu1 %v6228_v55  ;;  %v6310_v55 = vld [vmem:[%s7795_s5 + $0x30c] ss:$16 sps:$4 sm:$0xff]  }
 0x353   :  { %3537 = vmatprep.mubr.bf16.mxu0 %v6229_v7  ;;  %4243 = vmatprep.mubr.bf16.mxu1 %v6229_v7  ;;  %v6312_v7 = vld [vmem:[%s7795_s5 + $0x308] ss:$16 sps:$4 sm:$0xff]  }
 0x35a   :  { %3538 = vmatmul.mubr.bf16.gmra.mrb[244].mxu0 %v6231_v31  ;;  %4244 = vmatmul.mubr.bf16.gmra.mrb[244].mxu1 %v6231_v31  ;;  %v6313_v31 = vld [vmem:[%s7795_s5 + $0x32c] ss:$16 sps:$4 sm:$0xff]  }
 0x35b   :  { %3547 = vmatprep.mubr.bf16.mxu0 %v6232_v8  ;;  %4253 = vmatprep.mubr.bf16.mxu1 %v6232_v8  ;;  %v6315_v8 = vld [vmem:[%s7795_s5 + $0x328] ss:$16 sps:$4 sm:$0xff]  }
 0x362   :  { %3548 = vmatmul.mubr.bf16.gmra.mrb[248].mxu0 %v6234_v14  ;;  %4254 = vmatmul.mubr.bf16.gmra.mrb[248].mxu1 %v6234_v14  ;;  %v6316_v14 = vld [vmem:[%s7795_s5 + $0x34c] ss:$16 sps:$4 sm:$0xff]  }
 0x363   :  { %3557 = vmatprep.mubr.bf16.mxu0 %v6235_v56  ;;  %4263 = vmatprep.mubr.bf16.mxu1 %v6235_v56  ;;  %v6318_v56 = vld [vmem:[%s7795_s5 + $0x348] ss:$16 sps:$4 sm:$0xff]  }
 0x36a   :  { %3558 = vmatmul.mubr.bf16.gmra.mrb[252].mxu0 %v6237_v45  ;;  %4264 = vmatmul.mubr.bf16.gmra.mrb[252].mxu1 %v6237_v45  ;;  %v6319_v45 = vld [vmem:[%s7795_s5 + $0x36c] ss:$16 sps:$4 sm:$0xff]  }
 0x36b   :  { %3600 = vmatprep.mubr.bf16.mxu0 %v6240_v6  ;;  %4306 = vmatprep.mubr.bf16.mxu1 %v6240_v6  ;;  %v2263_v6 = vpop.permute.xlu0 %2262 }
 0x372   :  { %3601 = vmatmul.mubr.bf16.vlgmr.msra.gmra.mrb[128].mxu0 %v6238_v61  ;;  %4307 = vmatmul.mubr.bf16.vlgmr.msra.gmra.mrb[128].mxu1 %v6238_v61  ;;  %v2258_v61 = vpop.permute.xlu1 %2257 }
 0x373   :  { %3610 = vmatprep.mubr.bf16.mxu0 %v6241_v13  ;;  %4316 = vmatprep.mubr.bf16.mxu1 %v6241_v13 }
 0x37a   :  { %3611 = vmatmul.mubr.bf16.gmra.mrb[132].mxu0 %v6243_v58  ;;  %4317 = vmatmul.mubr.bf16.gmra.mrb[132].mxu1 %v6243_v58 }
 0x37b   :  { %3620 = vmatprep.mubr.bf16.mxu0 %v6244_v35  ;;  %4326 = vmatprep.mubr.bf16.mxu1 %v6244_v35 }
 0x382   :  { %3621 = vmatmul.mubr.bf16.gmra.mrb[136].mxu0 %v6246_v25  ;;  %4327 = vmatmul.mubr.bf16.gmra.mrb[136].mxu1 %v6246_v25 }
 0x383   :  { %3630 = vmatprep.mubr.bf16.mxu0 %v6247_v26  ;;  %4336 = vmatprep.mubr.bf16.mxu1 %v6247_v26 }
 0x38a   :  { %3631 = vmatmul.mubr.bf16.gmra.mrb[140].mxu0 %v6249_v59  ;;  %4337 = vmatmul.mubr.bf16.gmra.mrb[140].mxu1 %v6249_v59 }
 0x38b   :  { %3640 = vmatprep.mubr.bf16.mxu0 %v6250_v34  ;;  %4346 = vmatprep.mubr.bf16.mxu1 %v6250_v34  ;;  %v6321_v34 = vld [vmem:[%s7795_s5 + $0x368] ss:$16 sps:$4 sm:$0xff]  }
 0x392   :  { %3641 = vmatmul.mubr.bf16.gmra.mrb[144].mxu0 %v6252_v12  ;;  %4347 = vmatmul.mubr.bf16.gmra.mrb[144].mxu1 %v6252_v12 }
 0x393   :  { %3650 = vmatprep.mubr.bf16.mxu0 %v6253_v17  ;;  %4356 = vmatprep.mubr.bf16.mxu1 %v6253_v17 }
 0x39a   :  { %3651 = vmatmul.mubr.bf16.gmra.mrb[148].mxu0 %v6255_v44  ;;  %4357 = vmatmul.mubr.bf16.gmra.mrb[148].mxu1 %v6255_v44 }
 0x39b   :  { %3660 = vmatprep.mubr.bf16.mxu0 %v6256_v1  ;;  %4366 = vmatprep.mubr.bf16.mxu1 %v6256_v1 }
 0x3a2   :  { %3661 = vmatmul.mubr.bf16.gmra.mrb[152].mxu0 %v6258_v37  ;;  %4367 = vmatmul.mubr.bf16.gmra.mrb[152].mxu1 %v6258_v37  ;;  %v6322_v37 = vld [vmem:[%s7795_s5 + $0x38c] ss:$16 sps:$4 sm:$0xff]  }
 0x3a3   :  { %3670 = vmatprep.mubr.bf16.mxu0 %v6259_v36  ;;  %4376 = vmatprep.mubr.bf16.mxu1 %v6259_v36 }
 0x3aa   :  { %3671 = vmatmul.mubr.bf16.gmra.mrb[156].mxu0 %v6261_v48  ;;  %4377 = vmatmul.mubr.bf16.gmra.mrb[156].mxu1 %v6261_v48 }
 0x3ab   :  { %3680 = vmatprep.mubr.bf16.mxu0 %v6262_v19  ;;  %4386 = vmatprep.mubr.bf16.mxu1 %v6262_v19 }
 0x3b2   :  { %3681 = vmatmul.mubr.bf16.gmra.mrb[160].mxu0 %v6264_v16  ;;  %4387 = vmatmul.mubr.bf16.gmra.mrb[160].mxu1 %v6264_v16 }
 0x3b3   :  { %3690 = vmatprep.mubr.bf16.mxu0 %v6265_v29  ;;  %4396 = vmatprep.mubr.bf16.mxu1 %v6265_v29 }
 0x3ba   :  { %3691 = vmatmul.mubr.bf16.gmra.mrb[164].mxu0 %v6267_v18  ;;  %4397 = vmatmul.mubr.bf16.gmra.mrb[164].mxu1 %v6267_v18 }
 0x3bb   :  { %3700 = vmatprep.mubr.bf16.mxu0 %v6268_v20  ;;  %4406 = vmatprep.mubr.bf16.mxu1 %v6268_v20 }
 0x3c2   :  { %3701 = vmatmul.mubr.bf16.gmra.mrb[168].mxu0 %v6270_v24  ;;  %4407 = vmatmul.mubr.bf16.gmra.mrb[168].mxu1 %v6270_v24 }
 0x3c3   :  { %3710 = vmatprep.mubr.bf16.mxu0 %v6271_v57  ;;  %4416 = vmatprep.mubr.bf16.mxu1 %v6271_v57 }
 0x3ca   :  { %3711 = vmatmul.mubr.bf16.gmra.mrb[172].mxu0 %v6273_v32  ;;  %4417 = vmatmul.mubr.bf16.gmra.mrb[172].mxu1 %v6273_v32 }
 0x3cb   :  { %3720 = vmatprep.mubr.bf16.mxu0 %v6274_v51  ;;  %4426 = vmatprep.mubr.bf16.mxu1 %v6274_v51 }
 0x3d2   :  { %3721 = vmatmul.mubr.bf16.gmra.mrb[176].mxu0 %v6276_v38  ;;  %4427 = vmatmul.mubr.bf16.gmra.mrb[176].mxu1 %v6276_v38 }
 0x3d3   :  { %3730 = vmatprep.mubr.bf16.mxu0 %v6277_v53  ;;  %4436 = vmatprep.mubr.bf16.mxu1 %v6277_v53 }
 0x3da   :  { %3731 = vmatmul.mubr.bf16.gmra.mrb[180].mxu0 %v6279_v27  ;;  %4437 = vmatmul.mubr.bf16.gmra.mrb[180].mxu1 %v6279_v27 }
 0x3db   :  { %3740 = vmatprep.mubr.bf16.mxu0 %v6280_v52  ;;  %4446 = vmatprep.mubr.bf16.mxu1 %v6280_v52  ;;  %v2273_v52 = vpop.permute.xlu0 %2272 }
 0x3e2   :  { %3741 = vmatmul.mubr.bf16.gmra.mrb[184].mxu0 %v6282_v33  ;;  %4447 = vmatmul.mubr.bf16.gmra.mrb[184].mxu1 %v6282_v33  ;;  %v2268_v33 = vpop.permute.xlu1 %2267 }
 0x3e3   :  { %3750 = vmatprep.mubr.bf16.mxu0 %v6283_v22  ;;  %4456 = vmatprep.mubr.bf16.mxu1 %v6283_v22 }
 0x3ea   :  { %3751 = vmatmul.mubr.bf16.gmra.mrb[188].mxu0 %v6285_v50  ;;  %4457 = vmatmul.mubr.bf16.gmra.mrb[188].mxu1 %v6285_v50 }
 0x3eb   :  { %3760 = vmatprep.mubr.bf16.mxu0 %v6286_v62  ;;  %4466 = vmatprep.mubr.bf16.mxu1 %v6286_v62 }
 0x3f2   :  { %3761 = vmatmul.mubr.bf16.gmra.mrb[192].mxu0 %v6288_v60  ;;  %4467 = vmatmul.mubr.bf16.gmra.mrb[192].mxu1 %v6288_v60 }
 0x3f3   :  { %3770 = vmatprep.mubr.bf16.mxu0 %v6289_v15  ;;  %4476 = vmatprep.mubr.bf16.mxu1 %v6289_v15 }
 0x3fa   :  { %3771 = vmatmul.mubr.bf16.gmra.mrb[196].mxu0 %v6291_v9  ;;  %4477 = vmatmul.mubr.bf16.gmra.mrb[196].mxu1 %v6291_v9 }
 0x3fb   :  { %3780 = vmatprep.mubr.bf16.mxu0 %v6292_v10  ;;  %4486 = vmatprep.mubr.bf16.mxu1 %v6292_v10 }
 0x402   :  { %3781 = vmatmul.mubr.bf16.gmra.mrb[200].mxu0 %v6294_v43  ;;  %4487 = vmatmul.mubr.bf16.gmra.mrb[200].mxu1 %v6294_v43 }
 0x403   :  { %3790 = vmatprep.mubr.bf16.mxu0 %v6295_v41  ;;  %4496 = vmatprep.mubr.bf16.mxu1 %v6295_v41 }
 0x40a   :  { %3791 = vmatmul.mubr.bf16.gmra.mrb[204].mxu0 %v6297_v54  ;;  %4497 = vmatmul.mubr.bf16.gmra.mrb[204].mxu1 %v6297_v54 }
 0x40b   :  { %3800 = vmatprep.mubr.bf16.mxu0 %v6298_v30  ;;  %4506 = vmatprep.mubr.bf16.mxu1 %v6298_v30  ;;  %v6324_v30 = vld [vmem:[%s7795_s5 + $0x388] ss:$16 sps:$4 sm:$0xff]  }
 0x412   :  { %3801 = vmatmul.mubr.bf16.gmra.mrb[208].mxu0 %v6300_v21  ;;  %4507 = vmatmul.mubr.bf16.gmra.mrb[208].mxu1 %v6300_v21 }
 0x413   :  { %3810 = vmatprep.mubr.bf16.mxu0 %v6301_v11  ;;  %4516 = vmatprep.mubr.bf16.mxu1 %v6301_v11 }
 0x41a   :  { %3811 = vmatmul.mubr.bf16.gmra.mrb[212].mxu0 %v6303_v46  ;;  %4517 = vmatmul.mubr.bf16.gmra.mrb[212].mxu1 %v6303_v46 }
 0x41b   :  { %3820 = vmatprep.mubr.bf16.mxu0 %v6304_v40  ;;  %4526 = vmatprep.mubr.bf16.mxu1 %v6304_v40 }
 0x422   :  { %3821 = vmatmul.mubr.bf16.gmra.mrb[216].mxu0 %v6306_v39  ;;  %4527 = vmatmul.mubr.bf16.gmra.mrb[216].mxu1 %v6306_v39  ;;  %v6325_v39 = vld [vmem:[%s7795_s5 + $0x3ac] ss:$16 sps:$4 sm:$0xff]  }
 0x423   :  { %3830 = vmatprep.mubr.bf16.mxu0 %v6307_v49  ;;  %4536 = vmatprep.mubr.bf16.mxu1 %v6307_v49 }
 0x42a   :  { %3831 = vmatmul.mubr.bf16.gmra.mrb[220].mxu0 %v6309_v0  ;;  %4537 = vmatmul.mubr.bf16.gmra.mrb[220].mxu1 %v6309_v0 }
 0x42b   :  { %3840 = vmatprep.mubr.bf16.mxu0 %v6310_v55  ;;  %4546 = vmatprep.mubr.bf16.mxu1 %v6310_v55 }
 0x432   :  { %3841 = vmatmul.mubr.bf16.gmra.mrb[224].mxu0 %v6312_v7  ;;  %4547 = vmatmul.mubr.bf16.gmra.mrb[224].mxu1 %v6312_v7 }
 0x433   :  { %3850 = vmatprep.mubr.bf16.mxu0 %v6313_v31  ;;  %4556 = vmatprep.mubr.bf16.mxu1 %v6313_v31 }
 0x43a   :  { %3851 = vmatmul.mubr.bf16.gmra.mrb[228].mxu0 %v6315_v8  ;;  %4557 = vmatmul.mubr.bf16.gmra.mrb[228].mxu1 %v6315_v8 }
 0x43b   :  { %3860 = vmatprep.mubr.bf16.mxu0 %v6316_v14  ;;  %4566 = vmatprep.mubr.bf16.mxu1 %v6316_v14 }
 0x442   :  { %3861 = vmatmul.mubr.bf16.gmra.mrb[232].mxu0 %v6318_v56  ;;  %4567 = vmatmul.mubr.bf16.gmra.mrb[232].mxu1 %v6318_v56 }
 0x443   :  { %3870 = vmatprep.mubr.bf16.mxu0 %v6319_v45  ;;  %4576 = vmatprep.mubr.bf16.mxu1 %v6319_v45 }
 0x445   :  { %v3602_v13 = vpop.f32.mrb[128].mxu0  ;;  %v4308_v58 = vpop.f32.mrb[128].mxu1 }
 0x446   :  { %v5553_v35 = vadd.f32 %v3602_v13, %v2258_v61  ;;  %v5681_v25 = vadd.f32 %v4308_v58, %v2258_v61  ;;  %v3604_v26 = vpop.f32.mrb[129].mxu0  ;;  %v4310_v59 = vpop.f32.mrb[129].mxu1 }
 0x447   :  { %v5554_v12 = vadd.f32 %v3604_v26, %v2258_v61  ;;  %v5682_v17 = vadd.f32 %v4310_v59, %v2258_v61  ;;  %v3606_v44 = vpop.f32.mrb[130].mxu0  ;;  %v4312_v1 = vpop.f32.mrb[130].mxu1 }
 0x448   :  { %v5555_v36 = vadd.f32 %v3606_v44, %v2263_v6  ;;  %v5683_v48 = vadd.f32 %v4312_v1, %v2263_v6  ;;  %v3608_v19 = vpop.f32.mrb[131].mxu0  ;;  %v4314_v16 = vpop.f32.mrb[131].mxu1  ;;  %v4627_v20 = vmax.f32 %v5553_v35, 0.0  ;;  %v4629_v24 = vmax.f32 %v5681_v25, 0.0 }
 0x449   :  { %v5556_v29 = vadd.f32 %v3608_v19, %v2263_v6  ;;  %v5684_v18 = vadd.f32 %v4314_v16, %v2263_v6  ;;  %v4628_v51 = vmax.f32 %v5554_v12, 0.0  ;;  %v4630_v38 = vmax.f32 %v5682_v17, 0.0  ;;  %v2283_v25 = vpop.permute.xlu0 %2282  ;;  %v2278_v26 = vpop.permute.xlu1 %2277  ;;  %v6327_v16 = vld [vmem:[%s7795_s5 + $0x3a8] ss:$16 sps:$4 sm:$0xff]  }
 0x44a   :  { %v4631_v57 = vmax.f32 %v5555_v36, 0.0  ;;  %v4633_v32 = vmax.f32 %v5683_v48, 0.0  ;;  %3871 = vmatmul.mubr.bf16.gmra.mrb[236].mxu0 %v6321_v34  ;;  %4577 = vmatmul.mubr.bf16.gmra.mrb[236].mxu1 %v6321_v34 }
 0x44b   :  { %v4632_v53 = vmax.f32 %v5556_v29, 0.0  ;;  %v4634_v27 = vmax.f32 %v5684_v18, 0.0  ;;  %3880 = vmatprep.mubr.bf16.mxu0 %v6322_v37  ;;  %4586 = vmatprep.mubr.bf16.mxu1 %v6322_v37 }
 0x44c   :  { %v4883_v22 = vpack.c.bf16 %v4631_v57, %v4627_v20  ;;  %v4885_v50 = vpack.c.bf16 %v4633_v32, %v4629_v24  ;;  %v6328_v57 = vld [vmem:[%s7795_s5 + $0x3cc] ss:$16 sps:$4 sm:$0xff]  }
 0x44d   :  { %v4884_v62 = vpack.c.bf16 %v4632_v53, %v4628_v51  ;;  %v4886_v60 = vpack.c.bf16 %v4634_v27, %v4630_v38  ;;  %v3612_v15 = vpop.f32.mrb[132].mxu0  ;;  %v4318_v9 = vpop.f32.mrb[132].mxu1 }
 0x44e   :  { %v5557_v10 = vadd.f32 %v3612_v15, %v2268_v33  ;;  %v5685_v43 = vadd.f32 %v4318_v9, %v2268_v33  ;;  %v3614_v41 = vpop.f32.mrb[133].mxu0  ;;  %v4320_v54 = vpop.f32.mrb[133].mxu1 }
 0x44f   :  { %v5558_v21 = vadd.f32 %v3614_v41, %v2268_v33  ;;  %v5686_v11 = vadd.f32 %v4320_v54, %v2268_v33  ;;  %v3616_v46 = vpop.f32.mrb[134].mxu0  ;;  %v4322_v40 = vpop.f32.mrb[134].mxu1  ;;  %5027 = vmatprep.subr.bf16.mxu0 %v4884_v62  ;;  %5109 = vmatprep.subr.bf16.mxu1 %v4886_v60 }
 0x450   :  { %v5559_v49 = vadd.f32 %v3616_v46, %v2273_v52  ;;  %v5687_v0 = vadd.f32 %v4322_v40, %v2273_v52  ;;  %v3618_v55 = vpop.f32.mrb[135].mxu0  ;;  %v4324_v7 = vpop.f32.mrb[135].mxu1  ;;  %5028 = vmatpush1.bf16.msra.mxu0 %v4883_v22  ;;  %5110 = vmatpush1.bf16.msra.mxu1 %v4885_v50  ;;  %v4635_v14 = vmax.f32 %v5557_v10, 0.0  ;;  %v4637_v56 = vmax.f32 %v5685_v43, 0.0 }
 0x451   :  { %v5560_v31 = vadd.f32 %v3618_v55, %v2273_v52  ;;  %v5688_v8 = vadd.f32 %v4324_v7, %v2273_v52  ;;  %v4636_v61 = vmax.f32 %v5558_v21, 0.0  ;;  %v4638_v13 = vmax.f32 %v5686_v11, 0.0  ;;  %v2293_v43 = vpop.permute.xlu0 %2292  ;;  %v2288_v41 = vpop.permute.xlu1 %2287  ;;  %v6330_v7 = vld [vmem:[%s7795_s5 + $0x3c8] ss:$16 sps:$4 sm:$0xff]  }
 0x452   :  { %v4639_v45 = vmax.f32 %v5559_v49, 0.0  ;;  %v4641_v6 = vmax.f32 %v5687_v0, 0.0  ;;  %3881 = vmatmul.mubr.bf16.gmra.mrb[240].mxu0 %v6324_v30  ;;  %4587 = vmatmul.mubr.bf16.gmra.mrb[240].mxu1 %v6324_v30 }
 0x453   :  { %v4640_v58 = vmax.f32 %v5560_v31, 0.0  ;;  %v4642_v35 = vmax.f32 %v5688_v8, 0.0  ;;  %3890 = vmatprep.mubr.bf16.mxu0 %v6325_v39  ;;  %4596 = vmatprep.mubr.bf16.mxu1 %v6325_v39 }
 0x454   :  { %v4887_v59 = vpack.c.bf16 %v4639_v45, %v4635_v14  ;;  %v4889_v34 = vpack.c.bf16 %v4641_v6, %v4637_v56  ;;  %v6331_v45 = vld [vmem:[%s7795_s5 + $0x3ec] ss:$16 sps:$4 sm:$0xff]  }
 0x455   :  { %v4888_v12 = vpack.c.bf16 %v4640_v58, %v4636_v61  ;;  %v4890_v17 = vpack.c.bf16 %v4642_v35, %v4638_v13  ;;  %v3622_v44 = vpop.f32.mrb[136].mxu0  ;;  %v4328_v1 = vpop.f32.mrb[136].mxu1 }
 0x456   :  { %v5561_v37 = vadd.f32 %v3622_v44, %v2278_v26  ;;  %v5689_v36 = vadd.f32 %v4328_v1, %v2278_v26  ;;  %v3624_v48 = vpop.f32.mrb[137].mxu0  ;;  %v4330_v19 = vpop.f32.mrb[137].mxu1 }
 0x457   :  { %v5562_v29 = vadd.f32 %v3624_v48, %v2278_v26  ;;  %v5690_v18 = vadd.f32 %v4330_v19, %v2278_v26  ;;  %v3626_v20 = vpop.f32.mrb[138].mxu0  ;;  %v4332_v24 = vpop.f32.mrb[138].mxu1  ;;  %5029 = vmatprep.subr.bf16.mxu0 %v4888_v12  ;;  %5111 = vmatprep.subr.bf16.mxu1 %v4890_v17 }
 0x458   :  { %v5563_v32 = vadd.f32 %v3626_v20, %v2283_v25  ;;  %v5691_v51 = vadd.f32 %v4332_v24, %v2283_v25  ;;  %v3628_v38 = vpop.f32.mrb[139].mxu0  ;;  %v4334_v53 = vpop.f32.mrb[139].mxu1  ;;  %5030 = vmatpush1.bf16.msra.mxu0 %v4887_v59  ;;  %5112 = vmatpush1.bf16.msra.mxu1 %v4889_v34  ;;  %v4643_v33 = vmax.f32 %v5561_v37, 0.0  ;;  %v4645_v22 = vmax.f32 %v5689_v36, 0.0 }
 0x459   :  { %v5564_v27 = vadd.f32 %v3628_v38, %v2283_v25  ;;  %v5692_v52 = vadd.f32 %v4334_v53, %v2283_v25  ;;  %v4644_v60 = vmax.f32 %v5562_v29, 0.0  ;;  %v4646_v15 = vmax.f32 %v5690_v18, 0.0  ;;  %v2303_v36 = vpop.permute.xlu0 %2302  ;;  %v2298_v48 = vpop.permute.xlu1 %2297  ;;  %v7727_v29 = vld [vmem:[%s7797_s7] sm:$0x77] }
 0x45a   :  { %v4647_v50 = vmax.f32 %v5563_v32, 0.0  ;;  %v4649_v62 = vmax.f32 %v5691_v51, 0.0  ;;  %3891 = vmatmul.mubr.bf16.gmra.mrb[244].mxu0 %v6327_v16  ;;  %4597 = vmatmul.mubr.bf16.gmra.mrb[244].mxu1 %v6327_v16 }
 0x45b   :  { %v4648_v9 = vmax.f32 %v5564_v27, 0.0  ;;  %v4650_v10 = vmax.f32 %v5692_v52, 0.0  ;;  %3900 = vmatprep.mubr.bf16.mxu0 %v6328_v57  ;;  %4606 = vmatprep.mubr.bf16.mxu1 %v6328_v57  ;;  %v6333_v27 = vld [vmem:[%s7795_s5 + $0x3e8] ss:$16 sps:$4 sm:$0xff]  }
 0x45c   :  { %v4891_v54 = vpack.c.bf16 %v4647_v50, %v4643_v33  ;;  %v4893_v30 = vpack.c.bf16 %v4649_v62, %v4645_v22  ;;  %v5550_v62 = vcombine.high %v7727_v29, %v7727_v29 }
 0x45d   :  { %v4892_v21 = vpack.c.bf16 %v4648_v9, %v4644_v60  ;;  %v4894_v11 = vpack.c.bf16 %v4650_v10, %v4646_v15  ;;  %v3632_v46 = vpop.f32.mrb[140].mxu0  ;;  %v4338_v40 = vpop.f32.mrb[140].mxu1 }
 0x45e   :  { %v5565_v39 = vadd.f32 %v3632_v46, %v2288_v41  ;;  %v5693_v49 = vadd.f32 %v4338_v40, %v2288_v41  ;;  %v3634_v0 = vpop.f32.mrb[141].mxu0  ;;  %v4340_v55 = vpop.f32.mrb[141].mxu1 }
 0x45f   :  { %v5566_v31 = vadd.f32 %v3634_v0, %v2288_v41  ;;  %v5694_v8 = vadd.f32 %v4340_v55, %v2288_v41  ;;  %v3636_v14 = vpop.f32.mrb[142].mxu0  ;;  %v4342_v56 = vpop.f32.mrb[142].mxu1  ;;  %5031 = vmatprep.subr.bf16.mxu0 %v4892_v21  ;;  %5113 = vmatprep.subr.bf16.mxu1 %v4894_v11 }
 0x460   :  { %v5567_v6 = vadd.f32 %v3636_v14, %v2293_v43  ;;  %v5695_v61 = vadd.f32 %v4342_v56, %v2293_v43  ;;  %v3638_v13 = vpop.f32.mrb[143].mxu0  ;;  %v4344_v58 = vpop.f32.mrb[143].mxu1  ;;  %5032 = vmatpush1.bf16.msra.mxu0 %v4891_v54  ;;  %5114 = vmatpush1.bf16.msra.mxu1 %v4893_v30  ;;  %v4651_v26 = vmax.f32 %v5565_v39, 0.0  ;;  %v4653_v59 = vmax.f32 %v5693_v49, 0.0 }
 0x461   :  { %v5568_v35 = vadd.f32 %v3638_v13, %v2293_v43  ;;  %v5696_v25 = vadd.f32 %v4344_v58, %v2293_v43  ;;  %v4652_v17 = vmax.f32 %v5566_v31, 0.0  ;;  %v4654_v44 = vmax.f32 %v5694_v8, 0.0  ;;  %v2313_v0 = vpop.permute.xlu0 %2312  ;;  %v2308_v55 = vpop.permute.xlu1 %2307 }
 0x462   :  { %v4655_v34 = vmax.f32 %v5567_v6, 0.0  ;;  %v4657_v12 = vmax.f32 %v5695_v61, 0.0  ;;  %3901 = vmatmul.mubr.bf16.gmra.mrb[248].mxu0 %v6330_v7  ;;  %4607 = vmatmul.mubr.bf16.gmra.mrb[248].mxu1 %v6330_v7 }
 0x463   :  { %v4656_v1 = vmax.f32 %v5568_v35, 0.0  ;;  %v4658_v37 = vmax.f32 %v5696_v25, 0.0  ;;  %3910 = vmatprep.mubr.bf16.mxu0 %v6331_v45  ;;  %4616 = vmatprep.mubr.bf16.mxu1 %v6331_v45 }
 0x464   :  { %v4895_v19 = vpack.c.bf16 %v4655_v34, %v4651_v26  ;;  %v4897_v16 = vpack.c.bf16 %v4657_v12, %v4653_v59 }
 0x465   :  { %v4896_v18 = vpack.c.bf16 %v4656_v1, %v4652_v17  ;;  %v4898_v20 = vpack.c.bf16 %v4658_v37, %v4654_v44  ;;  %v3642_v24 = vpop.f32.mrb[144].mxu0  ;;  %v4348_v57 = vpop.f32.mrb[144].mxu1 }
 0x466   :  { %v5569_v32 = vadd.f32 %v3642_v24, %v2298_v48  ;;  %v5697_v51 = vadd.f32 %v4348_v57, %v2298_v48  ;;  %v3644_v38 = vpop.f32.mrb[145].mxu0  ;;  %v4350_v53 = vpop.f32.mrb[145].mxu1 }
 0x467   :  { %v5570_v52 = vadd.f32 %v3644_v38, %v2298_v48  ;;  %v5698_v33 = vadd.f32 %v4350_v53, %v2298_v48  ;;  %v3646_v22 = vpop.f32.mrb[146].mxu0  ;;  %v4352_v50 = vpop.f32.mrb[146].mxu1  ;;  %5033 = vmatprep.subr.bf16.mxu0 %v4896_v18  ;;  %5115 = vmatprep.subr.bf16.mxu1 %v4898_v20 }
 0x468   :  { %v5571_v60 = vadd.f32 %v3646_v22, %v2303_v36  ;;  %v5699_v15 = vadd.f32 %v4352_v50, %v2303_v36  ;;  %v3648_v9 = vpop.f32.mrb[147].mxu0  ;;  %v4354_v10 = vpop.f32.mrb[147].mxu1  ;;  %5034 = vmatpush1.bf16.msra.mxu0 %v4895_v19  ;;  %5116 = vmatpush1.bf16.msra.mxu1 %v4897_v16  ;;  %v4659_v54 = vmax.f32 %v5569_v32, 0.0  ;;  %v4661_v30 = vmax.f32 %v5697_v51, 0.0 }
 0x469   :  { %v5572_v43 = vadd.f32 %v3648_v9, %v2303_v36  ;;  %v5700_v41 = vadd.f32 %v4354_v10, %v2303_v36  ;;  %v4660_v46 = vmax.f32 %v5570_v52, 0.0  ;;  %v4662_v40 = vmax.f32 %v5698_v33, 0.0  ;;  %v2323_v32 = vpop.permute.xlu0 %2322  ;;  %v2318_v51 = vpop.permute.xlu1 %2317 }
 0x46a   :  { %v4663_v21 = vmax.f32 %v5571_v60, 0.0  ;;  %v4665_v11 = vmax.f32 %v5699_v15, 0.0  ;;  %3911 = vmatmul.mubr.bf16.gmra.mrb[252].mxu0 %v6333_v27  ;;  %4617 = vmatmul.mubr.bf16.gmra.mrb[252].mxu1 %v6333_v27 }
 0x46b   :  { %v4664_v39 = vmax.f32 %v5572_v43, 0.0  ;;  %v4666_v49 = vmax.f32 %v5700_v41, 0.0  ;;  %5059 = vmatprep.mubr.bf16.mxu0 %v5550_v62  ;;  %5141 = vmatprep.mubr.bf16.mxu1 %v5550_v62 }
 0x46c   :  { %v4899_v7 = vpack.c.bf16 %v4663_v21, %v4659_v54  ;;  %v4901_v31 = vpack.c.bf16 %v4665_v11, %v4661_v30 }
 0x46d   :  { %v4900_v8 = vpack.c.bf16 %v4664_v39, %v4660_v46  ;;  %v4902_v14 = vpack.c.bf16 %v4666_v49, %v4662_v40  ;;  %v3652_v56 = vpop.f32.mrb[148].mxu0  ;;  %v4358_v45 = vpop.f32.mrb[148].mxu1 }
 0x46e   :  { %v5573_v6 = vadd.f32 %v3652_v56, %v2308_v55  ;;  %v5701_v61 = vadd.f32 %v4358_v45, %v2308_v55  ;;  %v3654_v13 = vpop.f32.mrb[149].mxu0  ;;  %v4360_v58 = vpop.f32.mrb[149].mxu1 }
 0x46f   :  { %v5574_v35 = vadd.f32 %v3654_v13, %v2308_v55  ;;  %v5702_v25 = vadd.f32 %v4360_v58, %v2308_v55  ;;  %v3656_v26 = vpop.f32.mrb[150].mxu0  ;;  %v4362_v59 = vpop.f32.mrb[150].mxu1  ;;  %5035 = vmatprep.subr.bf16.mxu0 %v4900_v8  ;;  %5117 = vmatprep.subr.bf16.mxu1 %v4902_v14 }
 0x470   :  { %v5575_v34 = vadd.f32 %v3656_v26, %v2313_v0  ;;  %v5703_v12 = vadd.f32 %v4362_v59, %v2313_v0  ;;  %v3658_v17 = vpop.f32.mrb[151].mxu0  ;;  %v4364_v44 = vpop.f32.mrb[151].mxu1  ;;  %5036 = vmatpush1.bf16.msra.mxu0 %v4899_v7  ;;  %5118 = vmatpush1.bf16.msra.mxu1 %v4901_v31  ;;  %v4667_v36 = vmax.f32 %v5573_v6, 0.0  ;;  %v4669_v48 = vmax.f32 %v5701_v61, 0.0 }
 0x471   :  { %v5576_v1 = vadd.f32 %v3658_v17, %v2313_v0  ;;  %v5704_v37 = vadd.f32 %v4364_v44, %v2313_v0  ;;  %v4668_v18 = vmax.f32 %v5574_v35, 0.0  ;;  %v4670_v20 = vmax.f32 %v5702_v25, 0.0  ;;  %v2333_v56 = vpop.permute.xlu0 %2332  ;;  %v2328_v45 = vpop.permute.xlu1 %2327 }
 0x472   :  { %v4671_v19 = vmax.f32 %v5575_v34, 0.0  ;;  %v4673_v16 = vmax.f32 %v5703_v12, 0.0 }
 0x473   :  { %v4672_v24 = vmax.f32 %v5576_v1, 0.0  ;;  %v4674_v57 = vmax.f32 %v5704_v37, 0.0 }
 0x474   :  { %v4903_v38 = vpack.c.bf16 %v4671_v19, %v4667_v36  ;;  %v4905_v53 = vpack.c.bf16 %v4673_v16, %v4669_v48 }
 0x475   :  { %v4904_v27 = vpack.c.bf16 %v4672_v24, %v4668_v18  ;;  %v4906_v52 = vpack.c.bf16 %v4674_v57, %v4670_v20  ;;  %v3662_v33 = vpop.f32.mrb[152].mxu0  ;;  %v4368_v22 = vpop.f32.mrb[152].mxu1 }
 0x476   :  { %v5577_v50 = vadd.f32 %v3662_v33, %v2318_v51  ;;  %v5705_v62 = vadd.f32 %v4368_v22, %v2318_v51  ;;  %v3664_v60 = vpop.f32.mrb[153].mxu0  ;;  %v4370_v15 = vpop.f32.mrb[153].mxu1 }
 0x477   :  { %v5578_v9 = vadd.f32 %v3664_v60, %v2318_v51  ;;  %v5706_v10 = vadd.f32 %v4370_v15, %v2318_v51  ;;  %v3666_v43 = vpop.f32.mrb[154].mxu0  ;;  %v4372_v41 = vpop.f32.mrb[154].mxu1  ;;  %5037 = vmatprep.subr.bf16.mxu0 %v4904_v27  ;;  %5119 = vmatprep.subr.bf16.mxu1 %v4906_v52 }
 0x478   :  { %v5579_v54 = vadd.f32 %v3666_v43, %v2323_v32  ;;  %v5707_v30 = vadd.f32 %v4372_v41, %v2323_v32  ;;  %v3668_v21 = vpop.f32.mrb[155].mxu0  ;;  %v4374_v11 = vpop.f32.mrb[155].mxu1  ;;  %5038 = vmatpush1.bf16.msra.mxu0 %v4903_v38  ;;  %5120 = vmatpush1.bf16.msra.mxu1 %v4905_v53  ;;  %v4675_v39 = vmax.f32 %v5577_v50, 0.0  ;;  %v4677_v49 = vmax.f32 %v5705_v62, 0.0 }
 0x479   :  { %v5580_v46 = vadd.f32 %v3668_v21, %v2323_v32  ;;  %v5708_v40 = vadd.f32 %v4374_v11, %v2323_v32  ;;  %v4676_v7 = vmax.f32 %v5578_v9, 0.0  ;;  %v4678_v31 = vmax.f32 %v5706_v10, 0.0  ;;  %v2343_v33 = vpop.permute.xlu0 %2342  ;;  %v2338_v22 = vpop.permute.xlu1 %2337 }
 0x47a   :  { %v4679_v0 = vmax.f32 %v5579_v54, 0.0  ;;  %v4681_v55 = vmax.f32 %v5707_v30, 0.0 }
 0x47b   :  { %v4680_v8 = vmax.f32 %v5580_v46, 0.0  ;;  %v4682_v14 = vmax.f32 %v5708_v40, 0.0 }
 0x47c   :  { %v4907_v6 = vpack.c.bf16 %v4679_v0, %v4675_v39  ;;  %v4909_v61 = vpack.c.bf16 %v4681_v55, %v4677_v49 }
 0x47d   :  { %v4908_v13 = vpack.c.bf16 %v4680_v8, %v4676_v7  ;;  %v4910_v58 = vpack.c.bf16 %v4682_v14, %v4678_v31  ;;  %v3672_v35 = vpop.f32.mrb[156].mxu0  ;;  %v4378_v25 = vpop.f32.mrb[156].mxu1 }
 0x47e   :  { %v5581_v26 = vadd.f32 %v3672_v35, %v2328_v45  ;;  %v5709_v59 = vadd.f32 %v4378_v25, %v2328_v45  ;;  %v3674_v34 = vpop.f32.mrb[157].mxu0  ;;  %v4380_v12 = vpop.f32.mrb[157].mxu1 }
 0x47f   :  { %v5582_v17 = vadd.f32 %v3674_v34, %v2328_v45  ;;  %v5710_v44 = vadd.f32 %v4380_v12, %v2328_v45  ;;  %v3676_v1 = vpop.f32.mrb[158].mxu0  ;;  %v4382_v37 = vpop.f32.mrb[158].mxu1  ;;  %5039 = vmatprep.subr.bf16.mxu0 %v4908_v13  ;;  %5121 = vmatprep.subr.bf16.mxu1 %v4910_v58 }
 0x480   :  { %v5583_v36 = vadd.f32 %v3676_v1, %v2333_v56  ;;  %v5711_v48 = vadd.f32 %v4382_v37, %v2333_v56  ;;  %v3678_v19 = vpop.f32.mrb[159].mxu0  ;;  %v4384_v16 = vpop.f32.mrb[159].mxu1  ;;  %5040 = vmatpush1.bf16.msra.mxu0 %v4907_v6  ;;  %5122 = vmatpush1.bf16.msra.mxu1 %v4909_v61  ;;  %v4683_v24 = vmax.f32 %v5581_v26, 0.0  ;;  %v4685_v57 = vmax.f32 %v5709_v59, 0.0 }
 0x481   :  { %v5584_v18 = vadd.f32 %v3678_v19, %v2333_v56  ;;  %v5712_v20 = vadd.f32 %v4384_v16, %v2333_v56  ;;  %v4684_v38 = vmax.f32 %v5582_v17, 0.0  ;;  %v4686_v53 = vmax.f32 %v5710_v44, 0.0  ;;  %v2353_v35 = vpop.permute.xlu0 %2352  ;;  %v2348_v25 = vpop.permute.xlu1 %2347 }
 0x482   :  { %v4687_v32 = vmax.f32 %v5583_v36, 0.0  ;;  %v4689_v51 = vmax.f32 %v5711_v48, 0.0 }
 0x483   :  { %v4688_v27 = vmax.f32 %v5584_v18, 0.0  ;;  %v4690_v52 = vmax.f32 %v5712_v20, 0.0 }
 0x484   :  { %v4911_v50 = vpack.c.bf16 %v4687_v32, %v4683_v24  ;;  %v4913_v62 = vpack.c.bf16 %v4689_v51, %v4685_v57 }
 0x485   :  { %v4912_v60 = vpack.c.bf16 %v4688_v27, %v4684_v38  ;;  %v4914_v15 = vpack.c.bf16 %v4690_v52, %v4686_v53  ;;  %v3682_v9 = vpop.f32.mrb[160].mxu0  ;;  %v4388_v10 = vpop.f32.mrb[160].mxu1 }
 0x486   :  { %v5585_v43 = vadd.f32 %v3682_v9, %v2338_v22  ;;  %v5713_v41 = vadd.f32 %v4388_v10, %v2338_v22  ;;  %v3684_v54 = vpop.f32.mrb[161].mxu0  ;;  %v4390_v30 = vpop.f32.mrb[161].mxu1 }
 0x487   :  { %v5586_v21 = vadd.f32 %v3684_v54, %v2338_v22  ;;  %v5714_v11 = vadd.f32 %v4390_v30, %v2338_v22  ;;  %v3686_v46 = vpop.f32.mrb[162].mxu0  ;;  %v4392_v40 = vpop.f32.mrb[162].mxu1  ;;  %5041 = vmatprep.subr.bf16.mxu0 %v4912_v60  ;;  %5123 = vmatprep.subr.bf16.mxu1 %v4914_v15 }
 0x488   :  { %v5587_v39 = vadd.f32 %v3686_v46, %v2343_v33  ;;  %v5715_v49 = vadd.f32 %v4392_v40, %v2343_v33  ;;  %v3688_v0 = vpop.f32.mrb[163].mxu0  ;;  %v4394_v55 = vpop.f32.mrb[163].mxu1  ;;  %5042 = vmatpush1.bf16.msra.mxu0 %v4911_v50  ;;  %5124 = vmatpush1.bf16.msra.mxu1 %v4913_v62  ;;  %v4691_v8 = vmax.f32 %v5585_v43, 0.0  ;;  %v4693_v14 = vmax.f32 %v5713_v41, 0.0 }
 0x489   :  { %v5588_v7 = vadd.f32 %v3688_v0, %v2343_v33  ;;  %v5716_v31 = vadd.f32 %v4394_v55, %v2343_v33  ;;  %v4692_v6 = vmax.f32 %v5586_v21, 0.0  ;;  %v4694_v61 = vmax.f32 %v5714_v11, 0.0  ;;  %v2363_v9 = vpop.permute.xlu0 %2362  ;;  %v2358_v10 = vpop.permute.xlu1 %2357 }
 0x48a   :  { %v4695_v56 = vmax.f32 %v5587_v39, 0.0  ;;  %v4697_v45 = vmax.f32 %v5715_v49, 0.0 }
 0x48b   :  { %v4696_v13 = vmax.f32 %v5588_v7, 0.0  ;;  %v4698_v58 = vmax.f32 %v5716_v31, 0.0 }
 0x48c   :  { %v4915_v26 = vpack.c.bf16 %v4695_v56, %v4691_v8  ;;  %v4917_v59 = vpack.c.bf16 %v4697_v45, %v4693_v14 }
 0x48d   :  { %v4916_v34 = vpack.c.bf16 %v4696_v13, %v4692_v6  ;;  %v4918_v12 = vpack.c.bf16 %v4698_v58, %v4694_v61  ;;  %v3692_v17 = vpop.f32.mrb[164].mxu0  ;;  %v4398_v44 = vpop.f32.mrb[164].mxu1 }
 0x48e   :  { %v5589_v1 = vadd.f32 %v3692_v17, %v2348_v25  ;;  %v5717_v37 = vadd.f32 %v4398_v44, %v2348_v25  ;;  %v3694_v36 = vpop.f32.mrb[165].mxu0  ;;  %v4400_v48 = vpop.f32.mrb[165].mxu1 }
 0x48f   :  { %v5590_v19 = vadd.f32 %v3694_v36, %v2348_v25  ;;  %v5718_v16 = vadd.f32 %v4400_v48, %v2348_v25  ;;  %v3696_v18 = vpop.f32.mrb[166].mxu0  ;;  %v4402_v20 = vpop.f32.mrb[166].mxu1  ;;  %5043 = vmatprep.subr.bf16.mxu0 %v4916_v34  ;;  %5125 = vmatprep.subr.bf16.mxu1 %v4918_v12 }
 0x490   :  { %v5591_v24 = vadd.f32 %v3696_v18, %v2353_v35  ;;  %v5719_v57 = vadd.f32 %v4402_v20, %v2353_v35  ;;  %v3698_v32 = vpop.f32.mrb[167].mxu0  ;;  %v4404_v51 = vpop.f32.mrb[167].mxu1  ;;  %5044 = vmatpush1.bf16.msra.mxu0 %v4915_v26  ;;  %5126 = vmatpush1.bf16.msra.mxu1 %v4917_v59  ;;  %v4699_v27 = vmax.f32 %v5589_v1, 0.0  ;;  %v4701_v52 = vmax.f32 %v5717_v37, 0.0 }
 0x491   :  { %v5592_v38 = vadd.f32 %v3698_v32, %v2353_v35  ;;  %v5720_v53 = vadd.f32 %v4404_v51, %v2353_v35  ;;  %v4700_v50 = vmax.f32 %v5590_v19, 0.0  ;;  %v4702_v62 = vmax.f32 %v5718_v16, 0.0  ;;  %v2373_v17 = vpop.permute.xlu0 %2372  ;;  %v2368_v44 = vpop.permute.xlu1 %2367 }
 0x492   :  { %v4703_v33 = vmax.f32 %v5591_v24, 0.0  ;;  %v4705_v22 = vmax.f32 %v5719_v57, 0.0 }
 0x493   :  { %v4704_v60 = vmax.f32 %v5592_v38, 0.0  ;;  %v4706_v15 = vmax.f32 %v5720_v53, 0.0 }
 0x494   :  { %v4919_v43 = vpack.c.bf16 %v4703_v33, %v4699_v27  ;;  %v4921_v41 = vpack.c.bf16 %v4705_v22, %v4701_v52 }
 0x495   :  { %v4920_v54 = vpack.c.bf16 %v4704_v60, %v4700_v50  ;;  %v4922_v30 = vpack.c.bf16 %v4706_v15, %v4702_v62  ;;  %v3702_v21 = vpop.f32.mrb[168].mxu0  ;;  %v4408_v11 = vpop.f32.mrb[168].mxu1 }
 0x496   :  { %v5593_v46 = vadd.f32 %v3702_v21, %v2358_v10  ;;  %v5721_v40 = vadd.f32 %v4408_v11, %v2358_v10  ;;  %v3704_v39 = vpop.f32.mrb[169].mxu0  ;;  %v4410_v49 = vpop.f32.mrb[169].mxu1 }
 0x497   :  { %v5594_v0 = vadd.f32 %v3704_v39, %v2358_v10  ;;  %v5722_v55 = vadd.f32 %v4410_v49, %v2358_v10  ;;  %v3706_v7 = vpop.f32.mrb[170].mxu0  ;;  %v4412_v31 = vpop.f32.mrb[170].mxu1  ;;  %5045 = vmatprep.subr.bf16.mxu0 %v4920_v54  ;;  %5127 = vmatprep.subr.bf16.mxu1 %v4922_v30 }
 0x498   :  { %v5595_v8 = vadd.f32 %v3706_v7, %v2363_v9  ;;  %v5723_v14 = vadd.f32 %v4412_v31, %v2363_v9  ;;  %v3708_v56 = vpop.f32.mrb[171].mxu0  ;;  %v4414_v45 = vpop.f32.mrb[171].mxu1  ;;  %5046 = vmatpush1.bf16.msra.mxu0 %v4919_v43  ;;  %5128 = vmatpush1.bf16.msra.mxu1 %v4921_v41  ;;  %v4707_v13 = vmax.f32 %v5593_v46, 0.0  ;;  %v4709_v58 = vmax.f32 %v5721_v40, 0.0 }
 0x499   :  { %v5596_v6 = vadd.f32 %v3708_v56, %v2363_v9  ;;  %v5724_v61 = vadd.f32 %v4414_v45, %v2363_v9  ;;  %v4708_v26 = vmax.f32 %v5594_v0, 0.0  ;;  %v4710_v59 = vmax.f32 %v5722_v55, 0.0  ;;  %v2383_v21 = vpop.permute.xlu0 %2382  ;;  %v2378_v11 = vpop.permute.xlu1 %2377 }
 0x49a   :  { %v4711_v35 = vmax.f32 %v5595_v8, 0.0  ;;  %v4713_v25 = vmax.f32 %v5723_v14, 0.0 }
 0x49b   :  { %v4712_v34 = vmax.f32 %v5596_v6, 0.0  ;;  %v4714_v12 = vmax.f32 %v5724_v61, 0.0 }
 0x49c   :  { %v4923_v1 = vpack.c.bf16 %v4711_v35, %v4707_v13  ;;  %v4925_v37 = vpack.c.bf16 %v4713_v25, %v4709_v58 }
 0x49d   :  { %v4924_v36 = vpack.c.bf16 %v4712_v34, %v4708_v26  ;;  %v4926_v48 = vpack.c.bf16 %v4714_v12, %v4710_v59  ;;  %v3712_v19 = vpop.f32.mrb[172].mxu0  ;;  %v4418_v16 = vpop.f32.mrb[172].mxu1 }
 0x49e   :  { %v5597_v18 = vadd.f32 %v3712_v19, %v2368_v44  ;;  %v5725_v20 = vadd.f32 %v4418_v16, %v2368_v44  ;;  %v3714_v24 = vpop.f32.mrb[173].mxu0  ;;  %v4420_v57 = vpop.f32.mrb[173].mxu1 }
 0x49f   :  { %v5598_v32 = vadd.f32 %v3714_v24, %v2368_v44  ;;  %v5726_v51 = vadd.f32 %v4420_v57, %v2368_v44  ;;  %v3716_v38 = vpop.f32.mrb[174].mxu0  ;;  %v4422_v53 = vpop.f32.mrb[174].mxu1  ;;  %5047 = vmatprep.subr.bf16.mxu0 %v4924_v36  ;;  %5129 = vmatprep.subr.bf16.mxu1 %v4926_v48 }
 0x4a0   :  { %v5599_v27 = vadd.f32 %v3716_v38, %v2373_v17  ;;  %v5727_v52 = vadd.f32 %v4422_v53, %v2373_v17  ;;  %v3718_v33 = vpop.f32.mrb[175].mxu0  ;;  %v4424_v22 = vpop.f32.mrb[175].mxu1  ;;  %5048 = vmatpush1.bf16.msra.mxu0 %v4923_v1  ;;  %5130 = vmatpush1.bf16.msra.mxu1 %v4925_v37  ;;  %v4715_v60 = vmax.f32 %v5597_v18, 0.0  ;;  %v4717_v15 = vmax.f32 %v5725_v20, 0.0 }
 0x4a1   :  { %v5600_v50 = vadd.f32 %v3718_v33, %v2373_v17  ;;  %v5728_v62 = vadd.f32 %v4424_v22, %v2373_v17  ;;  %v4716_v43 = vmax.f32 %v5598_v32, 0.0  ;;  %v4718_v41 = vmax.f32 %v5726_v51, 0.0  ;;  %v2393_v19 = vpop.permute.xlu0 %2392  ;;  %v2388_v16 = vpop.permute.xlu1 %2387 }
 0x4a2   :  { %v4719_v9 = vmax.f32 %v5599_v27, 0.0  ;;  %v4721_v10 = vmax.f32 %v5727_v52, 0.0 }
 0x4a3   :  { %v4720_v54 = vmax.f32 %v5600_v50, 0.0  ;;  %v4722_v30 = vmax.f32 %v5728_v62, 0.0 }
 0x4a4   :  { %v4927_v46 = vpack.c.bf16 %v4719_v9, %v4715_v60  ;;  %v4929_v40 = vpack.c.bf16 %v4721_v10, %v4717_v15 }
 0x4a5   :  { %v4928_v39 = vpack.c.bf16 %v4720_v54, %v4716_v43  ;;  %v4930_v49 = vpack.c.bf16 %v4722_v30, %v4718_v41  ;;  %v3722_v0 = vpop.f32.mrb[176].mxu0  ;;  %v4428_v55 = vpop.f32.mrb[176].mxu1 }
 0x4a6   :  { %v5601_v7 = vadd.f32 %v3722_v0, %v2378_v11  ;;  %v5729_v31 = vadd.f32 %v4428_v55, %v2378_v11  ;;  %v3724_v8 = vpop.f32.mrb[177].mxu0  ;;  %v4430_v14 = vpop.f32.mrb[177].mxu1 }
 0x4a7   :  { %v5602_v56 = vadd.f32 %v3724_v8, %v2378_v11  ;;  %v5730_v45 = vadd.f32 %v4430_v14, %v2378_v11  ;;  %v3726_v6 = vpop.f32.mrb[178].mxu0  ;;  %v4432_v61 = vpop.f32.mrb[178].mxu1  ;;  %5049 = vmatprep.subr.bf16.mxu0 %v4928_v39  ;;  %5131 = vmatprep.subr.bf16.mxu1 %v4930_v49 }
 0x4a8   :  { %v5603_v13 = vadd.f32 %v3726_v6, %v2383_v21  ;;  %v5731_v58 = vadd.f32 %v4432_v61, %v2383_v21  ;;  %v3728_v35 = vpop.f32.mrb[179].mxu0  ;;  %v4434_v25 = vpop.f32.mrb[179].mxu1  ;;  %5050 = vmatpush1.bf16.msra.mxu0 %v4927_v46  ;;  %5132 = vmatpush1.bf16.msra.mxu1 %v4929_v40  ;;  %v4723_v34 = vmax.f32 %v5601_v7, 0.0  ;;  %v4725_v12 = vmax.f32 %v5729_v31, 0.0 }
 0x4a9   :  { %v5604_v26 = vadd.f32 %v3728_v35, %v2383_v21  ;;  %v5732_v59 = vadd.f32 %v4434_v25, %v2383_v21  ;;  %v4724_v1 = vmax.f32 %v5602_v56, 0.0  ;;  %v4726_v37 = vmax.f32 %v5730_v45, 0.0  ;;  %v2403_v0 = vpop.permute.xlu0 %2402  ;;  %v2398_v55 = vpop.permute.xlu1 %2397 }
 0x4aa   :  { %v4727_v17 = vmax.f32 %v5603_v13, 0.0  ;;  %v4729_v44 = vmax.f32 %v5731_v58, 0.0 }
 0x4ab   :  { %v4728_v36 = vmax.f32 %v5604_v26, 0.0  ;;  %v4730_v48 = vmax.f32 %v5732_v59, 0.0 }
 0x4ac   :  { %v4931_v18 = vpack.c.bf16 %v4727_v17, %v4723_v34  ;;  %v4933_v20 = vpack.c.bf16 %v4729_v44, %v4725_v12 }
 0x4ad   :  { %v4932_v24 = vpack.c.bf16 %v4728_v36, %v4724_v1  ;;  %v4934_v57 = vpack.c.bf16 %v4730_v48, %v4726_v37  ;;  %v3732_v32 = vpop.f32.mrb[180].mxu0  ;;  %v4438_v51 = vpop.f32.mrb[180].mxu1 }
 0x4ae   :  { %v5605_v38 = vadd.f32 %v3732_v32, %v2388_v16  ;;  %v5733_v53 = vadd.f32 %v4438_v51, %v2388_v16  ;;  %v3734_v27 = vpop.f32.mrb[181].mxu0  ;;  %v4440_v52 = vpop.f32.mrb[181].mxu1 }
 0x4af   :  { %v5606_v33 = vadd.f32 %v3734_v27, %v2388_v16  ;;  %v5734_v22 = vadd.f32 %v4440_v52, %v2388_v16  ;;  %v3736_v50 = vpop.f32.mrb[182].mxu0  ;;  %v4442_v62 = vpop.f32.mrb[182].mxu1  ;;  %5051 = vmatprep.subr.bf16.mxu0 %v4932_v24  ;;  %5133 = vmatprep.subr.bf16.mxu1 %v4934_v57 }
 0x4b0   :  { %v5607_v60 = vadd.f32 %v3736_v50, %v2393_v19  ;;  %v5735_v15 = vadd.f32 %v4442_v62, %v2393_v19  ;;  %v3738_v9 = vpop.f32.mrb[183].mxu0  ;;  %v4444_v10 = vpop.f32.mrb[183].mxu1  ;;  %5052 = vmatpush1.bf16.msra.mxu0 %v4931_v18  ;;  %5134 = vmatpush1.bf16.msra.mxu1 %v4933_v20  ;;  %v4731_v54 = vmax.f32 %v5605_v38, 0.0  ;;  %v4733_v30 = vmax.f32 %v5733_v53, 0.0 }
 0x4b1   :  { %v5608_v43 = vadd.f32 %v3738_v9, %v2393_v19  ;;  %v5736_v41 = vadd.f32 %v4444_v10, %v2393_v19  ;;  %v4732_v46 = vmax.f32 %v5606_v33, 0.0  ;;  %v4734_v40 = vmax.f32 %v5734_v22, 0.0  ;;  %v2413_v32 = vpop.permute.xlu0 %2412  ;;  %v2408_v51 = vpop.permute.xlu1 %2407 }
 0x4b2   :  { %v4735_v21 = vmax.f32 %v5607_v60, 0.0  ;;  %v4737_v11 = vmax.f32 %v5735_v15, 0.0 }
 0x4b3   :  { %v4736_v39 = vmax.f32 %v5608_v43, 0.0  ;;  %v4738_v49 = vmax.f32 %v5736_v41, 0.0 }
 0x4b4   :  { %v4935_v7 = vpack.c.bf16 %v4735_v21, %v4731_v54  ;;  %v4937_v31 = vpack.c.bf16 %v4737_v11, %v4733_v30 }
 0x4b5   :  { %v4936_v8 = vpack.c.bf16 %v4736_v39, %v4732_v46  ;;  %v4938_v14 = vpack.c.bf16 %v4738_v49, %v4734_v40  ;;  %v3742_v56 = vpop.f32.mrb[184].mxu0  ;;  %v4448_v45 = vpop.f32.mrb[184].mxu1 }
 0x4b6   :  { %v5609_v6 = vadd.f32 %v3742_v56, %v2398_v55  ;;  %v5737_v61 = vadd.f32 %v4448_v45, %v2398_v55  ;;  %v3744_v13 = vpop.f32.mrb[185].mxu0  ;;  %v4450_v58 = vpop.f32.mrb[185].mxu1 }
 0x4b7   :  { %v5610_v35 = vadd.f32 %v3744_v13, %v2398_v55  ;;  %v5738_v25 = vadd.f32 %v4450_v58, %v2398_v55  ;;  %v3746_v26 = vpop.f32.mrb[186].mxu0  ;;  %v4452_v59 = vpop.f32.mrb[186].mxu1  ;;  %5053 = vmatprep.subr.bf16.mxu0 %v4936_v8  ;;  %5135 = vmatprep.subr.bf16.mxu1 %v4938_v14 }
 0x4b8   :  { %v5611_v34 = vadd.f32 %v3746_v26, %v2403_v0  ;;  %v5739_v12 = vadd.f32 %v4452_v59, %v2403_v0  ;;  %v3748_v17 = vpop.f32.mrb[187].mxu0  ;;  %v4454_v44 = vpop.f32.mrb[187].mxu1  ;;  %5054 = vmatpush1.bf16.msra.mxu0 %v4935_v7  ;;  %5136 = vmatpush1.bf16.msra.mxu1 %v4937_v31  ;;  %v4739_v36 = vmax.f32 %v5609_v6, 0.0  ;;  %v4741_v48 = vmax.f32 %v5737_v61, 0.0 }
 0x4b9   :  { %v5612_v1 = vadd.f32 %v3748_v17, %v2403_v0  ;;  %v5740_v37 = vadd.f32 %v4454_v44, %v2403_v0  ;;  %v4740_v18 = vmax.f32 %v5610_v35, 0.0  ;;  %v4742_v20 = vmax.f32 %v5738_v25, 0.0  ;;  %v2423_v56 = vpop.permute.xlu0 %2422  ;;  %v2418_v45 = vpop.permute.xlu1 %2417 }
 0x4ba   :  { %v4743_v19 = vmax.f32 %v5611_v34, 0.0  ;;  %v4745_v16 = vmax.f32 %v5739_v12, 0.0 }
 0x4bb   :  { %v4744_v24 = vmax.f32 %v5612_v1, 0.0  ;;  %v4746_v57 = vmax.f32 %v5740_v37, 0.0 }
 0x4bc   :  { %v4939_v38 = vpack.c.bf16 %v4743_v19, %v4739_v36  ;;  %v4941_v53 = vpack.c.bf16 %v4745_v16, %v4741_v48  ;;  %v5549_v36 = vcombine.low %v7727_v29, %v7727_v29 }
 0x4bd   :  { %v4940_v27 = vpack.c.bf16 %v4744_v24, %v4740_v18  ;;  %v4942_v52 = vpack.c.bf16 %v4746_v57, %v4742_v20  ;;  %v3752_v33 = vpop.f32.mrb[188].mxu0  ;;  %v4458_v22 = vpop.f32.mrb[188].mxu1  ;;  %v5012_v20 = vld [vmem:[%s7797_s7 + $0x8] sm:$0x77] }
 0x4be   :  { %v5613_v50 = vadd.f32 %v3752_v33, %v2408_v51  ;;  %v5741_v62 = vadd.f32 %v4458_v22, %v2408_v51  ;;  %v3754_v60 = vpop.f32.mrb[189].mxu0  ;;  %v4460_v15 = vpop.f32.mrb[189].mxu1 }
 0x4bf   :  { %v5614_v9 = vadd.f32 %v3754_v60, %v2408_v51  ;;  %v5742_v10 = vadd.f32 %v4460_v15, %v2408_v51  ;;  %v3756_v43 = vpop.f32.mrb[190].mxu0  ;;  %v4462_v41 = vpop.f32.mrb[190].mxu1  ;;  %5055 = vmatprep.subr.bf16.mxu0 %v4940_v27  ;;  %5137 = vmatprep.subr.bf16.mxu1 %v4942_v52  ;;  %v5552_v27 = vcombine.high %v5012_v20, %v5012_v20 }
 0x4c0   :  { %v5615_v54 = vadd.f32 %v3756_v43, %v2413_v32  ;;  %v5743_v30 = vadd.f32 %v4462_v41, %v2413_v32  ;;  %v3758_v21 = vpop.f32.mrb[191].mxu0  ;;  %v4464_v11 = vpop.f32.mrb[191].mxu1  ;;  %5056 = vmatpush1.bf16.msra.mxu0 %v4939_v38  ;;  %5138 = vmatpush1.bf16.msra.mxu1 %v4941_v53  ;;  %v4747_v39 = vmax.f32 %v5613_v50, 0.0  ;;  %v4749_v49 = vmax.f32 %v5741_v62, 0.0 }
 0x4c1   :  { %v5616_v46 = vadd.f32 %v3758_v21, %v2413_v32  ;;  %v5744_v40 = vadd.f32 %v4464_v11, %v2413_v32  ;;  %v4748_v7 = vmax.f32 %v5614_v9, 0.0  ;;  %v4750_v31 = vmax.f32 %v5742_v10, 0.0  ;;  %v2433_v50 = vpop.permute.xlu0 %2432  ;;  %v2428_v62 = vpop.permute.xlu1 %2427 }
 0x4c2   :  { %v4751_v0 = vmax.f32 %v5615_v54, 0.0  ;;  %v4753_v55 = vmax.f32 %v5743_v30, 0.0 }
 0x4c3   :  { %v4752_v8 = vmax.f32 %v5616_v46, 0.0  ;;  %v4754_v14 = vmax.f32 %v5744_v40, 0.0 }
 0x4c4   :  { %v4943_v6 = vpack.c.bf16 %v4751_v0, %v4747_v39  ;;  %v4945_v61 = vpack.c.bf16 %v4753_v55, %v4749_v49 }
 0x4c5   :  { %v4944_v13 = vpack.c.bf16 %v4752_v8, %v4748_v7  ;;  %v4946_v58 = vpack.c.bf16 %v4754_v14, %v4750_v31  ;;  %v3762_v35 = vpop.f32.mrb[192].mxu0  ;;  %v4468_v25 = vpop.f32.mrb[192].mxu1 }
 0x4c6   :  { %v5617_v26 = vadd.f32 %v3762_v35, %v2418_v45  ;;  %v5745_v59 = vadd.f32 %v4468_v25, %v2418_v45  ;;  %v3764_v34 = vpop.f32.mrb[193].mxu0  ;;  %v4470_v12 = vpop.f32.mrb[193].mxu1 }
 0x4c7   :  { %v5618_v17 = vadd.f32 %v3764_v34, %v2418_v45  ;;  %v5746_v44 = vadd.f32 %v4470_v12, %v2418_v45  ;;  %v3766_v1 = vpop.f32.mrb[194].mxu0  ;;  %v4472_v37 = vpop.f32.mrb[194].mxu1  ;;  %5057 = vmatprep.subr.bf16.mxu0 %v4944_v13  ;;  %5139 = vmatprep.subr.bf16.mxu1 %v4946_v58 }
 0x4c8   :  { %v5619_v48 = vadd.f32 %v3766_v1, %v2423_v56  ;;  %v5747_v19 = vadd.f32 %v4472_v37, %v2423_v56  ;;  %v3768_v16 = vpop.f32.mrb[195].mxu0  ;;  %v4474_v18 = vpop.f32.mrb[195].mxu1  ;;  %5058 = vmatpush1.bf16.msra.mxu0 %v4943_v6  ;;  %5140 = vmatpush1.bf16.msra.mxu1 %v4945_v61  ;;  %v4755_v24 = vmax.f32 %v5617_v26, 0.0  ;;  %v4757_v51 = vmax.f32 %v5745_v59, 0.0 }
 0x4c9   :  { %v5620_v57 = vadd.f32 %v3768_v16, %v2423_v56  ;;  %v5748_v32 = vadd.f32 %v4474_v18, %v2423_v56  ;;  %v4756_v52 = vmax.f32 %v5618_v17, 0.0  ;;  %v4758_v33 = vmax.f32 %v5746_v44, 0.0  ;;  %v2443_v26 = vpop.permute.xlu0 %2442  ;;  %v2438_v59 = vpop.permute.xlu1 %2437 }
 0x4ca   :  { %v4759_v38 = vmax.f32 %v5619_v48, 0.0  ;;  %v4761_v53 = vmax.f32 %v5747_v19, 0.0 }
 0x4cb   :  { %v4760_v29 = vmax.f32 %v5620_v57, 0.0  ;;  %v4762_v22 = vmax.f32 %v5748_v32, 0.0  ;;  %5060 = vmatmul.mubr.bf16.vlgmr.msra.gmra.mrb[0].mxu0 %v5549_v36  ;;  %5142 = vmatmul.mubr.bf16.vlgmr.msra.gmra.mrb[0].mxu1 %v5549_v36 }
 0x4cc   :  { %v4947_v60 = vpack.c.bf16 %v4759_v38, %v4755_v24  ;;  %v4949_v15 = vpack.c.bf16 %v4761_v53, %v4757_v51  ;;  %5100 = vmatprep.mubr.bf16.mxu0 %v5552_v27  ;;  %5182 = vmatprep.mubr.bf16.mxu1 %v5552_v27 }
 0x4cd   :  { %v4948_v9 = vpack.c.bf16 %v4760_v29, %v4756_v52  ;;  %v4950_v10 = vpack.c.bf16 %v4762_v22, %v4758_v33  ;;  %v3772_v43 = vpop.f32.mrb[196].mxu0  ;;  %v4478_v41 = vpop.f32.mrb[196].mxu1 }
 0x4ce   :  { %v5621_v54 = vadd.f32 %v3772_v43, %v2428_v62  ;;  %v5749_v30 = vadd.f32 %v4478_v41, %v2428_v62  ;;  %v3774_v21 = vpop.f32.mrb[197].mxu0  ;;  %v4480_v11 = vpop.f32.mrb[197].mxu1 }
 0x4cf   :  { %v5622_v46 = vadd.f32 %v3774_v21, %v2428_v62  ;;  %v5750_v40 = vadd.f32 %v4480_v11, %v2428_v62  ;;  %v3776_v39 = vpop.f32.mrb[198].mxu0  ;;  %v4482_v49 = vpop.f32.mrb[198].mxu1  ;;  %5068 = vmatprep.subr.bf16.mxu0 %v4948_v9  ;;  %5150 = vmatprep.subr.bf16.mxu1 %v4950_v10 }
 0x4d0   :  { %v5623_v0 = vadd.f32 %v3776_v39, %v2433_v50  ;;  %v5751_v55 = vadd.f32 %v4482_v49, %v2433_v50  ;;  %v3778_v7 = vpop.f32.mrb[199].mxu0  ;;  %v4484_v31 = vpop.f32.mrb[199].mxu1  ;;  %5069 = vmatpush1.bf16.msra.mxu0 %v4947_v60  ;;  %5151 = vmatpush1.bf16.msra.mxu1 %v4949_v15  ;;  %v4763_v56 = vmax.f32 %v5621_v54, 0.0  ;;  %v4765_v45 = vmax.f32 %v5749_v30, 0.0 }
 0x4d1   :  { %v5624_v8 = vadd.f32 %v3778_v7, %v2433_v50  ;;  %v5752_v14 = vadd.f32 %v4484_v31, %v2433_v50  ;;  %v4764_v13 = vmax.f32 %v5622_v46, 0.0  ;;  %v4766_v58 = vmax.f32 %v5750_v40, 0.0  ;;  %v2453_v10 = vpop.permute.xlu0 %2452  ;;  %v2448_v43 = vpop.permute.xlu1 %2447 }
 0x4d2   :  { %v4767_v6 = vmax.f32 %v5623_v0, 0.0  ;;  %v4769_v61 = vmax.f32 %v5751_v55, 0.0 }
 0x4d3   :  { %v4768_v35 = vmax.f32 %v5624_v8, 0.0  ;;  %v4770_v25 = vmax.f32 %v5752_v14, 0.0 }
 0x4d4   :  { %v4951_v34 = vpack.c.bf16 %v4767_v6, %v4763_v56  ;;  %v4953_v12 = vpack.c.bf16 %v4769_v61, %v4765_v45 }
 0x4d5   :  { %v4952_v17 = vpack.c.bf16 %v4768_v35, %v4764_v13  ;;  %v4954_v44 = vpack.c.bf16 %v4770_v25, %v4766_v58  ;;  %v3782_v1 = vpop.f32.mrb[200].mxu0  ;;  %v4488_v37 = vpop.f32.mrb[200].mxu1 }
 0x4d6   :  { %v5625_v36 = vadd.f32 %v3782_v1, %v2438_v59  ;;  %v5753_v48 = vadd.f32 %v4488_v37, %v2438_v59  ;;  %v3784_v19 = vpop.f32.mrb[201].mxu0  ;;  %v4490_v16 = vpop.f32.mrb[201].mxu1 }
 0x4d7   :  { %v5626_v18 = vadd.f32 %v3784_v19, %v2438_v59  ;;  %v5754_v20 = vadd.f32 %v4490_v16, %v2438_v59  ;;  %v3786_v24 = vpop.f32.mrb[202].mxu0  ;;  %v4492_v57 = vpop.f32.mrb[202].mxu1  ;;  %5070 = vmatprep.subr.bf16.mxu0 %v4952_v17  ;;  %5152 = vmatprep.subr.bf16.mxu1 %v4954_v44 }
 0x4d8   :  { %v5627_v32 = vadd.f32 %v3786_v24, %v2443_v26  ;;  %v5755_v51 = vadd.f32 %v4492_v57, %v2443_v26  ;;  %v3788_v38 = vpop.f32.mrb[203].mxu0  ;;  %v4494_v53 = vpop.f32.mrb[203].mxu1  ;;  %5071 = vmatpush1.bf16.msra.mxu0 %v4951_v34  ;;  %5153 = vmatpush1.bf16.msra.mxu1 %v4953_v12  ;;  %v4771_v33 = vmax.f32 %v5625_v36, 0.0  ;;  %v4773_v29 = vmax.f32 %v5753_v48, 0.0 }
 0x4d9   :  { %v5628_v27 = vadd.f32 %v3788_v38, %v2443_v26  ;;  %v5756_v52 = vadd.f32 %v4494_v53, %v2443_v26  ;;  %v4772_v62 = vmax.f32 %v5626_v18, 0.0  ;;  %v4774_v60 = vmax.f32 %v5754_v20, 0.0  ;;  %v2463_v44 = vpop.permute.xlu0 %2462  ;;  %v2458_v1 = vpop.permute.xlu1 %2457 }
 0x4da   :  { %v4775_v22 = vmax.f32 %v5627_v32, 0.0  ;;  %v4777_v50 = vmax.f32 %v5755_v51, 0.0 }
 0x4db   :  { %v4776_v15 = vmax.f32 %v5628_v27, 0.0  ;;  %v4778_v9 = vmax.f32 %v5756_v52, 0.0 }
 0x4dc   :  { %v4955_v41 = vpack.c.bf16 %v4775_v22, %v4771_v33  ;;  %v4957_v54 = vpack.c.bf16 %v4777_v50, %v4773_v29 }
 0x4dd   :  { %v4956_v30 = vpack.c.bf16 %v4776_v15, %v4772_v62  ;;  %v4958_v21 = vpack.c.bf16 %v4778_v9, %v4774_v60  ;;  %v3792_v11 = vpop.f32.mrb[204].mxu0  ;;  %v4498_v46 = vpop.f32.mrb[204].mxu1 }
 0x4de   :  { %v5629_v40 = vadd.f32 %v3792_v11, %v2448_v43  ;;  %v5757_v39 = vadd.f32 %v4498_v46, %v2448_v43  ;;  %v3794_v49 = vpop.f32.mrb[205].mxu0  ;;  %v4500_v0 = vpop.f32.mrb[205].mxu1 }
 0x4df   :  { %v5630_v55 = vadd.f32 %v3794_v49, %v2448_v43  ;;  %v5758_v7 = vadd.f32 %v4500_v0, %v2448_v43  ;;  %v3796_v31 = vpop.f32.mrb[206].mxu0  ;;  %v4502_v8 = vpop.f32.mrb[206].mxu1  ;;  %5072 = vmatprep.subr.bf16.mxu0 %v4956_v30  ;;  %5154 = vmatprep.subr.bf16.mxu1 %v4958_v21 }
 0x4e0   :  { %v5631_v14 = vadd.f32 %v3796_v31, %v2453_v10  ;;  %v5759_v56 = vadd.f32 %v4502_v8, %v2453_v10  ;;  %v3798_v45 = vpop.f32.mrb[207].mxu0  ;;  %v4504_v6 = vpop.f32.mrb[207].mxu1  ;;  %5073 = vmatpush1.bf16.msra.mxu0 %v4955_v41  ;;  %5155 = vmatpush1.bf16.msra.mxu1 %v4957_v54  ;;  %v4779_v58 = vmax.f32 %v5629_v40, 0.0  ;;  %v4781_v35 = vmax.f32 %v5757_v39, 0.0 }
 0x4e1   :  { %v5632_v61 = vadd.f32 %v3798_v45, %v2453_v10  ;;  %v5760_v13 = vadd.f32 %v4504_v6, %v2453_v10  ;;  %v4780_v59 = vmax.f32 %v5630_v55, 0.0  ;;  %v4782_v34 = vmax.f32 %v5758_v7, 0.0  ;;  %v2473_v21 = vpop.permute.xlu0 %2472  ;;  %v2468_v11 = vpop.permute.xlu1 %2467 }
 0x4e2   :  { %v4783_v25 = vmax.f32 %v5631_v14, 0.0  ;;  %v4785_v26 = vmax.f32 %v5759_v56, 0.0 }
 0x4e3   :  { %v4784_v12 = vmax.f32 %v5632_v61, 0.0  ;;  %v4786_v17 = vmax.f32 %v5760_v13, 0.0 }
 0x4e4   :  { %v4959_v37 = vpack.c.bf16 %v4783_v25, %v4779_v58  ;;  %v4961_v36 = vpack.c.bf16 %v4785_v26, %v4781_v35 }
 0x4e5   :  { %v4960_v48 = vpack.c.bf16 %v4784_v12, %v4780_v59  ;;  %v4962_v19 = vpack.c.bf16 %v4786_v17, %v4782_v34  ;;  %v3802_v16 = vpop.f32.mrb[208].mxu0  ;;  %v4508_v18 = vpop.f32.mrb[208].mxu1 }
 0x4e6   :  { %v5633_v20 = vadd.f32 %v3802_v16, %v2458_v1  ;;  %v5761_v24 = vadd.f32 %v4508_v18, %v2458_v1  ;;  %v3804_v57 = vpop.f32.mrb[209].mxu0  ;;  %v4510_v32 = vpop.f32.mrb[209].mxu1 }
 0x4e7   :  { %v5634_v51 = vadd.f32 %v3804_v57, %v2458_v1  ;;  %v5762_v38 = vadd.f32 %v4510_v32, %v2458_v1  ;;  %v3806_v53 = vpop.f32.mrb[210].mxu0  ;;  %v4512_v27 = vpop.f32.mrb[210].mxu1  ;;  %5074 = vmatprep.subr.bf16.mxu0 %v4960_v48  ;;  %5156 = vmatprep.subr.bf16.mxu1 %v4962_v19 }
 0x4e8   :  { %v5635_v52 = vadd.f32 %v3806_v53, %v2463_v44  ;;  %v5763_v33 = vadd.f32 %v4512_v27, %v2463_v44  ;;  %v3808_v29 = vpop.f32.mrb[211].mxu0  ;;  %v4514_v22 = vpop.f32.mrb[211].mxu1  ;;  %5075 = vmatpush1.bf16.msra.mxu0 %v4959_v37  ;;  %5157 = vmatpush1.bf16.msra.mxu1 %v4961_v36  ;;  %v4787_v60 = vmax.f32 %v5633_v20, 0.0  ;;  %v4789_v15 = vmax.f32 %v5761_v24, 0.0 }
 0x4e9   :  { %v5636_v50 = vadd.f32 %v3808_v29, %v2463_v44  ;;  %v5764_v62 = vadd.f32 %v4514_v22, %v2463_v44  ;;  %v4788_v43 = vmax.f32 %v5634_v51, 0.0  ;;  %v4790_v41 = vmax.f32 %v5762_v38, 0.0  ;;  %v2483_v19 = vpop.permute.xlu0 %2482  ;;  %v2478_v16 = vpop.permute.xlu1 %2477 }
 0x4ea   :  { %v4791_v9 = vmax.f32 %v5635_v52, 0.0  ;;  %v4793_v10 = vmax.f32 %v5763_v33, 0.0 }
 0x4eb   :  { %v4792_v54 = vmax.f32 %v5636_v50, 0.0  ;;  %v4794_v30 = vmax.f32 %v5764_v62, 0.0 }
 0x4ec   :  { %v4963_v46 = vpack.c.bf16 %v4791_v9, %v4787_v60  ;;  %v4965_v40 = vpack.c.bf16 %v4793_v10, %v4789_v15 }
 0x4ed   :  { %v4964_v39 = vpack.c.bf16 %v4792_v54, %v4788_v43  ;;  %v4966_v49 = vpack.c.bf16 %v4794_v30, %v4790_v41  ;;  %v3812_v0 = vpop.f32.mrb[212].mxu0  ;;  %v4518_v55 = vpop.f32.mrb[212].mxu1 }
 0x4ee   :  { %v5637_v7 = vadd.f32 %v3812_v0, %v2468_v11  ;;  %v5765_v31 = vadd.f32 %v4518_v55, %v2468_v11  ;;  %v3814_v8 = vpop.f32.mrb[213].mxu0  ;;  %v4520_v14 = vpop.f32.mrb[213].mxu1 }
 0x4ef   :  { %v5638_v56 = vadd.f32 %v3814_v8, %v2468_v11  ;;  %v5766_v45 = vadd.f32 %v4520_v14, %v2468_v11  ;;  %v3816_v6 = vpop.f32.mrb[214].mxu0  ;;  %v4522_v61 = vpop.f32.mrb[214].mxu1  ;;  %5076 = vmatprep.subr.bf16.mxu0 %v4964_v39  ;;  %5158 = vmatprep.subr.bf16.mxu1 %v4966_v49 }
 0x4f0   :  { %v5639_v13 = vadd.f32 %v3816_v6, %v2473_v21  ;;  %v5767_v58 = vadd.f32 %v4522_v61, %v2473_v21  ;;  %v3818_v35 = vpop.f32.mrb[215].mxu0  ;;  %v4524_v25 = vpop.f32.mrb[215].mxu1  ;;  %5077 = vmatpush1.bf16.msra.mxu0 %v4963_v46  ;;  %5159 = vmatpush1.bf16.msra.mxu1 %v4965_v40  ;;  %v4795_v34 = vmax.f32 %v5637_v7, 0.0  ;;  %v4797_v12 = vmax.f32 %v5765_v31, 0.0 }
 0x4f1   :  { %v5640_v26 = vadd.f32 %v3818_v35, %v2473_v21  ;;  %v5768_v59 = vadd.f32 %v4524_v25, %v2473_v21  ;;  %v4796_v1 = vmax.f32 %v5638_v56, 0.0  ;;  %v4798_v37 = vmax.f32 %v5766_v45, 0.0  ;;  %v2493_v49 = vpop.permute.xlu0 %2492  ;;  %v2488_v0 = vpop.permute.xlu1 %2487 }
 0x4f2   :  { %v4799_v17 = vmax.f32 %v5639_v13, 0.0  ;;  %v4801_v44 = vmax.f32 %v5767_v58, 0.0 }
 0x4f3   :  { %v4800_v36 = vmax.f32 %v5640_v26, 0.0  ;;  %v4802_v48 = vmax.f32 %v5768_v59, 0.0 }
 0x4f4   :  { %v4967_v18 = vpack.c.bf16 %v4799_v17, %v4795_v34  ;;  %v4969_v20 = vpack.c.bf16 %v4801_v44, %v4797_v12 }
 0x4f5   :  { %v4968_v24 = vpack.c.bf16 %v4800_v36, %v4796_v1  ;;  %v4970_v57 = vpack.c.bf16 %v4802_v48, %v4798_v37  ;;  %v3822_v32 = vpop.f32.mrb[216].mxu0  ;;  %v4528_v51 = vpop.f32.mrb[216].mxu1 }
 0x4f6   :  { %v5641_v38 = vadd.f32 %v3822_v32, %v2478_v16  ;;  %v5769_v53 = vadd.f32 %v4528_v51, %v2478_v16  ;;  %v3824_v27 = vpop.f32.mrb[217].mxu0  ;;  %v4530_v52 = vpop.f32.mrb[217].mxu1 }
 0x4f7   :  { %v5642_v33 = vadd.f32 %v3824_v27, %v2478_v16  ;;  %v5770_v29 = vadd.f32 %v4530_v52, %v2478_v16  ;;  %v3826_v22 = vpop.f32.mrb[218].mxu0  ;;  %v4532_v50 = vpop.f32.mrb[218].mxu1  ;;  %5078 = vmatprep.subr.bf16.mxu0 %v4968_v24  ;;  %5160 = vmatprep.subr.bf16.mxu1 %v4970_v57 }
 0x4f8   :  { %v5643_v62 = vadd.f32 %v3826_v22, %v2483_v19  ;;  %v5771_v60 = vadd.f32 %v4532_v50, %v2483_v19  ;;  %v3828_v15 = vpop.f32.mrb[219].mxu0  ;;  %v4534_v9 = vpop.f32.mrb[219].mxu1  ;;  %5079 = vmatpush1.bf16.msra.mxu0 %v4967_v18  ;;  %5161 = vmatpush1.bf16.msra.mxu1 %v4969_v20  ;;  %v4803_v41 = vmax.f32 %v5641_v38, 0.0  ;;  %v4805_v54 = vmax.f32 %v5769_v53, 0.0 }
 0x4f9   :  { %v5644_v10 = vadd.f32 %v3828_v15, %v2483_v19  ;;  %v5772_v43 = vadd.f32 %v4534_v9, %v2483_v19  ;;  %v4804_v11 = vmax.f32 %v5642_v33, 0.0  ;;  %v4806_v46 = vmax.f32 %v5770_v29, 0.0  ;;  %v2503_v57 = vpop.permute.xlu0 %2502  ;;  %v2498_v32 = vpop.permute.xlu1 %2497 }
 0x4fa   :  { %v4807_v30 = vmax.f32 %v5643_v62, 0.0  ;;  %v4809_v21 = vmax.f32 %v5771_v60, 0.0 }
 0x4fb   :  { %v4808_v40 = vmax.f32 %v5644_v10, 0.0  ;;  %v4810_v39 = vmax.f32 %v5772_v43, 0.0 }
 0x4fc   :  { %v4971_v55 = vpack.c.bf16 %v4807_v30, %v4803_v41  ;;  %v4973_v7 = vpack.c.bf16 %v4809_v21, %v4805_v54 }
 0x4fd   :  { %v4972_v31 = vpack.c.bf16 %v4808_v40, %v4804_v11  ;;  %v4974_v8 = vpack.c.bf16 %v4810_v39, %v4806_v46  ;;  %v3832_v14 = vpop.f32.mrb[220].mxu0  ;;  %v4538_v56 = vpop.f32.mrb[220].mxu1 }
 0x4fe   :  { %v5645_v45 = vadd.f32 %v3832_v14, %v2488_v0  ;;  %v5773_v6 = vadd.f32 %v4538_v56, %v2488_v0  ;;  %v3834_v61 = vpop.f32.mrb[221].mxu0  ;;  %v4540_v13 = vpop.f32.mrb[221].mxu1 }
 0x4ff   :  { %v5646_v58 = vadd.f32 %v3834_v61, %v2488_v0  ;;  %v5774_v35 = vadd.f32 %v4540_v13, %v2488_v0  ;;  %v3836_v25 = vpop.f32.mrb[222].mxu0  ;;  %v4542_v26 = vpop.f32.mrb[222].mxu1  ;;  %5080 = vmatprep.subr.bf16.mxu0 %v4972_v31  ;;  %5162 = vmatprep.subr.bf16.mxu1 %v4974_v8 }
 0x500   :  { %v5647_v59 = vadd.f32 %v3836_v25, %v2493_v49  ;;  %v5775_v34 = vadd.f32 %v4542_v26, %v2493_v49  ;;  %v3838_v12 = vpop.f32.mrb[223].mxu0  ;;  %v4544_v17 = vpop.f32.mrb[223].mxu1  ;;  %5081 = vmatpush1.bf16.msra.mxu0 %v4971_v55  ;;  %5163 = vmatpush1.bf16.msra.mxu1 %v4973_v7  ;;  %v4811_v37 = vmax.f32 %v5645_v45, 0.0  ;;  %v4813_v36 = vmax.f32 %v5773_v6, 0.0 }
 0x501   :  { %v5648_v44 = vadd.f32 %v3838_v12, %v2493_v49  ;;  %v5776_v1 = vadd.f32 %v4544_v17, %v2493_v49  ;;  %v4812_v16 = vmax.f32 %v5646_v58, 0.0  ;;  %v4814_v18 = vmax.f32 %v5774_v35, 0.0  ;;  %v2513_v8 = vpop.permute.xlu0 %2512  ;;  %v2508_v14 = vpop.permute.xlu1 %2507 }
 0x502   :  { %v4815_v48 = vmax.f32 %v5647_v59, 0.0  ;;  %v4817_v19 = vmax.f32 %v5775_v34, 0.0 }
 0x503   :  { %v4816_v20 = vmax.f32 %v5648_v44, 0.0  ;;  %v4818_v24 = vmax.f32 %v5776_v1, 0.0 }
 0x504   :  { %v4975_v51 = vpack.c.bf16 %v4815_v48, %v4811_v37  ;;  %v4977_v38 = vpack.c.bf16 %v4817_v19, %v4813_v36 }
 0x505   :  { %v4976_v53 = vpack.c.bf16 %v4816_v20, %v4812_v16  ;;  %v4978_v27 = vpack.c.bf16 %v4818_v24, %v4814_v18  ;;  %v3842_v52 = vpop.f32.mrb[224].mxu0  ;;  %v4548_v33 = vpop.f32.mrb[224].mxu1 }
 0x506   :  { %v5649_v29 = vadd.f32 %v3842_v52, %v2498_v32  ;;  %v5777_v22 = vadd.f32 %v4548_v33, %v2498_v32  ;;  %v3844_v50 = vpop.f32.mrb[225].mxu0  ;;  %v4550_v62 = vpop.f32.mrb[225].mxu1 }
 0x507   :  { %v5650_v60 = vadd.f32 %v3844_v50, %v2498_v32  ;;  %v5778_v15 = vadd.f32 %v4550_v62, %v2498_v32  ;;  %v3846_v9 = vpop.f32.mrb[226].mxu0  ;;  %v4552_v10 = vpop.f32.mrb[226].mxu1  ;;  %5082 = vmatprep.subr.bf16.mxu0 %v4976_v53  ;;  %5164 = vmatprep.subr.bf16.mxu1 %v4978_v27 }
 0x508   :  { %v5651_v43 = vadd.f32 %v3846_v9, %v2503_v57  ;;  %v5779_v41 = vadd.f32 %v4552_v10, %v2503_v57  ;;  %v3848_v54 = vpop.f32.mrb[227].mxu0  ;;  %v4554_v30 = vpop.f32.mrb[227].mxu1  ;;  %5083 = vmatpush1.bf16.msra.mxu0 %v4975_v51  ;;  %5165 = vmatpush1.bf16.msra.mxu1 %v4977_v38  ;;  %v4819_v46 = vmax.f32 %v5649_v29, 0.0  ;;  %v4821_v40 = vmax.f32 %v5777_v22, 0.0 }
 0x509   :  { %v5652_v21 = vadd.f32 %v3848_v54, %v2503_v57  ;;  %v5780_v11 = vadd.f32 %v4554_v30, %v2503_v57  ;;  %v4820_v0 = vmax.f32 %v5650_v60, 0.0  ;;  %v4822_v55 = vmax.f32 %v5778_v15, 0.0  ;;  %v2523_v27 = vpop.permute.xlu0 %2522  ;;  %v2518_v52 = vpop.permute.xlu1 %2517 }
 0x50a   :  { %v4823_v39 = vmax.f32 %v5651_v43, 0.0  ;;  %v4825_v49 = vmax.f32 %v5779_v41, 0.0 }
 0x50b   :  { %v4824_v7 = vmax.f32 %v5652_v21, 0.0  ;;  %v4826_v31 = vmax.f32 %v5780_v11, 0.0 }
 0x50c   :  { %v4979_v56 = vpack.c.bf16 %v4823_v39, %v4819_v46  ;;  %v4981_v45 = vpack.c.bf16 %v4825_v49, %v4821_v40 }
 0x50d   :  { %v4980_v6 = vpack.c.bf16 %v4824_v7, %v4820_v0  ;;  %v4982_v61 = vpack.c.bf16 %v4826_v31, %v4822_v55  ;;  %v3852_v13 = vpop.f32.mrb[228].mxu0  ;;  %v4558_v58 = vpop.f32.mrb[228].mxu1 }
 0x50e   :  { %v5653_v35 = vadd.f32 %v3852_v13, %v2508_v14  ;;  %v5781_v25 = vadd.f32 %v4558_v58, %v2508_v14  ;;  %v3854_v26 = vpop.f32.mrb[229].mxu0  ;;  %v4560_v59 = vpop.f32.mrb[229].mxu1 }
 0x50f   :  { %v5654_v34 = vadd.f32 %v3854_v26, %v2508_v14  ;;  %v5782_v12 = vadd.f32 %v4560_v59, %v2508_v14  ;;  %v3856_v17 = vpop.f32.mrb[230].mxu0  ;;  %v4562_v44 = vpop.f32.mrb[230].mxu1  ;;  %5084 = vmatprep.subr.bf16.mxu0 %v4980_v6  ;;  %5166 = vmatprep.subr.bf16.mxu1 %v4982_v61 }
 0x510   :  { %v5655_v1 = vadd.f32 %v3856_v17, %v2513_v8  ;;  %v5783_v37 = vadd.f32 %v4562_v44, %v2513_v8  ;;  %v3858_v36 = vpop.f32.mrb[231].mxu0  ;;  %v4564_v48 = vpop.f32.mrb[231].mxu1  ;;  %5085 = vmatpush1.bf16.msra.mxu0 %v4979_v56  ;;  %5167 = vmatpush1.bf16.msra.mxu1 %v4981_v45  ;;  %v4827_v18 = vmax.f32 %v5653_v35, 0.0  ;;  %v4829_v20 = vmax.f32 %v5781_v25, 0.0 }
 0x511   :  { %v5656_v19 = vadd.f32 %v3858_v36, %v2513_v8  ;;  %v5784_v16 = vadd.f32 %v4564_v48, %v2513_v8  ;;  %v4828_v32 = vmax.f32 %v5654_v34, 0.0  ;;  %v4830_v51 = vmax.f32 %v5782_v12, 0.0  ;;  %v2533_v61 = vpop.permute.xlu0 %2532  ;;  %v2528_v13 = vpop.permute.xlu1 %2527 }
 0x512   :  { %v4831_v24 = vmax.f32 %v5655_v1, 0.0  ;;  %v4833_v57 = vmax.f32 %v5783_v37, 0.0 }
 0x513   :  { %v4832_v38 = vmax.f32 %v5656_v19, 0.0  ;;  %v4834_v53 = vmax.f32 %v5784_v16, 0.0 }
 0x514   :  { %v4983_v33 = vpack.c.bf16 %v4831_v24, %v4827_v18  ;;  %v4985_v29 = vpack.c.bf16 %v4833_v57, %v4829_v20 }
 0x515   :  { %v4984_v22 = vpack.c.bf16 %v4832_v38, %v4828_v32  ;;  %v4986_v50 = vpack.c.bf16 %v4834_v53, %v4830_v51  ;;  %v3862_v62 = vpop.f32.mrb[232].mxu0  ;;  %v4568_v60 = vpop.f32.mrb[232].mxu1 }
 0x516   :  { %v5657_v15 = vadd.f32 %v3862_v62, %v2518_v52  ;;  %v5785_v9 = vadd.f32 %v4568_v60, %v2518_v52  ;;  %v3864_v10 = vpop.f32.mrb[233].mxu0  ;;  %v4570_v43 = vpop.f32.mrb[233].mxu1 }
 0x517   :  { %v5658_v41 = vadd.f32 %v3864_v10, %v2518_v52  ;;  %v5786_v54 = vadd.f32 %v4570_v43, %v2518_v52  ;;  %v3866_v30 = vpop.f32.mrb[234].mxu0  ;;  %v4572_v21 = vpop.f32.mrb[234].mxu1  ;;  %5086 = vmatprep.subr.bf16.mxu0 %v4984_v22  ;;  %5168 = vmatprep.subr.bf16.mxu1 %v4986_v50 }
 0x518   :  { %v5659_v11 = vadd.f32 %v3866_v30, %v2523_v27  ;;  %v5787_v46 = vadd.f32 %v4572_v21, %v2523_v27  ;;  %v3868_v40 = vpop.f32.mrb[235].mxu0  ;;  %v4574_v39 = vpop.f32.mrb[235].mxu1  ;;  %5087 = vmatpush1.bf16.msra.mxu0 %v4983_v33  ;;  %5169 = vmatpush1.bf16.msra.mxu1 %v4985_v29  ;;  %v4835_v55 = vmax.f32 %v5657_v15, 0.0  ;;  %v4837_v7 = vmax.f32 %v5785_v9, 0.0 }
 0x519   :  { %v5660_v49 = vadd.f32 %v3868_v40, %v2523_v27  ;;  %v5788_v0 = vadd.f32 %v4574_v39, %v2523_v27  ;;  %v4836_v14 = vmax.f32 %v5658_v41, 0.0  ;;  %v4838_v56 = vmax.f32 %v5786_v54, 0.0  ;;  %v2543_v50 = vpop.permute.xlu0 %2542  ;;  %v2538_v62 = vpop.permute.xlu1 %2537 }
 0x51a   :  { %v4839_v31 = vmax.f32 %v5659_v11, 0.0  ;;  %v4841_v8 = vmax.f32 %v5787_v46, 0.0 }
 0x51b   :  { %v4840_v45 = vmax.f32 %v5660_v49, 0.0  ;;  %v4842_v6 = vmax.f32 %v5788_v0, 0.0 }
 0x51c   :  { %v4987_v58 = vpack.c.bf16 %v4839_v31, %v4835_v55  ;;  %v4989_v35 = vpack.c.bf16 %v4841_v8, %v4837_v7 }
 0x51d   :  { %v4988_v25 = vpack.c.bf16 %v4840_v45, %v4836_v14  ;;  %v4990_v26 = vpack.c.bf16 %v4842_v6, %v4838_v56  ;;  %v3872_v59 = vpop.f32.mrb[236].mxu0  ;;  %v4578_v34 = vpop.f32.mrb[236].mxu1 }
 0x51e   :  { %v5661_v12 = vadd.f32 %v3872_v59, %v2528_v13  ;;  %v5789_v17 = vadd.f32 %v4578_v34, %v2528_v13  ;;  %v3874_v44 = vpop.f32.mrb[237].mxu0  ;;  %v4580_v1 = vpop.f32.mrb[237].mxu1 }
 0x51f   :  { %v5662_v37 = vadd.f32 %v3874_v44, %v2528_v13  ;;  %v5790_v36 = vadd.f32 %v4580_v1, %v2528_v13  ;;  %v3876_v48 = vpop.f32.mrb[238].mxu0  ;;  %v4582_v19 = vpop.f32.mrb[238].mxu1  ;;  %5088 = vmatprep.subr.bf16.mxu0 %v4988_v25  ;;  %5170 = vmatprep.subr.bf16.mxu1 %v4990_v26 }
 0x520   :  { %v5663_v16 = vadd.f32 %v3876_v48, %v2533_v61  ;;  %v5791_v18 = vadd.f32 %v4582_v19, %v2533_v61  ;;  %v3878_v20 = vpop.f32.mrb[239].mxu0  ;;  %v4584_v24 = vpop.f32.mrb[239].mxu1  ;;  %5089 = vmatpush1.bf16.msra.mxu0 %v4987_v58  ;;  %5171 = vmatpush1.bf16.msra.mxu1 %v4989_v35  ;;  %v4843_v51 = vmax.f32 %v5661_v12, 0.0  ;;  %v4845_v38 = vmax.f32 %v5789_v17, 0.0 }
 0x521   :  { %v5664_v57 = vadd.f32 %v3878_v20, %v2533_v61  ;;  %v5792_v32 = vadd.f32 %v4584_v24, %v2533_v61  ;;  %v4844_v52 = vmax.f32 %v5662_v37, 0.0  ;;  %v4846_v33 = vmax.f32 %v5790_v36, 0.0  ;;  %v2553_v26 = vpop.permute.xlu0 %2552  ;;  %v2548_v59 = vpop.permute.xlu1 %2547 }
 0x522   :  { %v4847_v53 = vmax.f32 %v5663_v16, 0.0  ;;  %v4849_v27 = vmax.f32 %v5791_v18, 0.0 }
 0x523   :  { %v4848_v29 = vmax.f32 %v5664_v57, 0.0  ;;  %v4850_v22 = vmax.f32 %v5792_v32, 0.0 }
 0x524   :  { %v4991_v60 = vpack.c.bf16 %v4847_v53, %v4843_v51  ;;  %v4993_v15 = vpack.c.bf16 %v4849_v27, %v4845_v38 }
 0x525   :  { %v4992_v9 = vpack.c.bf16 %v4848_v29, %v4844_v52  ;;  %v4994_v10 = vpack.c.bf16 %v4850_v22, %v4846_v33  ;;  %v3882_v43 = vpop.f32.mrb[240].mxu0  ;;  %v4588_v41 = vpop.f32.mrb[240].mxu1 }
 0x526   :  { %v5665_v54 = vadd.f32 %v3882_v43, %v2538_v62  ;;  %v5793_v30 = vadd.f32 %v4588_v41, %v2538_v62  ;;  %v3884_v21 = vpop.f32.mrb[241].mxu0  ;;  %v4590_v11 = vpop.f32.mrb[241].mxu1 }
 0x527   :  { %v5666_v46 = vadd.f32 %v3884_v21, %v2538_v62  ;;  %v5794_v40 = vadd.f32 %v4590_v11, %v2538_v62  ;;  %v3886_v39 = vpop.f32.mrb[242].mxu0  ;;  %v4592_v49 = vpop.f32.mrb[242].mxu1  ;;  %5090 = vmatprep.subr.bf16.mxu0 %v4992_v9  ;;  %5172 = vmatprep.subr.bf16.mxu1 %v4994_v10 }
 0x528   :  { %v5667_v0 = vadd.f32 %v3886_v39, %v2543_v50  ;;  %v5795_v55 = vadd.f32 %v4592_v49, %v2543_v50  ;;  %v3888_v7 = vpop.f32.mrb[243].mxu0  ;;  %v4594_v31 = vpop.f32.mrb[243].mxu1  ;;  %5091 = vmatpush1.bf16.msra.mxu0 %v4991_v60  ;;  %5173 = vmatpush1.bf16.msra.mxu1 %v4993_v15  ;;  %v4851_v56 = vmax.f32 %v5665_v54, 0.0  ;;  %v4853_v45 = vmax.f32 %v5793_v30, 0.0 }
 0x529   :  { %v5668_v8 = vadd.f32 %v3888_v7, %v2543_v50  ;;  %v5796_v14 = vadd.f32 %v4594_v31, %v2543_v50  ;;  %v4852_v13 = vmax.f32 %v5666_v46, 0.0  ;;  %v4854_v58 = vmax.f32 %v5794_v40, 0.0  ;;  %v2563_v10 = vpop.permute.xlu0 %2562  ;;  %v2558_v43 = vpop.permute.xlu1 %2557 }
 0x52a   :  { %v4855_v6 = vmax.f32 %v5667_v0, 0.0  ;;  %v4857_v61 = vmax.f32 %v5795_v55, 0.0 }
 0x52b   :  { %v4856_v35 = vmax.f32 %v5668_v8, 0.0  ;;  %v4858_v25 = vmax.f32 %v5796_v14, 0.0 }
 0x52c   :  { %v4995_v34 = vpack.c.bf16 %v4855_v6, %v4851_v56  ;;  %v4997_v12 = vpack.c.bf16 %v4857_v61, %v4853_v45 }
 0x52d   :  { %v4996_v17 = vpack.c.bf16 %v4856_v35, %v4852_v13  ;;  %v4998_v44 = vpack.c.bf16 %v4858_v25, %v4854_v58  ;;  %v3892_v1 = vpop.f32.mrb[244].mxu0  ;;  %v4598_v37 = vpop.f32.mrb[244].mxu1 }
 0x52e   :  { %v5669_v36 = vadd.f32 %v3892_v1, %v2548_v59  ;;  %v5797_v48 = vadd.f32 %v4598_v37, %v2548_v59  ;;  %v3894_v19 = vpop.f32.mrb[245].mxu0  ;;  %v4600_v16 = vpop.f32.mrb[245].mxu1 }
 0x52f   :  { %v5670_v18 = vadd.f32 %v3894_v19, %v2548_v59  ;;  %v5798_v20 = vadd.f32 %v4600_v16, %v2548_v59  ;;  %v3896_v24 = vpop.f32.mrb[246].mxu0  ;;  %v4602_v57 = vpop.f32.mrb[246].mxu1  ;;  %5092 = vmatprep.subr.bf16.mxu0 %v4996_v17  ;;  %5174 = vmatprep.subr.bf16.mxu1 %v4998_v44 }
 0x530   :  { %v5671_v32 = vadd.f32 %v3896_v24, %v2553_v26  ;;  %v5799_v51 = vadd.f32 %v4602_v57, %v2553_v26  ;;  %v3898_v38 = vpop.f32.mrb[247].mxu0  ;;  %v4604_v53 = vpop.f32.mrb[247].mxu1  ;;  %5093 = vmatpush1.bf16.msra.mxu0 %v4995_v34  ;;  %5175 = vmatpush1.bf16.msra.mxu1 %v4997_v12  ;;  %v4859_v33 = vmax.f32 %v5669_v36, 0.0  ;;  %v4861_v29 = vmax.f32 %v5797_v48, 0.0 }
 0x531   :  { %v5672_v27 = vadd.f32 %v3898_v38, %v2553_v26  ;;  %v5800_v52 = vadd.f32 %v4604_v53, %v2553_v26  ;;  %v4860_v62 = vmax.f32 %v5670_v18, 0.0  ;;  %v4862_v60 = vmax.f32 %v5798_v20, 0.0  ;;  %v2573_v44 = vpop.permute.xlu0 %2572  ;;  %v2568_v1 = vpop.permute.xlu1 %2567 }
 0x532   :  { %v4863_v22 = vmax.f32 %v5671_v32, 0.0  ;;  %v4865_v50 = vmax.f32 %v5799_v51, 0.0 }
 0x533   :  { %v4864_v15 = vmax.f32 %v5672_v27, 0.0  ;;  %v4866_v9 = vmax.f32 %v5800_v52, 0.0 }
 0x534   :  { %v4999_v41 = vpack.c.bf16 %v4863_v22, %v4859_v33  ;;  %v5001_v54 = vpack.c.bf16 %v4865_v50, %v4861_v29 }
 0x535   :  { %v5000_v30 = vpack.c.bf16 %v4864_v15, %v4860_v62  ;;  %v5002_v21 = vpack.c.bf16 %v4866_v9, %v4862_v60  ;;  %v3902_v11 = vpop.f32.mrb[248].mxu0  ;;  %v4608_v46 = vpop.f32.mrb[248].mxu1 }
 0x536   :  { %v5673_v40 = vadd.f32 %v3902_v11, %v2558_v43  ;;  %v5801_v39 = vadd.f32 %v4608_v46, %v2558_v43  ;;  %v3904_v49 = vpop.f32.mrb[249].mxu0  ;;  %v4610_v0 = vpop.f32.mrb[249].mxu1 }
 0x537   :  { %v5674_v55 = vadd.f32 %v3904_v49, %v2558_v43  ;;  %v5802_v7 = vadd.f32 %v4610_v0, %v2558_v43  ;;  %v3906_v31 = vpop.f32.mrb[250].mxu0  ;;  %v4612_v8 = vpop.f32.mrb[250].mxu1  ;;  %5094 = vmatprep.subr.bf16.mxu0 %v5000_v30  ;;  %5176 = vmatprep.subr.bf16.mxu1 %v5002_v21 }
 0x538   :  { %v5675_v14 = vadd.f32 %v3906_v31, %v2563_v10  ;;  %v5803_v56 = vadd.f32 %v4612_v8, %v2563_v10  ;;  %v3908_v45 = vpop.f32.mrb[251].mxu0  ;;  %v4614_v6 = vpop.f32.mrb[251].mxu1  ;;  %5095 = vmatpush1.bf16.msra.mxu0 %v4999_v41  ;;  %5177 = vmatpush1.bf16.msra.mxu1 %v5001_v54  ;;  %v4867_v58 = vmax.f32 %v5673_v40, 0.0  ;;  %v4869_v35 = vmax.f32 %v5801_v39, 0.0  ;;  %v6338_v39 = vld [vmem:[%s7797_s7 + $0x8] sm:$0x77] }
 0x539   :  { %v5676_v61 = vadd.f32 %v3908_v45, %v2563_v10  ;;  %v5804_v13 = vadd.f32 %v4614_v6, %v2563_v10  ;;  %v4868_v59 = vmax.f32 %v5674_v55, 0.0  ;;  %v4870_v34 = vmax.f32 %v5802_v7, 0.0  ;;  %s6369_s7 = smov [#allocation2]  }
 0x53a   :  { %v4871_v25 = vmax.f32 %v5675_v14, 0.0  ;;  %v4873_v26 = vmax.f32 %v5803_v56, 0.0  ;;  %v5551_v49 = vcombine.low %v6338_v39, %v6338_v39 }
 0x53b   :  { %v4872_v12 = vmax.f32 %v5676_v61, 0.0  ;;  %v4874_v17 = vmax.f32 %v5804_v13, 0.0 }
 0x53c   :  { %v5003_v37 = vpack.c.bf16 %v4871_v25, %v4867_v58  ;;  %v5005_v36 = vpack.c.bf16 %v4873_v26, %v4869_v35  ;;  %v5208_v35 = vpop.permute.xlu1 %5207  ;;  %v5241_v25 = vpop.permute.xlu0 %5240 }
 0x53d   :  { %v5004_v48 = vpack.c.bf16 %v4872_v12, %v4868_v59  ;;  %v5006_v19 = vpack.c.bf16 %v4874_v17, %v4870_v34  ;;  %v3912_v16 = vpop.f32.mrb[252].mxu0  ;;  %v4618_v18 = vpop.f32.mrb[252].mxu1 }
 0x53e   :  { %v5677_v20 = vadd.f32 %v3912_v16, %v2568_v1  ;;  %v5805_v24 = vadd.f32 %v4618_v18, %v2568_v1  ;;  %v3914_v57 = vpop.f32.mrb[253].mxu0  ;;  %v4620_v32 = vpop.f32.mrb[253].mxu1 }
 0x53f   :  { %v5678_v51 = vadd.f32 %v3914_v57, %v2568_v1  ;;  %v5806_v38 = vadd.f32 %v4620_v32, %v2568_v1  ;;  %v3916_v53 = vpop.f32.mrb[254].mxu0  ;;  %v4622_v27 = vpop.f32.mrb[254].mxu1  ;;  %5096 = vmatprep.subr.bf16.mxu0 %v5004_v48  ;;  %5178 = vmatprep.subr.bf16.mxu1 %v5006_v19 }
 0x540   :  { %v5679_v52 = vadd.f32 %v3916_v53, %v2573_v44  ;;  %v5807_v33 = vadd.f32 %v4622_v27, %v2573_v44  ;;  %v3918_v29 = vpop.f32.mrb[255].mxu0  ;;  %v4624_v22 = vpop.f32.mrb[255].mxu1  ;;  %5097 = vmatpush1.bf16.msra.mxu0 %v5003_v37  ;;  %5179 = vmatpush1.bf16.msra.mxu1 %v5005_v36  ;;  %v4875_v60 = vmax.f32 %v5677_v20, 0.0  ;;  %v4877_v15 = vmax.f32 %v5805_v24, 0.0 }
 0x541   :  { %v5680_v50 = vadd.f32 %v3918_v29, %v2573_v44  ;;  %v5808_v62 = vadd.f32 %v4624_v22, %v2573_v44  ;;  %v4876_v43 = vmax.f32 %v5678_v51, 0.0  ;;  %v4878_v41 = vmax.f32 %v5806_v38, 0.0  ;;  %v5267_v26 = vpop.permute.xlu1 %5266 }
 0x542   :  { %v4879_v9 = vmax.f32 %v5679_v52, 0.0  ;;  %v4881_v10 = vmax.f32 %v5807_v33, 0.0 }
 0x543   :  { %v4880_v54 = vmax.f32 %v5680_v50, 0.0  ;;  %v4882_v30 = vmax.f32 %v5808_v62, 0.0 }
 0x544   :  { %v5007_v21 = vpack.c.bf16 %v4879_v9, %v4875_v60  ;;  %v5009_v11 = vpack.c.bf16 %v4881_v10, %v4877_v15 }
 0x545   :  { %v5008_v46 = vpack.c.bf16 %v4880_v54, %v4876_v43  ;;  %v5010_v40 = vpack.c.bf16 %v4882_v30, %v4878_v41 }
 0x547   :  { %5098 = vmatprep.subr.bf16.mxu0 %v5008_v46  ;;  %5180 = vmatprep.subr.bf16.mxu1 %v5010_v40 }
 0x548   :  { %5099 = vmatpush1.bf16.msra.mxu0 %v5007_v21  ;;  %5181 = vmatpush1.bf16.msra.mxu1 %v5009_v11 }
 0x54b   :  { %5101 = vmatmul.mubr.bf16.vlgmr.msra.gmra.mrb[0].mxu0 %v5551_v49  ;;  %5183 = vmatmul.mubr.bf16.vlgmr.msra.gmra.mrb[0].mxu1 %v5551_v49 }
 0x61e   :  { %v5102_v0 = vpop.f32.mrb[0].mxu0  ;;  %v5184_v55 = vpop.f32.mrb[0].mxu1 }
 0x61f   :  { %5193 = vrot.lane.b32.xlu0 %v5102_v0, %s6367_s0  ;;  %v5104_v7 = vpop.f32.mrb[1].mxu0  ;;  %v5186_v31 = vpop.f32.mrb[1].mxu1  ;;  %v5218_v6 = vrot.slane %v5102_v0, 4  ;;  %v5220_v13 = vrot.slane %v5184_v55, 4  ;;  %v5247_v44 = vrot.slane %v5102_v0, 2  ;;  %v5249_v32 = vrot.slane %v5184_v55, 2 }
 0x620   :  { %5195 = vrot.lane.b32.xlu1 %v5104_v7, %s6367_s0  ;;  %v5106_v8 = vpop.f32.mrb[2].mxu0  ;;  %v5188_v14 = vpop.f32.mrb[2].mxu1  ;;  %v5219_v61 = vrot.slane %v5104_v7, 4  ;;  %v5221_v58 = vrot.slane %v5186_v31, 4  ;;  %v5248_v57 = vrot.slane %v5104_v7, 2  ;;  %v5250_v42 = vrot.slane %v5186_v31, 2 }
 0x621   :  { %v5107_v56 = vpop.f32.mrb[3].mxu0  ;;  %v5189_v45 = vpop.f32.mrb[3].mxu1 }
 0x623   :  { %5197 = vrot.lane.b32.xlu0 %v5184_v55, %s6367_s0 }
 0x624   :  { %5199 = vrot.lane.b32.xlu1 %v5186_v31, %s6367_s0  ;;  %s5311_s0 = sshll.u32 %s6369_s7, 4  ;;  %s5312_s0 = int_to_ptr.vmem [resolvable:$true] %s5311_s0 }
 0x625   :  { %p6344_p1 = scmp.lt.s32.totalorder %s5312_s0, %s5312_s0 }
 0x627   :  { %5226 = vrot.lane.b32.xlu0 %v5218_v6, %s6368_s19 }
 0x628   :  { %5228 = vrot.lane.b32.xlu1 %v5219_v61, %s6368_s19 }
 0x62b   :  { %5230 = vrot.lane.b32.xlu0 %v5220_v13, %s6368_s19 }
 0x62c   :  { %5232 = vrot.lane.b32.xlu1 %v5221_v58, %s6368_s19  ;;  %s6339_s19 = scalar_lea.vmem %s5312_s0, 256 }
 0x62d   :  { %p6340_p0 = scmp.ne.s32.totalorder %s5312_s0, %s6339_s19  ;;  %p6345_p2 = scmp.lt.s32.totalorder %s6339_s19, %s6339_s19 }
 0x62f   :  { %p6346_p3 = por %p6345_p2, %p6344_p1 }
 0x631   :  { %p6347_p4 = pnand %p6346_p3, %p6340_p0 }
 0x691   :  { %v5194_v59 = vpop.permute.xlu0 %5193 }
 0x692   :  { %v5196_v34 = vpop.permute.xlu1 %5195 }
 0x693   :  { %v5203_v18 = vsel %vm191_vm0, %v5194_v59, %v5196_v34 }
 0x694   :  { %v5256_v27 = vadd.f32 %v5248_v57, %v5203_v18 }
 0x695   :  { %v5198_v12 = vpop.permute.xlu0 %5197 }
 0x696   :  { %v5200_v17 = vpop.permute.xlu1 %5199  ;;  %v5202_v37 = vsel %vm191_vm0, %v5196_v34, %v5198_v12 }
 0x697   :  { %v5204_v1 = vsel %vm191_vm0, %v5200_v17, %v5194_v59  ;;  %v5212_v20 = vsel %vm6684_vm8, %v5208_v35, %v5202_v37  ;;  %v5201_v51 = vsel %vm191_vm0, %v5198_v12, %v5200_v17 }
 0x698   :  { %v5210_v36 = vsel %vm6679_vm7, %v5208_v35, %v5204_v1  ;;  %v5257_v29 = vadd.f32 %v5249_v32, %v5212_v20  ;;  %v5258_v47 = vadd.f32 %v5250_v42, %v5201_v51 }
 0x699   :  { %v5227_v48 = vpop.permute.xlu0 %5226  ;;  %v5255_v19 = vadd.f32 %v5247_v44, %v5210_v36 }
 0x69a   :  { %v5229_v16 = vpop.permute.xlu1 %5228 }
 0x69b   :  { %v5236_v24 = vsel %vm208_vm1, %v5227_v48, %v5229_v16 }
 0x69c   :  { %v5259_v38 = vadd.f32 %v5255_v19, %v5236_v24 }
 0x69d   :  { %v5231_v53 = vpop.permute.xlu0 %5230 }
 0x69e   :  { %v5269_v52 = vadd.f32 %v5267_v26, %v5259_v38  ;;  %v5235_v33 = vsel %vm208_vm1, %v5229_v16, %v5231_v53  ;;  %v5233_v22 = vpop.permute.xlu1 %5232 }
 0x69f   :  { %v5244_v50 = vsel %vm6647_vm3, %v5241_v25, %v5235_v33  ;;  %v5234_v62 = vsel %vm208_vm1, %v5231_v53, %v5233_v22  ;;  %v5237_v60 = vsel %vm208_vm1, %v5233_v22, %v5227_v48 }
 0x6a0   :  { %v5260_v15 = vadd.f32 %v5256_v27, %v5244_v50  ;;  %v5246_v9 = vsel %vm6653_vm5, %v5241_v25, %v5237_v60  ;;  %v5261_v10 = vadd.f32 %v5257_v29, %v5234_v62  ;;  %v5277_v41 = vrot.slane %v5269_v52, 6 }
 0x6a1   :  { %v5262_v43 = vadd.f32 %v5258_v47, %v5246_v9 }
 0x6a2   :  { %v5270_v54 = vadd.f32 %v5267_v26, %v5260_v15  ;;  %v5271_v30 = vadd.f32 %v5267_v26, %v5261_v10  ;;  %v5285_v40 = vadd.f32 %v5277_v41, %v6445_v2 }
 0x6a3   :  { %v5272_v21 = vadd.f32 %v5267_v26, %v5262_v43 }
 0x6a4   :  { %v5278_v11 = vrot.slane %v5270_v54, 6  ;;  %v5279_v46 = vrot.slane %v5271_v30, 6 }
 0x6a5   :  { %v5280_v23 = vrot.slane %v5272_v21, 6 }
 0x6a6   :  { %v5286_v39 = vadd.f32 %v5278_v11, %v6447_v3  ;;  %v5287_v63 = vadd.f32 %v5279_v46, %v6449_v4 }
 0x6a7   :  { %v5288_v28 = vadd.f32 %v5280_v23, %v6451_v5 }
 0x6a8   :  { %v5294_v49 = vcombine.low %v5285_v40, %v5286_v39 }
 0x6a9   :  { %v5303_v0 = vcombine.low %v5287_v63, %v5288_v28 }
 0x6aa   :  { %5296 = vst [vmem:[#allocation2] sm:$0xcc] %v5294_v49 }
 0x6ab   :  { %5305 = vst [vmem:[#allocation2 + $0x8] sm:$0xcc] %v5303_v0 }
 0x6ac   :  { %6350 = shalt.err (!%p6347_p4)
}
 0x6ad   :  { %s6351_s17 = scalar_lea.hbm %s7800_s10, 256 }
 0x6ae   :  { %p6352_p5 = scmp.ne.s32.totalorder %s7800_s10, %s6351_s17  ;;  %p6355_p6 = scmp.lt.u32.totalorder %s6351_s17, %s7800_s10 }
 0x6b0   :  { %p6357_p7 = pnand %p6355_p6, %p6352_p5 }
 0x6b2   :  { %6360 = shalt.err (!%p6357_p7)
}
 0x6b3   :  { %s6370_s23 = smov 128   ;;  %s6371_s24 = smov 8  }
 0x6b4   :  { %5317 = dma.vmem_to_hbm [thread:$0]  %s5312_s0, 256, %s7800_s10, [#allocation3], %s6370_s23, %s6370_s23, %s6371_s24  }
 0x6b5   :  { %6361 = dma.done.wait [#allocation3], 256  }
 0x6b6   :  { %6362 = vsyncadd [#allocation3], 4294967040 }
 0x6b7   :  { %5321 = vsyncpa [#allocation3], 1 }

</bundles_post_ra>
